<compile_context>
chip_gen: v5e
topology: v5e:2x2
jax: 0.10.0
libtpu: 0.0.40
codegen_flags: <defaults>
</compile_context>

<pallas_src>
import jax
import jax.numpy as jnp
from jax.experimental import pallas as pl
from jax.experimental.pallas import tpu as pltpu

BN_EPS = 1e-5
K, S, P = 5, 2, 2          # kernel, stride, padding (both layers)
OC0, OC1 = 12, 12          # output channels of layer 0 / layer 1


def _conv_out(n):
    return (n + 2 * P - K) // S + 1


# ------------------------------ Pallas kernel ------------------------------ #

def lenet_fused_kernel(x_ref, t0_ref, gamma_ref, beta_ref, pool_ref, poolt_ref,
                       t1_ref, b1_ref, out_ref):
    """Fused LeNet forward.

    x:     (N, C*H*W)        bf16  NCHW-flattened input
    t0:    (C*H*W, 12*S0)    bf16  layer-0 conv as Toeplitz matmul, cols = (c0, oy, ox)
    gamma/beta: (1, 12)      f32   BatchNorm affine params
    pool:  (12*S0, 12)       f32   per-channel pooling matrix (S0 spatial cols/channel)
    poolt: (12, 12*S0)       f32   its transpose (per-channel -> per-column broadcast)
    t1:    (12*S0, OUTP)     bf16  layer-1 conv as Toeplitz matmul (zero-padded cols)
    b1:    (1, OUTP)         f32   layer-1 bias broadcast to output columns
    out:   (N, OUTP)         f32   final flattened activations (valid cols [0, 12*S1))
    """
    # ---- layer 0: conv as one MXU matmul, f32 accumulation ---------------- #
    y0 = jnp.dot(x_ref[...], t0_ref[...],
                 preferred_element_type=jnp.float32)           # (N, 12*S0)

    # ---- BatchNorm2d (training mode), single-pass stats, f32 -------------- #
    spatial0 = pool_ref.shape[0] // pool_ref.shape[1]          # S0 = OH0*OW0 (static)
    m = jnp.float32(y0.shape[0] * spatial0)                    # elements per channel
    s1 = jnp.sum(y0, axis=0, keepdims=True)                    # (1, 12*S0)
    s2 = jnp.sum(y0 * y0, axis=0, keepdims=True)               # (1, 12*S0)
    s1c = jnp.dot(s1, pool_ref[...], preferred_element_type=jnp.float32)   # (1, 12)
    s2c = jnp.dot(s2, pool_ref[...], preferred_element_type=jnp.float32)   # (1, 12)
    mean = s1c / m
    var = s2c / m - mean * mean            # biased variance (f32 acc; magnitudes ~O(1))
    inv = jax.lax.rsqrt(var + BN_EPS)                          # EUP
    scale_c = gamma_ref[...] * inv                             # (1, 12)
    shift_c = beta_ref[...] - mean * scale_c                   # (1, 12)
    scale = jnp.dot(scale_c, poolt_ref[...], preferred_element_type=jnp.float32)
    shift = jnp.dot(shift_c, poolt_ref[...], preferred_element_type=jnp.float32)
    a0 = jnp.maximum(y0 * scale + shift, 0.0)                  # ReLU, stays in VMEM

    # ---- layer 1: conv as matmul + bias + ReLU (already NCHW-flattened) --- #
    y1 = jnp.dot(a0.astype(jnp.bfloat16), t1_ref[...],
                 preferred_element_type=jnp.float32)           # (N, OUTP)
    out_ref[...] = jnp.maximum(y1 + b1_ref[...], 0.0)


# --------------------- weight-side precompute (done once) ------------------ #

def _shift_selector(in_size, out_size):
    """sel[i, k, o] = 1.0 iff input coord i == S*o + k - P (padding handled implicitly)."""
    i = jnp.arange(in_size)[:, None, None]
    k = jnp.arange(K)[None, :, None]
    o = jnp.arange(out_size)[None, None, :]
    return (i + P == S * o + k).astype(jnp.float32)


def prepare_params(params, in_channels, height, width):
    """Fold im2col into the conv weights (Toeplitz matrices). Run once per weight set."""
    oh0, ow0 = _conv_out(height), _conv_out(width)
    oh1, ow1 = _conv_out(oh0), _conv_out(ow0)

    w0 = params["w0"].astype(jnp.float32)          # (12, C, 5, 5)
    w1 = params["w1"].astype(jnp.float32)          # (12, 12, 5, 5)

    # layer 0: rows = (ci, h, w) of the UNpadded input, cols = (c0, oy, ox)
    sel_h0 = _shift_selector(height, oh0)
    sel_w0 = _shift_selector(width, ow0)
    t0 = jnp.einsum('hky,wlx,abkl->bhwayx', sel_h0, sel_w0, w0)
    t0 = t0.reshape(in_channels * height * width, OC0 * oh0 * ow0)

    # layer 1: rows = (c0, oy, ox), cols = (c1, oy1, ox1)  (== torch NCHW flatten)
    sel_h1 = _shift_selector(oh0, oh1)
    sel_w1 = _shift_selector(ow0, ow1)
    t1 = jnp.einsum('ykz,xlu,cdkl->dyxczu', sel_h1, sel_w1, w1)
    t1 = t1.reshape(OC0 * oh0 * ow0, OC1 * oh1 * ow1)

    n_valid = OC1 * oh1 * ow1
    n_out = max(128, ((n_valid + 127) // 128) * 128)   # lane-dense padded output width
    t1 = jnp.pad(t1, ((0, 0), (0, n_out - n_valid)))

    b1 = jnp.repeat(params["b1"].reshape(-1), oh1 * ow1)
    b1 = jnp.pad(b1, (0, n_out - n_valid)).reshape(1, n_out).astype(jnp.float32)

    pool = jnp.repeat(jnp.eye(OC0, dtype=jnp.float32), oh0 * ow0, axis=0)

    return {
        "t0": t0.astype(jnp.bfloat16),
        "t1": t1.astype(jnp.bfloat16),
        "gamma": params["gamma0"].reshape(1, OC0).astype(jnp.float32),
        "beta": params["beta0"].reshape(1, OC0).astype(jnp.float32),
        "pool": pool,
        "pool_t": pool.T,
        "b1": b1,
    }


def init_params(key, in_channels):
    k0, k1, k2 = jax.random.split(key, 3)
    return {
        "w0": jax.random.normal(k0, (OC0, in_channels, K, K), jnp.float32) * 0.1,
        "gamma0": jnp.ones((OC0,), jnp.float32),
        "beta0": jnp.zeros((OC0,), jnp.float32),
        "w1": jax.random.normal(k1, (OC1, OC0, K, K), jnp.float32) * 0.1,
        "b1": jax.random.normal(k2, (OC1,), jnp.float32) * 0.05,
    }


# ------------------------------- forward ----------------------------------- #

@jax.jit
def lenet_forward(x_nchw, prep):
    n, c, h, w = x_nchw.shape
    oh1, ow1 = _conv_out(_conv_out(h)), _conv_out(_conv_out(w))
    n_valid = OC1 * oh1 * ow1
    n_out = prep["b1"].shape[1]

    x_flat = x_nchw.reshape(n, c * h * w).astype(jnp.bfloat16)

    out = pl.pallas_call(
        lenet_fused_kernel,
        out_shape=jax.ShapeDtypeStruct((n, n_out), jnp.float32),
        in_specs=[pl.BlockSpec(memory_space=pltpu.MemorySpace.VMEM)] * 8,
        out_specs=pl.BlockSpec(memory_space=pltpu.MemorySpace.VMEM),
    )(x_flat, prep["t0"], prep["gamma"], prep["beta"], prep["pool"],
      prep["pool_t"], prep["t1"], prep["b1"])

    return out[:, :n_valid]


# ------------------------- pure-JAX reference ------------------------------ #

def lenet_reference(x, params):
    y0 = jax.lax.conv_general_dilated(
        x, params["w0"], window_strides=(S, S), padding=((P, P), (P, P)),
        dimension_numbers=("NCHW", "OIHW", "NCHW"))
    mean = jnp.mean(y0, axis=(0, 2, 3), keepdims=True)
    var = jnp.mean((y0 - mean) ** 2, axis=(0, 2, 3), keepdims=True)
    g = params["gamma0"].reshape(1, -1, 1, 1)
    b = params["beta0"].reshape(1, -1, 1, 1)
    y0 = jnp.maximum((y0 - mean) * jax.lax.rsqrt(var + BN_EPS) * g + b, 0.0)
    y1 = jax.lax.conv_general_dilated(
        y0, params["w1"], window_strides=(S, S), padding=((P, P), (P, P)),
        dimension_numbers=("NCHW", "OIHW", "NCHW"))
    y1 = jnp.maximum(y1 + params["b1"].reshape(1, -1, 1, 1), 0.0)
    return y1.reshape(y1.shape[0], -1)


if __name__ == "__main__":
    key = jax.random.PRNGKey(0)
    kx, kp = jax.random.split(key)

    in_channels, height, width = 3, 16, 16
    x = jax.random.normal(kx, (2, in_channels, height, width), jnp.float32)  # NCHW
    params = init_params(kp, in_channels)

    prep = prepare_params(params, in_channels, height, width)   # one-time weight prep
    out = lenet_forward(x, prep)
    jax.block_until_ready(out)

    # 16 -> conv(k=5,s=2,p=2) -> 8 -> conv -> 4 ; 12 channels ; flatten = 12*4*4
    assert out.shape == (2, OC1 * 4 * 4), out.shape
    assert out.dtype == jnp.float32

    ref = lenet_reference(x, params)
    assert jnp.allclose(out, ref, rtol=5e-2, atol=5e-2), (
        float(jnp.max(jnp.abs(out - ref))))

    print("KERNEL_OK")
</pallas_src>

<mosaic_0001>
module attributes {stable_mosaic.version = 11 : i64} {
  func.func @lenet_fused_kernel(%arg0: memref<2x768xbf16, #tpu.memory_space<vmem>>, %arg1: memref<768x768xbf16, #tpu.memory_space<vmem>>, %arg2: memref<1x12xf32, #tpu.memory_space<vmem>>, %arg3: memref<1x12xf32, #tpu.memory_space<vmem>>, %arg4: memref<768x12xf32, #tpu.memory_space<vmem>>, %arg5: memref<12x768xf32, #tpu.memory_space<vmem>>, %arg6: memref<768x256xbf16, #tpu.memory_space<vmem>>, %arg7: memref<1x256xf32, #tpu.memory_space<vmem>>, %arg8: memref<2x256xf32, #tpu.memory_space<vmem>>) attributes {dimension_semantics = [], scalar_prefetch = 0 : i64, scratch_operands = 0 : i64, tpu.core_type = #tpu.core_type<tc>} {
    %c0 = arith.constant 0 : index
    %c0_0 = arith.constant 0 : index
    %0 = vector.load %arg0[%c0, %c0_0] : memref<2x768xbf16, #tpu.memory_space<vmem>>, vector<2x768xbf16>
    %c0_1 = arith.constant 0 : index
    %c0_2 = arith.constant 0 : index
    %1 = vector.load %arg1[%c0_1, %c0_2] : memref<768x768xbf16, #tpu.memory_space<vmem>>, vector<768x768xbf16>
    %cst = arith.constant dense<0.000000e+00> : vector<2x768xf32>
    %2 = tpu.matmul %0, %1, %cst {dimension_numbers = #tpu.dot_dimension_numbers<[1], [0], [0], [1], [0, 0, 1, 1], [], []>} : vector<2x768xbf16>, vector<768x768xbf16>, vector<2x768xf32> -> vector<2x768xf32>
    %cst_3 = arith.constant dense<0.000000e+00> : vector<768xf32>
    %3 = vector.multi_reduction <add>, %2, %cst_3 [0] : vector<2x768xf32> to vector<768xf32>
    %4 = vector.shape_cast %3 : vector<768xf32> to vector<1x768xf32>
    %5 = arith.mulf %2, %2 : vector<2x768xf32>
    %cst_4 = arith.constant dense<0.000000e+00> : vector<768xf32>
    %6 = vector.multi_reduction <add>, %5, %cst_4 [0] : vector<2x768xf32> to vector<768xf32>
    %7 = vector.shape_cast %6 : vector<768xf32> to vector<1x768xf32>
    %c0_5 = arith.constant 0 : index
    %c0_6 = arith.constant 0 : index
    %8 = vector.load %arg4[%c0_5, %c0_6] : memref<768x12xf32, #tpu.memory_space<vmem>>, vector<768x12xf32>
    %cst_7 = arith.constant dense<0.000000e+00> : vector<1x12xf32>
    %9 = tpu.matmul %4, %8, %cst_7 {dimension_numbers = #tpu.dot_dimension_numbers<[1], [0], [0], [1], [0, 0, 1, 1], [], []>} : vector<1x768xf32>, vector<768x12xf32>, vector<1x12xf32> -> vector<1x12xf32>
    %c0_8 = arith.constant 0 : index
    %c0_9 = arith.constant 0 : index
    %10 = vector.load %arg4[%c0_8, %c0_9] : memref<768x12xf32, #tpu.memory_space<vmem>>, vector<768x12xf32>
    %cst_10 = arith.constant dense<0.000000e+00> : vector<1x12xf32>
    %11 = tpu.matmul %7, %10, %cst_10 {dimension_numbers = #tpu.dot_dimension_numbers<[1], [0], [0], [1], [0, 0, 1, 1], [], []>} : vector<1x768xf32>, vector<768x12xf32>, vector<1x12xf32> -> vector<1x12xf32>
    %cst_11 = arith.constant 1.280000e+02 : f32
    %12 = vector.broadcast %cst_11 : f32 to vector<1x12xf32>
    %13 = arith.divf %9, %12 : vector<1x12xf32>
    %cst_12 = arith.constant 1.280000e+02 : f32
    %14 = vector.broadcast %cst_12 : f32 to vector<1x12xf32>
    %15 = arith.divf %11, %14 : vector<1x12xf32>
    %16 = arith.mulf %13, %13 : vector<1x12xf32>
    %17 = arith.subf %15, %16 : vector<1x12xf32>
    %cst_13 = arith.constant 9.99999974E-6 : f32
    %18 = vector.broadcast %cst_13 : f32 to vector<1x12xf32>
    %19 = arith.addf %17, %18 : vector<1x12xf32>
    %20 = math.rsqrt %19 : vector<1x12xf32>
    %c0_14 = arith.constant 0 : index
    %c0_15 = arith.constant 0 : index
    %21 = vector.load %arg2[%c0_14, %c0_15] : memref<1x12xf32, #tpu.memory_space<vmem>>, vector<1x12xf32>
    %22 = arith.mulf %21, %20 : vector<1x12xf32>
    %c0_16 = arith.constant 0 : index
    %c0_17 = arith.constant 0 : index
    %23 = vector.load %arg3[%c0_16, %c0_17] : memref<1x12xf32, #tpu.memory_space<vmem>>, vector<1x12xf32>
    %24 = arith.mulf %13, %22 : vector<1x12xf32>
    %25 = arith.subf %23, %24 : vector<1x12xf32>
    %c0_18 = arith.constant 0 : index
    %c0_19 = arith.constant 0 : index
    %26 = vector.load %arg5[%c0_18, %c0_19] : memref<12x768xf32, #tpu.memory_space<vmem>>, vector<12x768xf32>
    %cst_20 = arith.constant dense<0.000000e+00> : vector<1x768xf32>
    %27 = tpu.matmul %22, %26, %cst_20 {dimension_numbers = #tpu.dot_dimension_numbers<[1], [0], [0], [1], [0, 0, 1, 1], [], []>} : vector<1x12xf32>, vector<12x768xf32>, vector<1x768xf32> -> vector<1x768xf32>
    %c0_21 = arith.constant 0 : index
    %c0_22 = arith.constant 0 : index
    %28 = vector.load %arg5[%c0_21, %c0_22] : memref<12x768xf32, #tpu.memory_space<vmem>>, vector<12x768xf32>
    %cst_23 = arith.constant dense<0.000000e+00> : vector<1x768xf32>
    %29 = tpu.matmul %25, %28, %cst_23 {dimension_numbers = #tpu.dot_dimension_numbers<[1], [0], [0], [1], [0, 0, 1, 1], [], []>} : vector<1x12xf32>, vector<12x768xf32>, vector<1x768xf32> -> vector<1x768xf32>
    %30 = vector.broadcast %27 : vector<1x768xf32> to vector<2x768xf32>
    %31 = arith.mulf %2, %30 : vector<2x768xf32>
    %32 = vector.broadcast %29 : vector<1x768xf32> to vector<2x768xf32>
    %33 = arith.addf %31, %32 : vector<2x768xf32>
    %cst_24 = arith.constant 0.000000e+00 : f32
    %34 = vector.broadcast %cst_24 : f32 to vector<2x768xf32>
    %35 = arith.maximumf %33, %34 : vector<2x768xf32>
    %36 = arith.truncf %35 : vector<2x768xf32> to vector<2x768xbf16>
    %c0_25 = arith.constant 0 : index
    %c0_26 = arith.constant 0 : index
    %37 = vector.load %arg6[%c0_25, %c0_26] : memref<768x256xbf16, #tpu.memory_space<vmem>>, vector<768x256xbf16>
    %cst_27 = arith.constant dense<0.000000e+00> : vector<2x256xf32>
    %38 = tpu.matmul %36, %37, %cst_27 {dimension_numbers = #tpu.dot_dimension_numbers<[1], [0], [0], [1], [0, 0, 1, 1], [], []>} : vector<2x768xbf16>, vector<768x256xbf16>, vector<2x256xf32> -> vector<2x256xf32>
    %c0_28 = arith.constant 0 : index
    %c0_29 = arith.constant 0 : index
    %39 = vector.load %arg7[%c0_28, %c0_29] : memref<1x256xf32, #tpu.memory_space<vmem>>, vector<1x256xf32>
    %40 = vector.broadcast %39 : vector<1x256xf32> to vector<2x256xf32>
    %41 = arith.addf %38, %40 : vector<2x256xf32>
    %cst_30 = arith.constant 0.000000e+00 : f32
    %42 = vector.broadcast %cst_30 : f32 to vector<2x256xf32>
    %43 = arith.maximumf %41, %42 : vector<2x256xf32>
    %c0_31 = arith.constant 0 : index
    %c0_32 = arith.constant 0 : index
    %44 = vector.load %arg8[%c0_31, %c0_32] : memref<2x256xf32, #tpu.memory_space<vmem>>, vector<2x256xf32>
    tpu.vector_store %arg8[%c0_31, %c0_32], %43 {strides = array<i32>} : memref<2x256xf32, #tpu.memory_space<vmem>>, vector<2x256xf32>,
    return
  }
}

</mosaic_0001>

<bundles_post_ra>
// kernel: lenet_forward.1
= control target key start
LH: loop header
LB: loop body
LE: loop exit
PB: predicated region body
PF: predicated region fallthrough
CT: control target
= control target key end

     0   :  { %13 = vsyncpa [#allocation3], 0  ;;  %s6880_s0 = inlined_call_operand.vmem [shape: bf16[2,768], index: 0, kind: input, shape index: {}]   ;;  %s6881_s1 = inlined_call_operand.hbm [shape: bf16[768,768], index: 1, kind: input, shape index: {}]   ;;  %s6882_s2 = inlined_call_operand.hbm [shape: f32[1,12], index: 2, kind: input, shape index: {}]   ;;  %s6883_s3 = inlined_call_operand.hbm [shape: f32[1,12], index: 3, kind: input, shape index: {}]   ;;  %s6884_s4 = inlined_call_operand.vmem [shape: f32[768,12], index: 4, kind: input, shape index: {}]   ;;  %s6885_s5 = inlined_call_operand.hbm [shape: f32[12,768], index: 5, kind: input, shape index: {}]   ;;  %s6886_s6 = inlined_call_operand.hbm [shape: bf16[768,256], index: 6, kind: input, shape index: {}]   ;;  %s6887_s7 = inlined_call_operand.hbm [shape: f32[1,256], index: 7, kind: input, shape index: {}]   ;;  %s6888_s8 = inlined_call_operand.hbm [shape: f32[2,256], index: 8, kind: output, shape index: {}]  }
   0x1   :  { %14 = vsyncpa [#allocation6], 0 }
   0x2   :  { %15 = vsyncpa [#allocation9], 0 }
   0x3   :  { %16 = vsyncpa [#allocation12], 0  ;;  %s38_s29 = sshll.u32 %s6882_s2, 4  ;;  %s39_s29 = int_to_ptr.hbm [resolvable:$true] %s38_s29 }
   0x4   :  { %17 = vsyncpa [#allocation4], 0  ;;  %s6009_s30 = smov [#allocation5]   ;;  %s61_s12 = sshll.u32 %s6885_s5, 4  ;;  %s62_s12 = int_to_ptr.hbm [resolvable:$true] %s61_s12 }
   0x5   :  { %s40_s9 = sshll.u32 %s6009_s30, 4  ;;  %s6010_s13 = smov [#allocation8]   ;;  %s41_s9 = int_to_ptr.vmem [resolvable:$true] %s40_s9 }
   0x6   :  { %43 = dma.hbm_to_vmem [thread:$0]  %s39_s29, 16, %s41_s9, [#allocation6]  }
   0x7   :  { %s63_s14 = sshll.u32 %s6010_s13, 4  ;;  %s6011_s15 = smov 768   ;;  %s64_s14 = int_to_ptr.vmem [resolvable:$true] %s63_s14 }
   0x8   :  { %s6012_s16 = smov 48   ;;  %s24_s2 = sshll.u32 %s6881_s1, 4  ;;  %s25_s2 = int_to_ptr.hbm [resolvable:$true] %s24_s2 }
   0x9   :  { %69 = dma.hbm_to_vmem [thread:$0]  %s62_s12, 1536, %s64_s14, [#allocation9], %s6011_s15, %s6011_s15, %s6012_s16  }
   0xa   :  { %s6013_s19 = smov [#allocation2]   ;;  %s49_s5 = sshll.u32 %s6883_s3, 4  ;;  %s50_s5 = int_to_ptr.hbm [resolvable:$true] %s49_s5 }
   0xb   :  { %s26_s20 = sshll.u32 %s6013_s19, 4  ;;  %s6014_s23 = smov 384   ;;  %s27_s20 = int_to_ptr.vmem [resolvable:$true] %s26_s20 }
   0xc   :  { %s6015_s24 = smov 24   ;;  %s6016_s25 = smov [#allocation7]  }
   0xd   :  { %32 = dma.hbm_to_vmem [thread:$0]  %s25_s2, 36864, %s27_s20, [#allocation3], %s6014_s23, %s6014_s23, %s6015_s24  }
   0xe   :  { %s51_s26 = sshll.u32 %s6016_s25, 4  ;;  %s74_s29 = sshll.u32 %s6886_s6, 4  ;;  %s52_s26 = int_to_ptr.vmem [resolvable:$true] %s51_s26  ;;  %s75_s29 = int_to_ptr.hbm [resolvable:$true] %s74_s29 }
   0xf   :  { %54 = dma.hbm_to_vmem [thread:$0]  %s50_s5, 16, %s52_s26, [#allocation6]  }
  0x10   :  { %s6017_s1 = smov [#allocation10]   ;;  %s88_s3 = sshll.u32 %s6887_s7, 4  ;;  %s89_s3 = int_to_ptr.hbm [resolvable:$true] %s88_s3 }
  0x11   :  { %s76_s30 = sshll.u32 %s6017_s1, 4  ;;  %s6018_s11 = smov 128   ;;  %s77_s30 = int_to_ptr.vmem [resolvable:$true] %s76_s30 }
  0x12   :  { %s6019_s12 = smov 8   ;;  %s6020_s13 = smov [#allocation11]  }
  0x13   :  { %82 = dma.hbm_to_vmem [thread:$0]  %s75_s29, 12288, %s77_s30, [#allocation9], %s6018_s11, %s6018_s11, %s6019_s12  }
  0x14   :  { %s90_s14 = sshll.u32 %s6020_s13, 4  ;;  %s91_s14 = int_to_ptr.vmem [resolvable:$true] %s90_s14 }
  0x15   :  { %93 = dma.hbm_to_vmem [thread:$0]  %s89_s3, 32, %s91_s14, [#allocation12]  }
  0x16   :  { %5999 = dma.done.wait [#allocation3], 36864  }
  0x17   :  { %6000 = vsyncadd [#allocation3], 4294930432 }
  0x18   :  { %6001 = dma.done.wait [#allocation6], 32  }
  0x19   :  { %6002 = vsyncadd [#allocation6], 4294967264 }
  0x1a   :  { %6003 = dma.done.wait [#allocation9], 13824  }
  0x1b   :  { %6004 = vsyncadd [#allocation9], 4294953472 }
  0x1c   :  { %6005 = dma.done.wait [#allocation12], 32  }
  0x1d   :  { %6006 = vsyncadd [#allocation12], 4294967264  ;;  %v4033_v0 = vld [vmem:[#allocation2 + $0x150] sm:$0xf]  ;;  %v5468_v1 = vld [vmem:[#allocation2 + $0x164] sm:$0xf0] }
  0x1e   :  { %v4225_v2 = vld [vmem:[#allocation2 + $0x2d0] sm:$0xf]  ;;  %v4034_v3 = vor.u32 %v5468_v1, %v4033_v0  ;;  %v5516_v4 = vld [vmem:[#allocation2 + $0x2e4] sm:$0xf0]  ;;  %v4009_v11 = vld [vmem:[#allocation2 + $0x120] sm:$0xf] }
  0x1f   :  { %v4417_v5 = vld [vmem:[#allocation2 + $0x450] sm:$0xf]  ;;  %v5564_v6 = vld [vmem:[#allocation2 + $0x464] sm:$0xf0]  ;;  %v4226_v7 = vor.u32 %v5516_v4, %v4225_v2  ;;  %v5462_v13 = vld [vmem:[#allocation2 + $0x134] sm:$0xf0] }
  0x20   :  { %v4418_v8 = vor.u32 %v5564_v6, %v4417_v5  ;;  %v4609_v9 = vld [vmem:[#allocation2 + $0x5d0] sm:$0xf]  ;;  %v5612_v10 = vld [vmem:[#allocation2 + $0x5e4] sm:$0xf0]  ;;  %1861 = vmatpush.bf16.msra.mxu0 %v4034_v3  ;;  %v4201_v14 = vld [vmem:[#allocation2 + $0x2a0] sm:$0xf]  ;;  %v4010_v16 = vor.u32 %v5462_v13, %v4009_v11 }
  0x21   :  { %v4610_v12 = vor.u32 %v5612_v10, %v4609_v9  ;;  %v5510_v15 = vld [vmem:[#allocation2 + $0x2b4] sm:$0xf0]  ;;  %1874 = vmatpush.bf16.msra.mxu1 %v4226_v7  ;;  %v4393_v18 = vld [vmem:[#allocation2 + $0x420] sm:$0xf]  ;;  %v3985_v23 = vld [vmem:[#allocation2 + $0xf0] sm:$0xf] }
  0x22   :  { %1887 = vmatpush.bf16.msra.mxu2 %v4418_v8  ;;  %v4202_v17 = vor.u32 %v5510_v15, %v4201_v14  ;;  %v5558_v19 = vld [vmem:[#allocation2 + $0x434] sm:$0xf0]  ;;  %v4585_v20 = vld [vmem:[#allocation2 + $0x5a0] sm:$0xf]  ;;  %v5456_v24 = vld [vmem:[#allocation2 + $0x104] sm:$0xf0] }
  0x23   :  { %1900 = vmatpush.bf16.msra.mxu3 %v4610_v12  ;;  %v4394_v21 = vor.u32 %v5558_v19, %v4393_v18  ;;  %v5606_v22 = vld [vmem:[#allocation2 + $0x5b4] sm:$0xf0]  ;;  %v4177_v26 = vld [vmem:[#allocation2 + $0x270] sm:$0xf]  ;;  %v5504_v27 = vld [vmem:[#allocation2 + $0x284] sm:$0xf0]  ;;  %v3986_v29 = vor.u32 %v5456_v24, %v3985_v23 }
  0x24   :  { %v4586_v25 = vor.u32 %v5606_v22, %v4585_v20  ;;  %v4369_v28 = vld [vmem:[#allocation2 + $0x3f0] sm:$0xf]  ;;  %1862 = vmatpush.bf16.msra.mxu0 %v4010_v16  ;;  %v5552_v30 = vld [vmem:[#allocation2 + $0x404] sm:$0xf0]  ;;  %v4178_v33 = vor.u32 %v5504_v27, %v4177_v26  ;;  %v3961_v35 = vld [vmem:[#allocation2 + $0xc0] sm:$0xf] }
  0x25   :  { %v4561_v31 = vld [vmem:[#allocation2 + $0x570] sm:$0xf]  ;;  %v5600_v32 = vld [vmem:[#allocation2 + $0x584] sm:$0xf0]  ;;  %1875 = vmatpush.bf16.msra.mxu1 %v4202_v17  ;;  %v4370_v34 = vor.u32 %v5552_v30, %v4369_v28  ;;  %v5450_v36 = vld [vmem:[#allocation2 + $0xd4] sm:$0xf0] }
  0x26   :  { %1888 = vmatpush.bf16.msra.mxu2 %v4394_v21  ;;  %v4153_v37 = vld [vmem:[#allocation2 + $0x240] sm:$0xf]  ;;  %v4562_v38 = vor.u32 %v5600_v32, %v4561_v31  ;;  %v5498_v39 = vld [vmem:[#allocation2 + $0x254] sm:$0xf0]  ;;  %v3962_v44 = vor.u32 %v5450_v36, %v3961_v35  ;;  %v3937_v47 = vld [vmem:[#allocation2 + $0x90] sm:$0xf] }
  0x27   :  { %1901 = vmatpush.bf16.msra.mxu3 %v4586_v25  ;;  %v4345_v40 = vld [vmem:[#allocation2 + $0x3c0] sm:$0xf]  ;;  %v5546_v41 = vld [vmem:[#allocation2 + $0x3d4] sm:$0xf0]  ;;  %v4154_v45 = vor.u32 %v5498_v39, %v4153_v37  ;;  %v5444_v48 = vld [vmem:[#allocation2 + $0xa4] sm:$0xf0] }
  0x28   :  { %v4537_v42 = vld [vmem:[#allocation2 + $0x540] sm:$0xf]  ;;  %v5594_v43 = vld [vmem:[#allocation2 + $0x554] sm:$0xf0]  ;;  %1863 = vmatpush.bf16.msra.mxu0 %v3986_v29  ;;  %v4346_v46 = vor.u32 %v5546_v41, %v4345_v40  ;;  %v4129_v49 = vld [vmem:[#allocation2 + $0x210] sm:$0xf]  ;;  %v3938_v56 = vor.u32 %v5444_v48, %v3937_v47 }
  0x29   :  { %1876 = vmatpush.bf16.msra.mxu1 %v4178_v33  ;;  %v4538_v50 = vor.u32 %v5594_v43, %v4537_v42  ;;  %v5492_v51 = vld [vmem:[#allocation2 + $0x224] sm:$0xf0]  ;;  %v4321_v52 = vld [vmem:[#allocation2 + $0x390] sm:$0xf]  ;;  %v3913_v59 = vld [vmem:[#allocation2 + $0x60] sm:$0xf] }
  0x2a   :  { %1889 = vmatpush.bf16.msra.mxu2 %v4370_v34  ;;  %v5540_v53 = vld [vmem:[#allocation2 + $0x3a4] sm:$0xf0]  ;;  %v4513_v54 = vld [vmem:[#allocation2 + $0x510] sm:$0xf]  ;;  %v4130_v57 = vor.u32 %v5492_v51, %v4129_v49  ;;  %v5438_v60 = vld [vmem:[#allocation2 + $0x74] sm:$0xf0] }
  0x2b   :  { %1902 = vmatpush.bf16.msra.mxu3 %v4562_v38  ;;  %v5588_v55 = vld [vmem:[#allocation2 + $0x524] sm:$0xf0]  ;;  %v4322_v58 = vor.u32 %v5540_v53, %v4321_v52  ;;  %v4105_v61 = vld [vmem:[#allocation2 + $0x1e0] sm:$0xf]  ;;  %v5486_v63 = vld [vmem:[#allocation2 + $0x1f4] sm:$0xf0]  ;;  %v3914_v4 = vor.u32 %v5438_v60, %v3913_v59 }
  0x2c   :  { %1864 = vmatpush.bf16.msra.mxu0 %v3962_v44  ;;  %v4514_v62 = vor.u32 %v5588_v55, %v4513_v54  ;;  %v4297_v0 = vld [vmem:[#allocation2 + $0x360] sm:$0xf]  ;;  %v5534_v1 = vld [vmem:[#allocation2 + $0x374] sm:$0xf0]  ;;  %v4106_v5 = vor.u32 %v5486_v63, %v4105_v61  ;;  %v3889_v7 = vld [vmem:[#allocation2 + $0x30] sm:$0xf] }
  0x2d   :  { %1877 = vmatpush.bf16.msra.mxu1 %v4154_v45  ;;  %v4489_v2 = vld [vmem:[#allocation2 + $0x4e0] sm:$0xf]  ;;  %v5582_v3 = vld [vmem:[#allocation2 + $0x4f4] sm:$0xf0]  ;;  %v4298_v6 = vor.u32 %v5534_v1, %v4297_v0  ;;  %v5432_v8 = vld [vmem:[#allocation2 + $0x44] sm:$0xf0] }
  0x2e   :  { %1890 = vmatpush.bf16.msra.mxu2 %v4346_v46  ;;  %v4081_v9 = vld [vmem:[#allocation2 + $0x1b0] sm:$0xf]  ;;  %v4490_v10 = vor.u32 %v5582_v3, %v4489_v2  ;;  %v5480_v11 = vld [vmem:[#allocation2 + $0x1c4] sm:$0xf0]  ;;  %v3890_v16 = vor.u32 %v5432_v8, %v3889_v7  ;;  %v3865_v17 = vld [vmem:[#allocation2] sm:$0xf] }
  0x2f   :  { %1903 = vmatpush.bf16.msra.mxu3 %v4538_v50  ;;  %v4273_v12 = vld [vmem:[#allocation2 + $0x330] sm:$0xf]  ;;  %v5528_v13 = vld [vmem:[#allocation2 + $0x344] sm:$0xf0]  ;;  %v5426_v18 = vld [vmem:[#allocation2 + $0x14] sm:$0xf0]  ;;  %v4082_v19 = vor.u32 %v5480_v11, %v4081_v9 }
  0x30   :  { %1865 = vmatpush.bf16.msra.mxu0 %v3938_v56  ;;  %v4465_v14 = vld [vmem:[#allocation2 + $0x4b0] sm:$0xf]  ;;  %v5576_v15 = vld [vmem:[#allocation2 + $0x4c4] sm:$0xf0]  ;;  %v4274_v20 = vor.u32 %v5528_v13, %v4273_v12  ;;  %v4057_v21 = vld [vmem:[#allocation2 + $0x180] sm:$0xf]  ;;  %v3866_v31 = vor.u32 %v5426_v18, %v3865_v17 }
  0x31   :  { %1878 = vmatpush.bf16.msra.mxu1 %v4130_v57  ;;  %v5474_v22 = vld [vmem:[#allocation2 + $0x194] sm:$0xf0]  ;;  %v4249_v23 = vld [vmem:[#allocation2 + $0x300] sm:$0xf]  ;;  %v4466_v24 = vor.u32 %v5576_v15, %v4465_v14  ;;  %v4801_v28 = vld [vmem:[#allocation2 + $0x750] sm:$0xf] }
  0x32   :  { %1891 = vmatpush.bf16.msra.mxu2 %v4322_v58  ;;  %v5522_v25 = vld [vmem:[#allocation2 + $0x314] sm:$0xf0]  ;;  %v4441_v26 = vld [vmem:[#allocation2 + $0x480] sm:$0xf]  ;;  %v5660_v29 = vld [vmem:[#allocation2 + $0x764] sm:$0xf0]  ;;  %v4058_v35 = vor.u32 %v5474_v22, %v4057_v21 }
  0x33   :  { %1904 = vmatpush.bf16.msra.mxu3 %v4514_v62  ;;  %v5570_v27 = vld [vmem:[#allocation2 + $0x494] sm:$0xf0]  ;;  %v4993_v30 = vld [vmem:[#allocation2 + $0x8d0] sm:$0xf]  ;;  %v5708_v32 = vld [vmem:[#allocation2 + $0x8e4] sm:$0xf0]  ;;  %v4250_v36 = vor.u32 %v5522_v25, %v4249_v23  ;;  %v4802_v40 = vor.u32 %v5660_v29, %v4801_v28 }
  0x34   :  { %1866 = vmatpush.bf16.msra.mxu0 %v3914_v4  ;;  %v5465_v33 = vld [vmem:[#allocation2 + $0x154] sm:$0xf]  ;;  %v4035_v34 = vld [vmem:[#allocation2 + $0x168] sm:$0xf0]  ;;  %v4442_v39 = vor.u32 %v5570_v27, %v4441_v26  ;;  %v4994_v41 = vor.u32 %v5708_v32, %v4993_v30  ;;  %v4777_v43 = vld [vmem:[#allocation2 + $0x720] sm:$0xf] }
  0x35   :  { %1879 = vmatpush.bf16.msra.mxu1 %v4106_v5  ;;  %v5513_v37 = vld [vmem:[#allocation2 + $0x2d4] sm:$0xf]  ;;  %v4227_v38 = vld [vmem:[#allocation2 + $0x2e8] sm:$0xf0]  ;;  %v4038_v42 = vor.u32 %v5465_v33, %v4035_v34  ;;  %v5654_v44 = vld [vmem:[#allocation2 + $0x734] sm:$0xf0] }
  0x36   :  { %1892 = vmatpush.bf16.msra.mxu2 %v4298_v6  ;;  %v4969_v45 = vld [vmem:[#allocation2 + $0x8a0] sm:$0xf]  ;;  %v4230_v46 = vor.u32 %v5513_v37, %v4227_v38  ;;  %v5702_v47 = vld [vmem:[#allocation2 + $0x8b4] sm:$0xf0]  ;;  %v5459_v48 = vld [vmem:[#allocation2 + $0x124] sm:$0xf]  ;;  %v4778_v53 = vor.u32 %v5654_v44, %v4777_v43 }
  0x37   :  { %1905 = vmatpush.bf16.msra.mxu3 %v4490_v10  ;;  %v4011_v49 = vld [vmem:[#allocation2 + $0x138] sm:$0xf0]  ;;  %v5507_v50 = vld [vmem:[#allocation2 + $0x2a4] sm:$0xf]  ;;  %v4970_v54 = vor.u32 %v5702_v47, %v4969_v45  ;;  %v4753_v56 = vld [vmem:[#allocation2 + $0x6f0] sm:$0xf] }
  0x38   :  { %1867 = vmatpush.bf16.msra.mxu0 %v3890_v16  ;;  %v4203_v51 = vld [vmem:[#allocation2 + $0x2b8] sm:$0xf0]  ;;  %v4014_v55 = vor.u32 %v5459_v48, %v4011_v49  ;;  %v5648_v57 = vld [vmem:[#allocation2 + $0x704] sm:$0xf0]  ;;  %v4945_v58 = vld [vmem:[#allocation2 + $0x870] sm:$0xf] }
  0x39   :  { %1880 = vmatpush.bf16.msra.mxu1 %v4082_v19  ;;  %v118_v52 = vld [vmem:[%s6880_s0] sm:$0x3f]  ;;  %v4206_v59 = vor.u32 %v5507_v50, %v4203_v51  ;;  %v5696_v60 = vld [vmem:[#allocation2 + $0x884] sm:$0xf0]  ;;  %v5453_v61 = vld [vmem:[#allocation2 + $0xf4] sm:$0xf]  ;;  %v4754_v1 = vor.u32 %v5648_v57, %v4753_v56 }
  0x3a   :  { %1893 = vmatpush.bf16.msra.mxu2 %v4274_v20  ;;  %408 = vst [vmem:[#allocation1] ss:$9 sm:$0xff] %v118_v52  ;;  %v3987_v62 = vld [vmem:[#allocation2 + $0x108] sm:$0xf0]  ;;  %v5501_v63 = vld [vmem:[#allocation2 + $0x274] sm:$0xf]  ;;  %v4946_v3 = vor.u32 %v5696_v60, %v4945_v58 }
  0x3b   :  { %1906 = vmatpush.bf16.msra.mxu3 %v4466_v24  ;;  %v4179_v0 = vld [vmem:[#allocation2 + $0x288] sm:$0xf0]  ;;  %v4729_v2 = vld [vmem:[#allocation2 + $0x6c0] sm:$0xf]  ;;  %v3990_v4 = vor.u32 %v5453_v61, %v3987_v62  ;;  %v5642_v5 = vld [vmem:[#allocation2 + $0x6d4] sm:$0xf0] }
  0x3c   :  { %1868 = vmatpush.bf16.msra.mxu0 %v3866_v31  ;;  %v4921_v6 = vld [vmem:[#allocation2 + $0x840] sm:$0xf]  ;;  %v5690_v7 = vld [vmem:[#allocation2 + $0x854] sm:$0xf0]  ;;  %v4182_v8 = vor.u32 %v5501_v63, %v4179_v0  ;;  %v5447_v9 = vld [vmem:[#allocation2 + $0xc4] sm:$0xf]  ;;  %v4730_v15 = vor.u32 %v5642_v5, %v4729_v2 }
  0x3d   :  { %1881 = vmatpush.bf16.msra.mxu1 %v4058_v35  ;;  %v3963_v10 = vld [vmem:[#allocation2 + $0xd8] sm:$0xf0]  ;;  %v5495_v11 = vld [vmem:[#allocation2 + $0x244] sm:$0xf]  ;;  %v4922_v18 = vor.u32 %v5690_v7, %v4921_v6  ;;  %v4705_v20 = vld [vmem:[#allocation2 + $0x690] sm:$0xf] }
  0x3e   :  { %1894 = vmatpush.bf16.msra.mxu2 %v4250_v36  ;;  %v4155_v12 = vld [vmem:[#allocation2 + $0x258] sm:$0xf0]  ;;  %v3966_v19 = vor.u32 %v5447_v9, %v3963_v10  ;;  %v5636_v21 = vld [vmem:[#allocation2 + $0x6a4] sm:$0xf0]  ;;  %v4897_v22 = vld [vmem:[#allocation2 + $0x810] sm:$0xf] }
  0x3f   :  { %1907 = vmatpush.bf16.msra.mxu3 %v4442_v39  ;;  %v4158_v23 = vor.u32 %v5495_v11, %v4155_v12  ;;  %v5684_v24 = vld [vmem:[#allocation2 + $0x824] sm:$0xf0]  ;;  %v5441_v25 = vld [vmem:[#allocation2 + $0x94] sm:$0xf]  ;;  %v3939_v26 = vld [vmem:[#allocation2 + $0xa8] sm:$0xf0]  ;;  %v4706_v29 = vor.u32 %v5636_v21, %v4705_v20 }
  0x40   :  { %1913 = vmatpush.bf16.msrb.mxu0 %v4802_v40  ;;  %v5489_v27 = vld [vmem:[#allocation2 + $0x214] sm:$0xf]  ;;  %v4131_v28 = vld [vmem:[#allocation2 + $0x228] sm:$0xf0]  ;;  %v4898_v30 = vor.u32 %v5684_v24, %v4897_v22  ;;  %v3942_v31 = vor.u32 %v5441_v25, %v3939_v26  ;;  %v4681_v32 = vld [vmem:[#allocation2 + $0x660] sm:$0xf] }
  0x41   :  { %1926 = vmatpush.bf16.msrb.mxu1 %v4994_v41  ;;  %v6089_v13 = vld [vmem:[#allocation1] sm:$0xff]  ;;  %v6091_v14 = vld [vmem:[#allocation1 + $0x9] sm:$0xff]  ;;  %v6094_v16 = vld [vmem:[#allocation1 + $0x12] sm:$0xff]  ;;  %v4134_v35 = vor.u32 %v5489_v27, %v4131_v28  ;;  %vm2329_vm0 = vcmask 1041408   ;;  %vm2799_vm2 = vcmask 1043456   ;;  %vm2795_vm6 = vcmask 97280  }
  0x42   :  { %1939 = vmatpush.bf16.msrb.mxu2 %v4038_v42  ;;  %1882 = vmatmul.bf16.vlgmr.msra.gmra.mxu1 %v6091_v14  ;;  %v6096_v17 = vld [vmem:[#allocation1 + $0x1b] sm:$0xff]  ;;  %v4873_v34 = vld [vmem:[#allocation2 + $0x7e0] sm:$0xf]  ;;  %v5435_v37 = vld [vmem:[#allocation2 + $0x64] sm:$0xf]  ;;  %s3850_s10 = sshll.u32 %s6888_s8, 4  ;;  %s3851_s10 = int_to_ptr.hbm [resolvable:$true] %s3850_s10 }
  0x43   :  { %1952 = vmatpush.bf16.msrb.mxu3 %v4230_v46  ;;  %1869 = vmatmul.bf16.vlgmr.msra.gmra.mxu0 %v6089_v13  ;;  %v5630_v33 = vld [vmem:[#allocation2 + $0x674] sm:$0xf0]  ;;  %v3915_v38 = vld [vmem:[#allocation2 + $0x78] sm:$0xf0]  ;;  %v5483_v39 = vld [vmem:[#allocation2 + $0x1e4] sm:$0xf] }
  0x44   :  { %1914 = vmatpush.bf16.msrb.mxu0 %v4778_v53  ;;  %1895 = vmatmul.bf16.vlgmr.msra.gmra.mxu2 %v6094_v16  ;;  %v5678_v36 = vld [vmem:[#allocation2 + $0x7f4] sm:$0xf0]  ;;  %v4107_v40 = vld [vmem:[#allocation2 + $0x1f8] sm:$0xf0]  ;;  %v4682_v41 = vor.u32 %v5630_v33, %v4681_v32  ;;  %v3918_v43 = vor.u32 %v5435_v37, %v3915_v38  ;;  %v4657_v44 = vld [vmem:[#allocation2 + $0x630] sm:$0xf] }
  0x45   :  { %1927 = vmatpush.bf16.msrb.mxu1 %v4970_v54  ;;  %1908 = vmatmul.bf16.vlgmr.msra.gmra.mxu3 %v6096_v17  ;;  %v4874_v42 = vor.u32 %v5678_v36, %v4873_v34  ;;  %v5624_v45 = vld [vmem:[#allocation2 + $0x644] sm:$0xf0]  ;;  %v4849_v46 = vld [vmem:[#allocation2 + $0x7b0] sm:$0xf]  ;;  %v4110_v47 = vor.u32 %v5483_v39, %v4107_v40  ;;  %v5429_v49 = vld [vmem:[#allocation2 + $0x34] sm:$0xf] }
  0x46   :  { %1940 = vmatpush.bf16.msrb.mxu2 %v4014_v55  ;;  %v5672_v48 = vld [vmem:[#allocation2 + $0x7c4] sm:$0xf0]  ;;  %v3891_v50 = vld [vmem:[#allocation2 + $0x48] sm:$0xf0]  ;;  %v5477_v51 = vld [vmem:[#allocation2 + $0x1b4] sm:$0xf]  ;;  %v4658_v53 = vor.u32 %v5624_v45, %v4657_v44 }
  0x47   :  { %1953 = vmatpush.bf16.msrb.mxu3 %v4206_v59  ;;  %v4083_v52 = vld [vmem:[#allocation2 + $0x1c8] sm:$0xf0]  ;;  %v4633_v54 = vld [vmem:[#allocation2 + $0x600] sm:$0xf]  ;;  %v5618_v55 = vld [vmem:[#allocation2 + $0x614] sm:$0xf0]  ;;  %v4850_v56 = vor.u32 %v5672_v48, %v4849_v46  ;;  %v3894_v57 = vor.u32 %v5429_v49, %v3891_v50 }
  0x48   :  { %1915 = vmatpush.bf16.msrb.mxu0 %v4754_v1  ;;  %v4825_v58 = vld [vmem:[#allocation2 + $0x780] sm:$0xf]  ;;  %v5666_v59 = vld [vmem:[#allocation2 + $0x794] sm:$0xf0]  ;;  %v5423_v60 = vld [vmem:[#allocation2 + $0x4] sm:$0xf]  ;;  %v4086_v61 = vor.u32 %v5477_v51, %v4083_v52 }
  0x49   :  { %1928 = vmatpush.bf16.msrb.mxu1 %v4946_v3  ;;  %v3867_v62 = vld [vmem:[#allocation2 + $0x18] sm:$0xf0]  ;;  %v5471_v63 = vld [vmem:[#allocation2 + $0x184] sm:$0xf]  ;;  %v5561_v1 = vld [vmem:[#allocation2 + $0x454] sm:$0xf] }
  0x4a   :  { %1941 = vmatpush.bf16.msrb.mxu2 %v3990_v4  ;;  %v4059_v0 = vld [vmem:[#allocation2 + $0x198] sm:$0xf0]  ;;  %v4419_v2 = vld [vmem:[#allocation2 + $0x468] sm:$0xf0]  ;;  %v5609_v3 = vld [vmem:[#allocation2 + $0x5d4] sm:$0xf]  ;;  %v4634_v4 = vor.u32 %v5618_v55, %v4633_v54  ;;  %v3870_v9 = vor.u32 %v5423_v60, %v3867_v62 }
  0x4b   :  { %1954 = vmatpush.bf16.msrb.mxu3 %v4182_v8  ;;  %v4611_v5 = vld [vmem:[#allocation2 + $0x5e8] sm:$0xf0]  ;;  %v5657_v6 = vld [vmem:[#allocation2 + $0x754] sm:$0xf]  ;;  %v4826_v8 = vor.u32 %v5666_v59, %v4825_v58  ;;  %v4062_v12 = vor.u32 %v5471_v63, %v4059_v0  ;;  %v5555_v20 = vld [vmem:[#allocation2 + $0x424] sm:$0xf] }
  0x4c   :  { %1916 = vmatpush.bf16.msrb.mxu0 %v4730_v15  ;;  %v4803_v7 = vld [vmem:[#allocation2 + $0x768] sm:$0xf0]  ;;  %v5705_v10 = vld [vmem:[#allocation2 + $0x8d4] sm:$0xf]  ;;  %v4422_v15 = vor.u32 %v5561_v1, %v4419_v2  ;;  %v4395_v21 = vld [vmem:[#allocation2 + $0x438] sm:$0xf0] }
  0x4d   :  { %1929 = vmatpush.bf16.msrb.mxu1 %v4922_v18  ;;  %v4995_v11 = vld [vmem:[#allocation2 + $0x8e8] sm:$0xf0]  ;;  %v4614_v18 = vor.u32 %v5609_v3, %v4611_v5  ;;  %v5603_v22 = vld [vmem:[#allocation2 + $0x5a4] sm:$0xf]  ;;  %v4587_v24 = vld [vmem:[#allocation2 + $0x5b8] sm:$0xf0] }
  0x4e   :  { %1942 = vmatpush.bf16.msrb.mxu2 %v3966_v19  ;;  %v4806_v19 = vor.u32 %v5657_v6, %v4803_v7  ;;  %v5651_v25 = vld [vmem:[#allocation2 + $0x724] sm:$0xf]  ;;  %v4779_v26 = vld [vmem:[#allocation2 + $0x738] sm:$0xf0]  ;;  %v4590_v32 = vor.u32 %v5603_v22, %v4587_v24  ;;  %v5549_v34 = vld [vmem:[#allocation2 + $0x3f4] sm:$0xf] }
  0x4f   :  { %1955 = vmatpush.bf16.msrb.mxu3 %v4158_v23  ;;  %v4998_v23 = vor.u32 %v5705_v10, %v4995_v11  ;;  %v6101_v27 = vld [vmem:[#allocation1 + $0x24] sm:$0xff]  ;;  %v5699_v28 = vld [vmem:[#allocation2 + $0x8a4] sm:$0xf]  ;;  %v4782_v33 = vor.u32 %v5651_v25, %v4779_v26  ;;  %v5597_v36 = vld [vmem:[#allocation2 + $0x574] sm:$0xf] }
  0x50   :  { %1917 = vmatpush.bf16.msrb.mxu0 %v4706_v29  ;;  %v4971_v29 = vld [vmem:[#allocation2 + $0x8b8] sm:$0xf0]  ;;  %v4563_v38 = vld [vmem:[#allocation2 + $0x588] sm:$0xf0]  ;;  %v5645_v39 = vld [vmem:[#allocation2 + $0x6f4] sm:$0xf] }
  0x51   :  { %1930 = vmatpush.bf16.msrb.mxu1 %v4898_v30  ;;  %v6103_v30 = vld [vmem:[#allocation1 + $0x2d] sm:$0xff]  ;;  %v4974_v37 = vor.u32 %v5699_v28, %v4971_v29  ;;  %v4566_v44 = vor.u32 %v5597_v36, %v4563_v38  ;;  %v4539_v50 = vld [vmem:[#allocation2 + $0x558] sm:$0xf0]  ;;  %v5537_v58 = vld [vmem:[#allocation2 + $0x394] sm:$0xf] }
  0x52   :  { %1943 = vmatpush.bf16.msrb.mxu2 %v3942_v31  ;;  %v4398_v31 = vor.u32 %v5555_v20, %v4395_v21  ;;  %v4755_v40 = vld [vmem:[#allocation2 + $0x708] sm:$0xf0]  ;;  %v5543_v46 = vld [vmem:[#allocation2 + $0x3c4] sm:$0xf]  ;;  %v4731_v52 = vld [vmem:[#allocation2 + $0x6d8] sm:$0xf0] }
  0x53   :  { %1956 = vmatpush.bf16.msrb.mxu3 %v4134_v35  ;;  %v4371_v35 = vld [vmem:[#allocation2 + $0x408] sm:$0xf0]  ;;  %v4758_v45 = vor.u32 %v5645_v39, %v4755_v40  ;;  %v5591_v48 = vld [vmem:[#allocation2 + $0x544] sm:$0xf]  ;;  %v4923_v54 = vld [vmem:[#allocation2 + $0x858] sm:$0xf0] }
  0x54   :  { %1918 = vmatpush.bf16.msrb.mxu0 %v4682_v41  ;;  %v5693_v41 = vld [vmem:[#allocation2 + $0x874] sm:$0xf]  ;;  %v5639_v51 = vld [vmem:[#allocation2 + $0x6c4] sm:$0xf]  ;;  %v4323_v59 = vld [vmem:[#allocation2 + $0x3a8] sm:$0xf0] }
  0x55   :  { %1931 = vmatpush.bf16.msrb.mxu1 %v4874_v42  ;;  %v4947_v42 = vld [vmem:[#allocation2 + $0x888] sm:$0xf0]  ;;  %v5585_v60 = vld [vmem:[#allocation2 + $0x514] sm:$0xf]  ;;  %v4326_v3 = vor.u32 %v5537_v58, %v4323_v59  ;;  %v5531_v6 = vld [vmem:[#allocation2 + $0x364] sm:$0xf] }
  0x56   :  { %1944 = vmatpush.bf16.msrb.mxu2 %v3918_v43  ;;  %v4374_v43 = vor.u32 %v5549_v34, %v4371_v35  ;;  %v4950_v49 = vor.u32 %v5693_v41, %v4947_v42  ;;  %v4515_v62 = vld [vmem:[#allocation2 + $0x528] sm:$0xf0]  ;;  %v5633_v63 = vld [vmem:[#allocation2 + $0x694] sm:$0xf]  ;;  %v4299_v7 = vld [vmem:[#allocation2 + $0x378] sm:$0xf0] }
  0x57   :  { %1957 = vmatpush.bf16.msrb.mxu3 %v4110_v47  ;;  %v4347_v47 = vld [vmem:[#allocation2 + $0x3d8] sm:$0xf0]  ;;  %v4707_v0 = vld [vmem:[#allocation2 + $0x6a8] sm:$0xf0]  ;;  %v5681_v1 = vld [vmem:[#allocation2 + $0x814] sm:$0xf] }
  0x58   :  { %1919 = vmatpush.bf16.msrb.mxu0 %v4658_v53  ;;  %v5687_v53 = vld [vmem:[#allocation2 + $0x844] sm:$0xf]  ;;  %v4350_v55 = vor.u32 %v5543_v46, %v4347_v47  ;;  %v4899_v2 = vld [vmem:[#allocation2 + $0x828] sm:$0xf0]  ;;  %v4710_v5 = vor.u32 %v5633_v63, %v4707_v0  ;;  %v4491_v10 = vld [vmem:[#allocation2 + $0x4f8] sm:$0xf0] }
  0x59   :  { %1932 = vmatpush.bf16.msrb.mxu1 %v4850_v56  ;;  %v4542_v56 = vor.u32 %v5591_v48, %v4539_v50  ;;  %v5627_v11 = vld [vmem:[#allocation2 + $0x664] sm:$0xf]  ;;  %v5525_v22 = vld [vmem:[#allocation2 + $0x334] sm:$0xf]  ;;  %v4467_v26 = vld [vmem:[#allocation2 + $0x4c8] sm:$0xf0] }
  0x5a   :  { %1945 = vmatpush.bf16.msrb.mxu2 %v3894_v57  ;;  %v4734_v57 = vor.u32 %v5639_v51, %v4731_v52  ;;  %v5573_v24 = vld [vmem:[#allocation2 + $0x4b4] sm:$0xf]  ;;  %v4659_v29 = vld [vmem:[#allocation2 + $0x648] sm:$0xf0]  ;;  %v5519_v34 = vld [vmem:[#allocation2 + $0x304] sm:$0xf] }
  0x5b   :  { %1958 = vmatpush.bf16.msrb.mxu3 %v4086_v61  ;;  %v4926_v61 = vor.u32 %v5687_v53, %v4923_v54  ;;  %v5621_v28 = vld [vmem:[#allocation2 + $0x634] sm:$0xf]  ;;  %v4251_v35 = vld [vmem:[#allocation2 + $0x318] sm:$0xf0]  ;;  %v4470_v36 = vor.u32 %v5573_v24, %v4467_v26  ;;  %v5567_v38 = vld [vmem:[#allocation2 + $0x484] sm:$0xf] }
  0x5c   :  { %1920 = vmatpush.bf16.msrb.mxu0 %v4634_v4  ;;  %v4518_v4 = vor.u32 %v5585_v60, %v4515_v62  ;;  %v4443_v39 = vld [vmem:[#allocation2 + $0x498] sm:$0xf0]  ;;  %v5615_v40 = vld [vmem:[#allocation2 + $0x604] sm:$0xf]  ;;  %v5469_v46 = vld [vmem:[#allocation2 + $0x16c] sm:$0xf0]  ;;  %v4254_v48 = vor.u32 %v5519_v34, %v4251_v35 }
  0x5d   :  { %1933 = vmatpush.bf16.msrb.mxu1 %v4826_v8  ;;  %v5579_v8 = vld [vmem:[#allocation2 + $0x4e4] sm:$0xf]  ;;  %v4635_v42 = vld [vmem:[#allocation2 + $0x618] sm:$0xf0]  ;;  %v4233_v47 = vld [vmem:[#allocation2 + $0x2d8] sm:$0xf]  ;;  %v4446_v52 = vor.u32 %v5567_v38, %v4443_v39 }
  0x5e   :  { %1946 = vmatpush.bf16.msrb.mxu2 %v3870_v9  ;;  %v4902_v9 = vor.u32 %v5681_v1, %v4899_v2  ;;  %v4494_v20 = vor.u32 %v5579_v8, %v4491_v10  ;;  %v4425_v50 = vld [vmem:[#allocation2 + $0x458] sm:$0xf]  ;;  %v5565_v51 = vld [vmem:[#allocation2 + $0x46c] sm:$0xf0]  ;;  %v4638_v53 = vor.u32 %v5615_v40, %v4635_v42  ;;  %v4017_v60 = vld [vmem:[#allocation2 + $0x128] sm:$0xf] }
  0x5f   :  { %1959 = vmatpush.bf16.msrb.mxu3 %v4062_v12  ;;  %1921 = vmatmul.bf16.vlgmr.msrb.gmra.mxu0 %v6101_v27  ;;  %v4683_v12 = vld [vmem:[#allocation2 + $0x678] sm:$0xf0]  ;;  %v4617_v54 = vld [vmem:[#allocation2 + $0x5d8] sm:$0xf]  ;;  %v4426_v59 = vor.u32 %v5565_v51, %v4425_v50  ;;  %v4209_v62 = vld [vmem:[#allocation2 + $0x2a8] sm:$0xf] }
  0x60   :  { %1965 = vmatpush.bf16.msra.mxu0 %v4422_v15  ;;  %1934 = vmatmul.bf16.vlgmr.msrb.gmra.mxu1 %v6103_v30  ;;  %v5675_v15 = vld [vmem:[#allocation2 + $0x7e4] sm:$0xf]  ;;  %v4686_v21 = vor.u32 %v5627_v11, %v4683_v12  ;;  %v5511_v0 = vld [vmem:[#allocation2 + $0x2bc] sm:$0xf0]  ;;  %v4401_v1 = vld [vmem:[#allocation2 + $0x428] sm:$0xf] }
  0x61   :  { %1978 = vmatpush.bf16.msra.mxu1 %v4614_v18  ;;  %1947 = vmatmul.bf16.vlgmr.msrb.gmra.mxu2 %v6089_v13  ;;  %v4875_v18 = vld [vmem:[#allocation2 + $0x7f8] sm:$0xf0]  ;;  %v5559_v2 = vld [vmem:[#allocation2 + $0x43c] sm:$0xf0]  ;;  %v3993_v8 = vld [vmem:[#allocation2 + $0xf8] sm:$0xf] }
  0x62   :  { %1991 = vmatpush.bf16.msra.mxu2 %v4806_v19  ;;  %1960 = vmatmul.bf16.vlgmr.msrb.gmra.mxu3 %v6091_v14  ;;  %v4302_v19 = vor.u32 %v5531_v6, %v4299_v7  ;;  %v4878_v25 = vor.u32 %v5675_v15, %v4875_v18  ;;  %v4210_v6 = vor.u32 %v5511_v0, %v4209_v62  ;;  %v4185_v10 = vld [vmem:[#allocation2 + $0x278] sm:$0xf]  ;;  %v5505_v12 = vld [vmem:[#allocation2 + $0x28c] sm:$0xf0]  ;;  %v3969_v24 = vld [vmem:[#allocation2 + $0xc8] sm:$0xf] }
  0x63   :  { %2004 = vmatpush.bf16.msra.mxu3 %v4998_v23  ;;  %v4275_v23 = vld [vmem:[#allocation2 + $0x348] sm:$0xf0]  ;;  %v4402_v7 = vor.u32 %v5559_v2, %v4401_v1  ;;  %v4377_v15 = vld [vmem:[#allocation2 + $0x3f8] sm:$0xf]  ;;  %v5553_v18 = vld [vmem:[#allocation2 + $0x40c] sm:$0xf0] }
  0x64   :  { %1966 = vmatpush.bf16.msra.mxu0 %v4398_v31  ;;  %v5669_v31 = vld [vmem:[#allocation2 + $0x7b4] sm:$0xf]  ;;  %v4161_v26 = vld [vmem:[#allocation2 + $0x248] sm:$0xf]  ;;  %v5595_v34 = vld [vmem:[#allocation2 + $0x55c] sm:$0xf0] }
  0x65   :  { %1979 = vmatpush.bf16.msra.mxu1 %v4590_v32  ;;  %v4851_v32 = vld [vmem:[#allocation2 + $0x7c8] sm:$0xf0]  ;;  %v3945_v38 = vld [vmem:[#allocation2 + $0x98] sm:$0xf]  ;;  %v5445_v39 = vld [vmem:[#allocation2 + $0xac] sm:$0xf0] }
  0x66   :  { %1992 = vmatpush.bf16.msra.mxu2 %v4782_v33  ;;  %v4278_v33 = vor.u32 %v5525_v22, %v4275_v23  ;;  %v4854_v41 = vor.u32 %v5669_v31, %v4851_v32  ;;  %v4186_v22 = vor.u32 %v5505_v12, %v4185_v10  ;;  %v4378_v23 = vor.u32 %v5553_v18, %v4377_v15  ;;  %v4353_v31 = vld [vmem:[#allocation2 + $0x3c8] sm:$0xf]  ;;  %v5547_v32 = vld [vmem:[#allocation2 + $0x3dc] sm:$0xf0]  ;;  %v4137_v40 = vld [vmem:[#allocation2 + $0x218] sm:$0xf] }
  0x67   :  { %2005 = vmatpush.bf16.msra.mxu3 %v4974_v37  ;;  %v4662_v37 = vor.u32 %v5621_v28, %v4659_v29  ;;  %v5499_v29 = vld [vmem:[#allocation2 + $0x25c] sm:$0xf0]  ;;  %v5493_v42 = vld [vmem:[#allocation2 + $0x22c] sm:$0xf0]  ;;  %v3921_v50 = vld [vmem:[#allocation2 + $0x68] sm:$0xf] }
  0x68   :  { %1967 = vmatpush.bf16.msra.mxu0 %v4374_v43  ;;  %v5663_v43 = vld [vmem:[#allocation2 + $0x784] sm:$0xf]  ;;  %v5439_v51 = vld [vmem:[#allocation2 + $0x7c] sm:$0xf0]  ;;  %v3897_v62 = vld [vmem:[#allocation2 + $0x38] sm:$0xf] }
  0x69   :  { %1980 = vmatpush.bf16.msra.mxu1 %v4566_v44  ;;  %v4827_v44 = vld [vmem:[#allocation2 + $0x798] sm:$0xf0]  ;;  %v4089_v0 = vld [vmem:[#allocation2 + $0x1b8] sm:$0xf]  ;;  %v5481_v2 = vld [vmem:[#allocation2 + $0x1cc] sm:$0xf0] }
  0x6a   :  { %1993 = vmatpush.bf16.msra.mxu2 %v4758_v45  ;;  %v4041_v45 = vld [vmem:[#allocation2 + $0x158] sm:$0xf]  ;;  %v4090_v10 = vor.u32 %v5481_v2, %v4089_v0  ;;  %v4065_v12 = vld [vmem:[#allocation2 + $0x188] sm:$0xf]  ;;  %v5475_v15 = vld [vmem:[#allocation2 + $0x19c] sm:$0xf0] }
  0x6b   :  { %2006 = vmatpush.bf16.msra.mxu3 %v4950_v49  ;;  %v5517_v49 = vld [vmem:[#allocation2 + $0x2ec] sm:$0xf0]  ;;  %v4257_v18 = vld [vmem:[#allocation2 + $0x308] sm:$0xf] }
  0x6c   :  { %1968 = vmatpush.bf16.msra.mxu0 %v4350_v55  ;;  %v5613_v55 = vld [vmem:[#allocation2 + $0x5ec] sm:$0xf0]  ;;  %v4234_v58 = vor.u32 %v5517_v49, %v4233_v47  ;;  %v3946_v47 = vor.u32 %v5445_v39, %v3945_v38  ;;  %v4737_v0 = vld [vmem:[#allocation2 + $0x6c8] sm:$0xf] }
  0x6d   :  { %1981 = vmatpush.bf16.msra.mxu1 %v4542_v56  ;;  %v4830_v56 = vor.u32 %v5663_v43, %v4827_v44  ;;  %v4618_v63 = vor.u32 %v5613_v55, %v4617_v54  ;;  %v4329_v43 = vld [vmem:[#allocation2 + $0x398] sm:$0xf]  ;;  %v5541_v44 = vld [vmem:[#allocation2 + $0x3ac] sm:$0xf0]  ;;  %v5487_v54 = vld [vmem:[#allocation2 + $0x1fc] sm:$0xf0] }
  0x6e   :  { %1994 = vmatpush.bf16.msra.mxu2 %v4734_v57  ;;  %v4042_v57 = vor.u32 %v5469_v46, %v4041_v45  ;;  %v4521_v45 = vld [vmem:[#allocation2 + $0x518] sm:$0xf]  ;;  %v5589_v46 = vld [vmem:[#allocation2 + $0x52c] sm:$0xf0]  ;;  %v4330_v49 = vor.u32 %v5541_v44, %v4329_v43  ;;  %v4305_v55 = vld [vmem:[#allocation2 + $0x368] sm:$0xf] }
  0x6f   :  { %2007 = vmatpush.bf16.msra.mxu3 %v4926_v61  ;;  %v5463_v61 = vld [vmem:[#allocation2 + $0x13c] sm:$0xf0]  ;;  %v4929_v2 = vld [vmem:[#allocation2 + $0x848] sm:$0xf] }
  0x70   :  { %1969 = vmatpush.bf16.msra.mxu0 %v4326_v3  ;;  %v4593_v3 = vld [vmem:[#allocation2 + $0x5a8] sm:$0xf]  ;;  %v5703_v44 = vld [vmem:[#allocation2 + $0x8bc] sm:$0xf0] }
  0x71   :  { %1982 = vmatpush.bf16.msra.mxu1 %v4518_v4  ;;  %v5607_v4 = vld [vmem:[#allocation2 + $0x5bc] sm:$0xf0] }
  0x72   :  { %1995 = vmatpush.bf16.msra.mxu2 %v4710_v5  ;;  %v4018_v5 = vor.u32 %v5463_v61, %v4017_v60  ;;  %v4594_v11 = vor.u32 %v5607_v4, %v4593_v3  ;;  %v4281_v3 = vld [vmem:[#allocation2 + $0x338] sm:$0xf]  ;;  %v5529_v4 = vld [vmem:[#allocation2 + $0x34c] sm:$0xf0] }
  0x73   :  { %2008 = vmatpush.bf16.msra.mxu3 %v4902_v9  ;;  %v5457_v9 = vld [vmem:[#allocation2 + $0x10c] sm:$0xf0] }
  0x74   :  { %1970 = vmatpush.bf16.msra.mxu0 %v4302_v19  ;;  %v4569_v19 = vld [vmem:[#allocation2 + $0x578] sm:$0xf] }
  0x75   :  { %1983 = vmatpush.bf16.msra.mxu1 %v4494_v20  ;;  %v5601_v20 = vld [vmem:[#allocation2 + $0x58c] sm:$0xf0] }
  0x76   :  { %1996 = vmatpush.bf16.msra.mxu2 %v4686_v21  ;;  %v3994_v21 = vor.u32 %v5457_v9, %v3993_v8  ;;  %v4570_v28 = vor.u32 %v5601_v20, %v4569_v19  ;;  %v3873_v8 = vld [vmem:[#allocation2 + $0x8] sm:$0xf]  ;;  %v5427_v9 = vld [vmem:[#allocation2 + $0x1c] sm:$0xf0] }
  0x77   :  { %2009 = vmatpush.bf16.msra.mxu3 %v4878_v25  ;;  %v5451_v25 = vld [vmem:[#allocation2 + $0xdc] sm:$0xf0] }
  0x78   :  { %1971 = vmatpush.bf16.msra.mxu0 %v4278_v33  ;;  %v4545_v33 = vld [vmem:[#allocation2 + $0x548] sm:$0xf]  ;;  %v3970_v35 = vor.u32 %v5451_v25, %v3969_v24  ;;  %v5523_v20 = vld [vmem:[#allocation2 + $0x31c] sm:$0xf0]  ;;  %v5661_v24 = vld [vmem:[#allocation2 + $0x76c] sm:$0xf0] }
  0x79   :  { %1984 = vmatpush.bf16.msra.mxu1 %v4470_v36  ;;  %v4162_v36 = vor.u32 %v5499_v29, %v4161_v26  ;;  %v5001_v25 = vld [vmem:[#allocation2 + $0x8d8] sm:$0xf]  ;;  %v3874_v26 = vor.u32 %v5427_v9, %v3873_v8  ;;  %v5466_v29 = vld [vmem:[#allocation2 + $0x15c] sm:$0xf]  ;;  %v5637_v9 = vld [vmem:[#allocation2 + $0x6ac] sm:$0xf0] }
  0x7a   :  { %1997 = vmatpush.bf16.msra.mxu2 %v4662_v37  ;;  %v4354_v37 = vor.u32 %v5547_v32, %v4353_v31  ;;  %v4043_v31 = vld [vmem:[#allocation2 + $0x170] sm:$0xf0]  ;;  %v4066_v32 = vor.u32 %v5475_v15, %v4065_v12  ;;  %v4713_v8 = vld [vmem:[#allocation2 + $0x698] sm:$0xf]  ;;  %v5685_v12 = vld [vmem:[#allocation2 + $0x82c] sm:$0xf0] }
  0x7b   :  { %2010 = vmatpush.bf16.msra.mxu3 %v4854_v41  ;;  %v4546_v41 = vor.u32 %v5595_v34, %v4545_v33  ;;  %v4258_v33 = vor.u32 %v5523_v20, %v4257_v18  ;;  %v5514_v34 = vld [vmem:[#allocation2 + $0x2dc] sm:$0xf]  ;;  %v4046_v39 = vor.u32 %v5466_v29, %v4043_v31  ;;  %v3947_v18 = vld [vmem:[#allocation2 + $0xb0] sm:$0xf0]  ;;  %v5679_v29 = vld [vmem:[#allocation2 + $0x7fc] sm:$0xf0] }
  0x7c   :  { %1972 = vmatpush.bf16.msra.mxu0 %v4254_v48  ;;  %v4138_v48 = vor.u32 %v5493_v42, %v4137_v40  ;;  %v4785_v40 = vld [vmem:[#allocation2 + $0x728] sm:$0xf]  ;;  %v5442_v15 = vld [vmem:[#allocation2 + $0x9c] sm:$0xf]  ;;  %v4139_v20 = vld [vmem:[#allocation2 + $0x230] sm:$0xf0] }
  0x7d   :  { %1985 = vmatpush.bf16.msra.mxu1 %v4446_v52  ;;  %v4113_v52 = vld [vmem:[#allocation2 + $0x1e8] sm:$0xf]  ;;  %v5436_v31 = vld [vmem:[#allocation2 + $0x6c] sm:$0xf] }
  0x7e   :  { %1998 = vmatpush.bf16.msra.mxu2 %v4638_v53  ;;  %v4522_v53 = vor.u32 %v5589_v46, %v4521_v45  ;;  %v4114_v60 = vor.u32 %v5487_v54, %v4113_v52  ;;  %v4977_v42 = vld [vmem:[#allocation2 + $0x8a8] sm:$0xf]  ;;  %v5460_v45 = vld [vmem:[#allocation2 + $0x12c] sm:$0xf]  ;;  %v4019_v46 = vld [vmem:[#allocation2 + $0x140] sm:$0xf0] }
  0x7f   :  { %2011 = vmatpush.bf16.msra.mxu3 %v4830_v56  ;;  %1973 = vmatmul.bf16.vlgmr.msra.gmra.mxu0 %v6094_v16  ;;  %v5535_v56 = vld [vmem:[#allocation2 + $0x37c] sm:$0xf0]  ;;  %v4761_v52 = vld [vmem:[#allocation2 + $0x6f8] sm:$0xf] }
  0x80   :  { %2017 = vmatpush.bf16.msrb.mxu0 %v4042_v57  ;;  %1986 = vmatmul.bf16.vlgmr.msra.gmra.mxu1 %v6096_v17  ;;  %v4497_v57 = vld [vmem:[#allocation2 + $0x4e8] sm:$0xf]  ;;  %v4306_v61 = vor.u32 %v5535_v56, %v4305_v55  ;;  %v4953_v54 = vld [vmem:[#allocation2 + $0x878] sm:$0xf]  ;;  %v5697_v56 = vld [vmem:[#allocation2 + $0x88c] sm:$0xf0] }
  0x81   :  { %2030 = vmatpush.bf16.msrb.mxu1 %v4234_v58  ;;  %1999 = vmatmul.bf16.vlgmr.msra.gmra.mxu2 %v6101_v27  ;;  %v5583_v58 = vld [vmem:[#allocation2 + $0x4fc] sm:$0xf0] }
  0x82   :  { %2043 = vmatpush.bf16.msrb.mxu2 %v4426_v59  ;;  %2012 = vmatmul.bf16.vlgmr.msra.gmra.mxu3 %v6103_v30  ;;  %v3922_v59 = vor.u32 %v5439_v51, %v3921_v50  ;;  %v4498_v1 = vor.u32 %v5583_v58, %v4497_v57  ;;  %v4978_v50 = vor.u32 %v5703_v44, %v4977_v42  ;;  %v5454_v57 = vld [vmem:[#allocation2 + $0xfc] sm:$0xf]  ;;  %v3995_v58 = vld [vmem:[#allocation2 + $0x110] sm:$0xf0]  ;;  %v5673_v42 = vld [vmem:[#allocation2 + $0x7cc] sm:$0xf0] }
  0x83   :  { %2056 = vmatpush.bf16.msrb.mxu3 %v4618_v63  ;;  %v5433_v63 = vld [vmem:[#allocation2 + $0x4c] sm:$0xf0]  ;;  %v4022_v51 = vor.u32 %v5460_v45, %v4019_v46  ;;  %v3899_v44 = vld [vmem:[#allocation2 + $0x50] sm:$0xf0]  ;;  %v5478_v45 = vld [vmem:[#allocation2 + $0x1bc] sm:$0xf] }
  0x84   :  { %2018 = vmatpush.bf16.msrb.mxu0 %v4018_v5  ;;  %v4473_v5 = vld [vmem:[#allocation2 + $0x4b8] sm:$0xf]  ;;  %v4091_v46 = vld [vmem:[#allocation2 + $0x1d0] sm:$0xf0] }
  0x85   :  { %2031 = vmatpush.bf16.msrb.mxu1 %v4210_v6  ;;  %v5577_v6 = vld [vmem:[#allocation2 + $0x4cc] sm:$0xf0] }
  0x86   :  { %2044 = vmatpush.bf16.msrb.mxu2 %v4402_v7  ;;  %v3898_v7 = vor.u32 %v5433_v63, %v3897_v62  ;;  %v4474_v19 = vor.u32 %v5577_v6, %v4473_v5  ;;  %v4954_v62 = vor.u32 %v5697_v56, %v4953_v54  ;;  %v3998_v63 = vor.u32 %v5454_v57, %v3995_v58  ;;  %v3971_v5 = vld [vmem:[#allocation2 + $0xe0] sm:$0xf0]  ;;  %v5496_v6 = vld [vmem:[#allocation2 + $0x24c] sm:$0xf] }
  0x87   :  { %2057 = vmatpush.bf16.msrb.mxu3 %v4594_v11  ;;  %v4282_v11 = vor.u32 %v5529_v4, %v4281_v3  ;;  %v5448_v4 = vld [vmem:[#allocation2 + $0xcc] sm:$0xf]  ;;  %v3875_v56 = vld [vmem:[#allocation2 + $0x20] sm:$0xf0] }
  0x88   :  { %2019 = vmatpush.bf16.msrb.mxu0 %v3994_v21  ;;  %v4449_v21 = vld [vmem:[#allocation2 + $0x488] sm:$0xf]  ;;  %v5424_v54 = vld [vmem:[#allocation2 + $0xc] sm:$0xf]  ;;  %v4067_v58 = vld [vmem:[#allocation2 + $0x1a0] sm:$0xf0] }
  0x89   :  { %2032 = vmatpush.bf16.msrb.mxu1 %v4186_v22  ;;  %v5571_v22 = vld [vmem:[#allocation2 + $0x49c] sm:$0xf0]  ;;  %v5472_v57 = vld [vmem:[#allocation2 + $0x18c] sm:$0xf] }
  0x8a   :  { %2045 = vmatpush.bf16.msrb.mxu2 %v4378_v23  ;;  %v4809_v23 = vld [vmem:[#allocation2 + $0x758] sm:$0xf] }
  0x8b   :  { %2058 = vmatpush.bf16.msrb.mxu3 %v4570_v28  ;;  %v5709_v28 = vld [vmem:[#allocation2 + $0x8ec] sm:$0xf0] }
  0x8c   :  { %2020 = vmatpush.bf16.msrb.mxu0 %v3970_v35  ;;  %v4235_v35 = vld [vmem:[#allocation2 + $0x2f0] sm:$0xf0]  ;;  %v5002_v38 = vor.u32 %v5709_v28, %v5001_v25  ;;  %v5631_v25 = vld [vmem:[#allocation2 + $0x67c] sm:$0xf0] }
  0x8d   :  { %2033 = vmatpush.bf16.msrb.mxu1 %v4162_v36  ;;  %v4450_v36 = vor.u32 %v5571_v22, %v4449_v21  ;;  %v4238_v43 = vor.u32 %v5514_v34, %v4235_v35  ;;  %v4714_v21 = vor.u32 %v5637_v9, %v4713_v8  ;;  %v4115_v34 = vld [vmem:[#allocation2 + $0x200] sm:$0xf0]  ;;  %v5604_v8 = vld [vmem:[#allocation2 + $0x5ac] sm:$0xf] }
  0x8e   :  { %2046 = vmatpush.bf16.msrb.mxu2 %v4354_v37  ;;  %v4810_v37 = vor.u32 %v5661_v24, %v4809_v23  ;;  %v3950_v23 = vor.u32 %v5442_v15, %v3947_v18  ;;  %v4689_v24 = vld [vmem:[#allocation2 + $0x668] sm:$0xf]  ;;  %v5700_v15 = vld [vmem:[#allocation2 + $0x8ac] sm:$0xf]  ;;  %v4979_v18 = vld [vmem:[#allocation2 + $0x8c0] sm:$0xf0] }
  0x8f   :  { %2059 = vmatpush.bf16.msrb.mxu3 %v4546_v41  ;;  %v5655_v41 = vld [vmem:[#allocation2 + $0x73c] sm:$0xf0]  ;;  %v4690_v35 = vor.u32 %v5631_v25, %v4689_v24  ;;  %v5598_v24 = vld [vmem:[#allocation2 + $0x57c] sm:$0xf]  ;;  %v4982_v25 = vor.u32 %v5700_v15, %v4979_v18  ;;  %v4667_v15 = vld [vmem:[#allocation2 + $0x650] sm:$0xf0] }
  0x90   :  { %2021 = vmatpush.bf16.msrb.mxu0 %v3946_v47  ;;  %v5508_v47 = vld [vmem:[#allocation2 + $0x2ac] sm:$0xf]  ;;  %v5670_v18 = vld [vmem:[#allocation2 + $0x7bc] sm:$0xf] }
  0x91   :  { %2034 = vmatpush.bf16.msrb.mxu1 %v4138_v48  ;;  %v4211_v48 = vld [vmem:[#allocation2 + $0x2c0] sm:$0xf0] }
  0x92   :  { %2047 = vmatpush.bf16.msrb.mxu2 %v4330_v49  ;;  %v4786_v49 = vor.u32 %v5655_v41, %v4785_v40  ;;  %v4214_v55 = vor.u32 %v5508_v47, %v4211_v48  ;;  %v4857_v40 = vld [vmem:[#allocation2 + $0x7b8] sm:$0xf]  ;;  %v4641_v48 = vld [vmem:[#allocation2 + $0x608] sm:$0xf] }
  0x93   :  { %2060 = vmatpush.bf16.msrb.mxu3 %v4522_v53  ;;  %v5649_v53 = vld [vmem:[#allocation2 + $0x70c] sm:$0xf0] }
  0x94   :  { %2022 = vmatpush.bf16.msrb.mxu0 %v3922_v59  ;;  %v5502_v59 = vld [vmem:[#allocation2 + $0x27c] sm:$0xf] }
  0x95   :  { %2035 = vmatpush.bf16.msrb.mxu1 %v4114_v60  ;;  %v4187_v60 = vld [vmem:[#allocation2 + $0x290] sm:$0xf0] }
  0x96   :  { %2048 = vmatpush.bf16.msrb.mxu2 %v4306_v61  ;;  %v4762_v61 = vor.u32 %v5649_v53, %v4761_v52  ;;  %v4190_v3 = vor.u32 %v5502_v59, %v4187_v60  ;;  %v4833_v52 = vld [vmem:[#allocation2 + $0x788] sm:$0xf]  ;;  %v5667_v53 = vld [vmem:[#allocation2 + $0x79c] sm:$0xf0]  ;;  %v5562_v59 = vld [vmem:[#allocation2 + $0x45c] sm:$0xf] }
  0x97   :  { %2061 = vmatpush.bf16.msrb.mxu3 %v4498_v1  ;;  %v5643_v1 = vld [vmem:[#allocation2 + $0x6dc] sm:$0xf0]  ;;  %v4427_v60 = vld [vmem:[#allocation2 + $0x470] sm:$0xf0] }
  0x98   :  { %2023 = vmatpush.bf16.msrb.mxu0 %v3898_v7 }
  0x99   :  { %2036 = vmatpush.bf16.msrb.mxu1 %v4090_v10  ;;  %v4905_v10 = vld [vmem:[#allocation2 + $0x818] sm:$0xf] }
  0x9a   :  { %2049 = vmatpush.bf16.msrb.mxu2 %v4282_v11  ;;  %v4906_v22 = vor.u32 %v5685_v12, %v4905_v10  ;;  %v4595_v10 = vld [vmem:[#allocation2 + $0x5c0] sm:$0xf0] }
  0x9b   :  { %2062 = vmatpush.bf16.msrb.mxu3 %v4474_v19  ;;  %v5490_v19 = vld [vmem:[#allocation2 + $0x21c] sm:$0xf]  ;;  %v4787_v12 = vld [vmem:[#allocation2 + $0x740] sm:$0xf0] }
  0x9c   :  { %2024 = vmatpush.bf16.msrb.mxu0 %v3874_v26  ;;  %v4881_v26 = vld [vmem:[#allocation2 + $0x7e8] sm:$0xf]  ;;  %v4142_v28 = vor.u32 %v5490_v19, %v4139_v20  ;;  %v4598_v20 = vor.u32 %v5604_v8, %v4595_v10  ;;  %v4283_v8 = vld [vmem:[#allocation2 + $0x350] sm:$0xf0] }
  0x9d   :  { %2037 = vmatpush.bf16.msrb.mxu1 %v4066_v32  ;;  %v3923_v32 = vld [vmem:[#allocation2 + $0x80] sm:$0xf0] }
  0x9e   :  { %2050 = vmatpush.bf16.msrb.mxu2 %v4258_v33  ;;  %v5484_v33 = vld [vmem:[#allocation2 + $0x1ec] sm:$0xf] }
  0x9f   :  { %2063 = vmatpush.bf16.msrb.mxu3 %v4450_v36  ;;  %2025 = vmatmul.bf16.vlgmr.msrb.gmra.mxu0 %v6089_v13  ;;  %v5691_v13 = vld [vmem:[#allocation2 + $0x85c] sm:$0xf0]  ;;  %v4882_v36 = vor.u32 %v5679_v29, %v4881_v26  ;;  %v4118_v41 = vor.u32 %v5484_v33, %v4115_v34  ;;  %v4571_v26 = vld [vmem:[#allocation2 + $0x590] sm:$0xf0]  ;;  %v6119_v33 = vld [vmem:[#allocation1] sm:$0xff] }
  0xa0   :  { %2069 = vmatpush.bf16.msra.mxu0 %v4810_v37  ;;  %2038 = vmatmul.bf16.vlgmr.msrb.gmra.mxu1 %v6091_v14  ;;  %v4163_v14 = vld [vmem:[#allocation2 + $0x260] sm:$0xf0]  ;;  %v4930_v7 = vor.u32 %v5691_v13, %v4929_v2  ;;  %v3926_v37 = vor.u32 %v5436_v31, %v3923_v32  ;;  %v4834_v2 = vor.u32 %v5667_v53, %v4833_v52  ;;  %v5706_v13 = vld [vmem:[#allocation2 + $0x8dc] sm:$0xf]  ;;  %v4763_v29 = vld [vmem:[#allocation2 + $0x710] sm:$0xf0] }
  0xa1   :  { %2082 = vmatpush.bf16.msra.mxu1 %v5002_v38  ;;  %2051 = vmatmul.bf16.vlgmr.msrb.gmra.mxu2 %v6094_v16  ;;  %v4738_v16 = vor.u32 %v5643_v1, %v4737_v0  ;;  %v4166_v11 = vor.u32 %v5496_v6, %v4163_v14  ;;  %v4665_v38 = vld [vmem:[#allocation2 + $0x638] sm:$0xf]  ;;  %v5658_v0 = vld [vmem:[#allocation2 + $0x75c] sm:$0xf]  ;;  %v4811_v1 = vld [vmem:[#allocation2 + $0x770] sm:$0xf0]  ;;  %v4430_v6 = vor.u32 %v5562_v59, %v4427_v60 }
  0xa2   :  { %2095 = vmatpush.bf16.msra.mxu2 %v4046_v39  ;;  %2064 = vmatmul.bf16.vlgmr.msrb.gmra.mxu3 %v6096_v17  ;;  %v3974_v17 = vor.u32 %v5448_v4, %v3971_v5  ;;  %v5625_v39 = vld [vmem:[#allocation2 + $0x64c] sm:$0xf0]  ;;  %v5003_v4 = vld [vmem:[#allocation2 + $0x8f0] sm:$0xf0]  ;;  %v4070_v5 = vor.u32 %v5472_v57, %v4067_v58  ;;  %v5694_v31 = vld [vmem:[#allocation2 + $0x87c] sm:$0xf] }
  0xa3   :  { %2108 = vmatpush.bf16.msra.mxu3 %v4238_v43  ;;  %v5430_v43 = vld [vmem:[#allocation2 + $0x3c] sm:$0xf]  ;;  %v4666_v47 = vor.u32 %v5625_v39, %v4665_v38  ;;  %v5006_v9 = vor.u32 %v5706_v13, %v5003_v4  ;;  %v4955_v32 = vld [vmem:[#allocation2 + $0x890] sm:$0xf0]  ;;  %v4355_v38 = vld [vmem:[#allocation2 + $0x3e0] sm:$0xf0] }
  0xa4   :  { %2070 = vmatpush.bf16.msra.mxu0 %v4786_v49  ;;  %v5619_v49 = vld [vmem:[#allocation2 + $0x61c] sm:$0xf0]  ;;  %v5592_v39 = vld [vmem:[#allocation2 + $0x54c] sm:$0xf]  ;;  %v4523_v52 = vld [vmem:[#allocation2 + $0x530] sm:$0xf0] }
  0xa5   :  { %2083 = vmatpush.bf16.msra.mxu1 %v4978_v50  ;;  %v4858_v50 = vor.u32 %v5673_v42, %v4857_v40  ;;  %v4547_v40 = vld [vmem:[#allocation2 + $0x560] sm:$0xf0]  ;;  %v5634_v53 = vld [vmem:[#allocation2 + $0x69c] sm:$0xf]  ;;  %v5532_v60 = vld [vmem:[#allocation2 + $0x36c] sm:$0xf] }
  0xa6   :  { %2096 = vmatpush.bf16.msra.mxu2 %v4022_v51  ;;  %v3902_v51 = vor.u32 %v5430_v43, %v3899_v44  ;;  %v4739_v42 = vld [vmem:[#allocation2 + $0x6e0] sm:$0xf0]  ;;  %v5688_v43 = vld [vmem:[#allocation2 + $0x84c] sm:$0xf] }
  0xa7   :  { %2109 = vmatpush.bf16.msra.mxu3 %v4214_v55  ;;  %v4094_v55 = vor.u32 %v5478_v45, %v4091_v46  ;;  %v4931_v44 = vld [vmem:[#allocation2 + $0x860] sm:$0xf0]  ;;  %v4550_v46 = vor.u32 %v5592_v39, %v4547_v40  ;;  %v5676_v13 = vld [vmem:[#allocation2 + $0x7ec] sm:$0xf]  ;;  %v5470_v39 = vld [vmem:[#allocation2 + $0x174] sm:$0xf0] }
  0xa8   :  { %2071 = vmatpush.bf16.msra.mxu0 %v4762_v61  ;;  %v5610_v61 = vld [vmem:[#allocation2 + $0x5dc] sm:$0xf]  ;;  %v4883_v4 = vld [vmem:[#allocation2 + $0x800] sm:$0xf0] }
  0xa9   :  { %2084 = vmatpush.bf16.msra.mxu1 %v4954_v62  ;;  %v4642_v62 = vor.u32 %v5619_v49, %v4641_v48  ;;  %v5538_v48 = vld [vmem:[#allocation2 + $0x39c] sm:$0xf]  ;;  %v4331_v49 = vld [vmem:[#allocation2 + $0x3b0] sm:$0xf0]  ;;  %v4886_v10 = vor.u32 %v5676_v13, %v4883_v4  ;;  %v4001_v4 = vld [vmem:[#allocation2 + $0x100] sm:$0xf] }
  0xaa   :  { %2097 = vmatpush.bf16.msra.mxu2 %v3998_v63  ;;  %v4619_v63 = vld [vmem:[#allocation2 + $0x5f0] sm:$0xf0]  ;;  %v4334_v57 = vor.u32 %v5538_v48, %v4331_v49  ;;  %v4625_v48 = vld [vmem:[#allocation2 + $0x5e0] sm:$0xf]  ;;  %v5614_v49 = vld [vmem:[#allocation2 + $0x5f4] sm:$0xf0] }
  0xab   :  { %2110 = vmatpush.bf16.msra.mxu3 %v4190_v3  ;;  %v3878_v3 = vor.u32 %v5424_v54, %v3875_v56  ;;  %v4622_v14 = vor.u32 %v5610_v61, %v4619_v63  ;;  %v4715_v54 = vld [vmem:[#allocation2 + $0x6b0] sm:$0xf0]  ;;  %v4307_v61 = vld [vmem:[#allocation2 + $0x380] sm:$0xf0] }
  0xac   :  { %2072 = vmatpush.bf16.msra.mxu0 %v4738_v16  ;;  %v4814_v16 = vor.u32 %v5658_v0, %v4811_v1  ;;  %v4907_v56 = vld [vmem:[#allocation2 + $0x830] sm:$0xf0]  ;;  %v4718_v59 = vor.u32 %v5634_v53, %v4715_v54  ;;  %v4499_v1 = vld [vmem:[#allocation2 + $0x500] sm:$0xf0] }
  0xad   :  { %2085 = vmatpush.bf16.msra.mxu1 %v4930_v7  ;;  %v5556_v7 = vld [vmem:[#allocation2 + $0x42c] sm:$0xf] }
  0xae   :  { %2098 = vmatpush.bf16.msra.mxu2 %v3974_v17  ;;  %v4403_v17 = vld [vmem:[#allocation2 + $0x440] sm:$0xf0] }
  0xaf   :  { %2111 = vmatpush.bf16.msra.mxu3 %v4166_v11  ;;  %v5652_v11 = vld [vmem:[#allocation2 + $0x72c] sm:$0xf]  ;;  %v4406_v19 = vor.u32 %v5556_v7, %v4403_v17  ;;  %v5526_v17 = vld [vmem:[#allocation2 + $0x33c] sm:$0xf] }
  0xb0   :  { %2073 = vmatpush.bf16.msra.mxu0 %v4714_v21  ;;  %v4790_v21 = vor.u32 %v5652_v11, %v4787_v12  ;;  %v4475_v11 = vld [vmem:[#allocation2 + $0x4d0] sm:$0xf0]  ;;  %v5622_v12 = vld [vmem:[#allocation2 + $0x63c] sm:$0xf] }
  0xb1   :  { %2086 = vmatpush.bf16.msra.mxu1 %v4906_v22  ;;  %v5550_v22 = vld [vmem:[#allocation2 + $0x3fc] sm:$0xf] }
  0xb2   :  { %2099 = vmatpush.bf16.msra.mxu2 %v3950_v23  ;;  %v4379_v23 = vld [vmem:[#allocation2 + $0x410] sm:$0xf0] }
  0xb3   :  { %2112 = vmatpush.bf16.msra.mxu3 %v4142_v28  ;;  %v5646_v28 = vld [vmem:[#allocation2 + $0x6fc] sm:$0xf]  ;;  %v4382_v34 = vor.u32 %v5550_v22, %v4379_v23  ;;  %v4259_v22 = vld [vmem:[#allocation2 + $0x320] sm:$0xf0] }
  0xb4   :  { %2074 = vmatpush.bf16.msra.mxu0 %v4690_v35  ;;  %v6122_v35 = vld [vmem:[#allocation1 + $0x9] sm:$0xff] }
  0xb5   :  { %2087 = vmatpush.bf16.msra.mxu1 %v4882_v36  ;;  %v4766_v36 = vor.u32 %v5646_v28, %v4763_v29  ;;  %v5616_v28 = vld [vmem:[#allocation2 + $0x60c] sm:$0xf] }
  0xb6   :  { %2100 = vmatpush.bf16.msra.mxu2 %v3926_v37  ;;  %v5544_v37 = vld [vmem:[#allocation2 + $0x3cc] sm:$0xf] }
  0xb7   :  { %2113 = vmatpush.bf16.msra.mxu3 %v4118_v41  ;;  %v5640_v41 = vld [vmem:[#allocation2 + $0x6cc] sm:$0xf]  ;;  %v4358_v45 = vor.u32 %v5544_v37, %v4355_v38  ;;  %v4049_v38 = vld [vmem:[#allocation2 + $0x160] sm:$0xf] }
  0xb8   :  { %2075 = vmatpush.bf16.msra.mxu0 %v4666_v47  ;;  %v4742_v47 = vor.u32 %v5640_v41, %v4739_v42 }
  0xb9   :  { %2088 = vmatpush.bf16.msra.mxu1 %v4858_v50  ;;  %v5586_v50 = vld [vmem:[#allocation2 + $0x51c] sm:$0xf] }
  0xba   :  { %2101 = vmatpush.bf16.msra.mxu2 %v3902_v51  ;;  %v4934_v51 = vor.u32 %v5688_v43, %v4931_v44  ;;  %v4526_v58 = vor.u32 %v5586_v50, %v4523_v52  ;;  %v5518_v43 = vld [vmem:[#allocation2 + $0x2f4] sm:$0xf0]  ;;  %v4433_v44 = vld [vmem:[#allocation2 + $0x460] sm:$0xf]  ;;  %v4050_v52 = vor.u32 %v5470_v39, %v4049_v38 }
  0xbb   :  { %2114 = vmatpush.bf16.msra.mxu3 %v4094_v55  ;;  %v5682_v55 = vld [vmem:[#allocation2 + $0x81c] sm:$0xf]  ;;  %v3953_v39 = vld [vmem:[#allocation2 + $0xa0] sm:$0xf] }
  0xbc   :  { %2076 = vmatpush.bf16.msra.mxu0 %v4642_v62  ;;  %v5580_v62 = vld [vmem:[#allocation2 + $0x4ec] sm:$0xf]  ;;  %v4910_v0 = vor.u32 %v5682_v55, %v4907_v56  ;;  %v4025_v55 = vld [vmem:[#allocation2 + $0x130] sm:$0xf]  ;;  %v5464_v56 = vld [vmem:[#allocation2 + $0x144] sm:$0xf0] }
  0xbd   :  { %2089 = vmatpush.bf16.msra.mxu1 %v4834_v2  ;;  %v5628_v2 = vld [vmem:[#allocation2 + $0x66c] sm:$0xf] }
  0xbe   :  { %2102 = vmatpush.bf16.msra.mxu2 %v3878_v3  ;;  %v4691_v3 = vld [vmem:[#allocation2 + $0x680] sm:$0xf0] }
  0xbf   :  { %2115 = vmatpush.bf16.msra.mxu3 %v4070_v5  ;;  %2077 = vmatmul.bf16.vlgmr.msra.gmra.mxu0 %v6101_v27  ;;  %v4574_v27 = vor.u32 %v5598_v24, %v4571_v26  ;;  %v1883_v63 = vpop.f32.mrf.mxu1  ;;  %v4694_v7 = vor.u32 %v5628_v2, %v4691_v3  ;;  %v4670_v24 = vor.u32 %v5622_v12, %v4667_v15  ;;  %v4451_v26 = vld [vmem:[#allocation2 + $0x4a0] sm:$0xf0]  ;;  %v5602_v12 = vld [vmem:[#allocation2 + $0x594] sm:$0xf0] }
  0xc0   :  { %2121 = vmatpush.bf16.msrb.mxu0 %v4430_v6  ;;  %2090 = vmatmul.bf16.vlgmr.msra.gmra.mxu1 %v6103_v30  ;;  %v4958_v30 = vor.u32 %v5694_v31, %v4955_v32  ;;  %v1870_v5 = vpop.f32.mrf.mxu0  ;;  %v4310_v6 = vor.u32 %v5532_v60, %v4307_v61  ;;  %v4643_v32 = vld [vmem:[#allocation2 + $0x620] sm:$0xf0]  ;;  %v4409_v60 = vld [vmem:[#allocation2 + $0x430] sm:$0xf]  ;;  %v5560_v61 = vld [vmem:[#allocation2 + $0x444] sm:$0xf0] }
  0xc1   :  { %2134 = vmatpush.bf16.msrb.mxu1 %v4622_v14  ;;  %2103 = vmatmul.bf16.vlgmr.msra.gmra.mxu2 %v6119_v33  ;;  %v1884_v14 = vadd.f32 %v1883_v63, %v1870_v5  ;;  %v5608_v63 = vld [vmem:[#allocation2 + $0x5c4] sm:$0xf0]  ;;  %v4410_v13 = vor.u32 %v5560_v61, %v4409_v60  ;;  %v5458_v5 = vld [vmem:[#allocation2 + $0x114] sm:$0xf0] }
  0xc2   :  { %2147 = vmatpush.bf16.msrb.mxu2 %v4814_v16  ;;  %2116 = vmatmul.bf16.vlgmr.msra.gmra.mxu3 %v6122_v35  ;;  %v4502_v16 = vor.u32 %v5580_v62, %v4499_v1  ;;  %v4601_v62 = vld [vmem:[#allocation2 + $0x5b0] sm:$0xf]  ;;  %v5584_v60 = vld [vmem:[#allocation2 + $0x504] sm:$0xf0] }
  0xc3   :  { %2160 = vmatpush.bf16.msrb.mxu3 %v5006_v9  ;;  %v5574_v9 = vld [vmem:[#allocation2 + $0x4bc] sm:$0xf]  ;;  %v6136_v15 = vld [vmem:[#allocation1 + $0x1b] sm:$0xff] }
  0xc4   :  { %2122 = vmatpush.bf16.msrb.mxu0 %v4406_v19  ;;  %v4859_v19 = vld [vmem:[#allocation2 + $0x7d0] sm:$0xf0]  ;;  %v4478_v23 = vor.u32 %v5574_v9, %v4475_v11  ;;  %v6130_v9 = vld [vmem:[#allocation1 + $0x12] sm:$0xff]  ;;  %v4577_v11 = vld [vmem:[#allocation2 + $0x580] sm:$0xf] }
  0xc5   :  { %2135 = vmatpush.bf16.msrb.mxu1 %v4598_v20  ;;  %v4286_v20 = vor.u32 %v5526_v17, %v4283_v8  ;;  %v4862_v31 = vor.u32 %v5670_v18, %v4859_v19  ;;  %v4385_v17 = vld [vmem:[#allocation2 + $0x400] sm:$0xf]  ;;  %v5554_v8 = vld [vmem:[#allocation2 + $0x414] sm:$0xf0]  ;;  %v4002_v18 = vor.u32 %v5458_v5, %v4001_v4 }
  0xc6   :  { %2148 = vmatpush.bf16.msrb.mxu2 %v4790_v21  ;;  %v5520_v21 = vld [vmem:[#allocation2 + $0x30c] sm:$0xf]  ;;  %v5434_v4 = vld [vmem:[#allocation2 + $0x54] sm:$0xf0]  ;;  %v4097_v5 = vld [vmem:[#allocation2 + $0x1c0] sm:$0xf] }
  0xc7   :  { %2161 = vmatpush.bf16.msrb.mxu3 %v4982_v25  ;;  %v5568_v25 = vld [vmem:[#allocation2 + $0x48c] sm:$0xf]  ;;  %v1885_v29 = vpop.f32.mrf.mxu1  ;;  %v4262_v42 = vor.u32 %v5520_v21, %v4259_v22  ;;  %v3977_v21 = vld [vmem:[#allocation2 + $0xd0] sm:$0xf]  ;;  %v5452_v22 = vld [vmem:[#allocation2 + $0xe4] sm:$0xf0] }
  0xc8   :  { %2123 = vmatpush.bf16.msrb.mxu0 %v4382_v34  ;;  %v5664_v34 = vld [vmem:[#allocation2 + $0x78c] sm:$0xf]  ;;  %v1909_v37 = vpop.f32.mrf.mxu3  ;;  %v1872_v40 = vpop.f32.mrf.mxu0 }
  0xc9   :  { %2136 = vmatpush.bf16.msrb.mxu1 %v4574_v27  ;;  %v4835_v27 = vld [vmem:[#allocation2 + $0x7a0] sm:$0xf0]  ;;  %v4145_v40 = vld [vmem:[#allocation2 + $0x220] sm:$0xf] }
  0xca   :  { %2149 = vmatpush.bf16.msrb.mxu2 %v4766_v36  ;;  %v1896_v36 = vpop.f32.mrf.mxu2 }
  0xcb   :  { %2162 = vmatpush.bf16.msrb.mxu3 %v4958_v30  ;;  %v4241_v30 = vld [vmem:[#allocation2 + $0x2e0] sm:$0xf]  ;;  %v1897_v41 = vadd.f32 %v1896_v36, %v1884_v14 }
  0xcc   :  { %2124 = vmatpush.bf16.msrb.mxu0 %v4358_v45  ;;  %v5566_v45 = vld [vmem:[#allocation2 + $0x474] sm:$0xf0]  ;;  %v4242_v53 = vor.u32 %v5518_v43, %v4241_v30  ;;  %v6127_v14 = vld [vmem:[#allocation1 + $0x24] sm:$0xff] }
  0xcd   :  { %2137 = vmatpush.bf16.msrb.mxu1 %v4550_v46  ;;  %v4454_v46 = vor.u32 %v5568_v25, %v4451_v26  ;;  %v6125_v50 = vadd.f32 %v1909_v37, %v1897_v41  ;;  %v4434_v54 = vor.u32 %v5566_v45, %v4433_v44  ;;  %v5500_v25 = vld [vmem:[#allocation2 + $0x264] sm:$0xf0]  ;;  %v4361_v26 = vld [vmem:[#allocation2 + $0x3d0] sm:$0xf]  ;;  %v5446_v30 = vld [vmem:[#allocation2 + $0xb4] sm:$0xf0] }
  0xce   :  { %2150 = vmatpush.bf16.msrb.mxu2 %v4742_v47  ;;  %v4646_v47 = vor.u32 %v5616_v28, %v4643_v32  ;;  %v5548_v28 = vld [vmem:[#allocation2 + $0x3e4] sm:$0xf0]  ;;  %v5494_v43 = vld [vmem:[#allocation2 + $0x234] sm:$0xf0]  ;;  %v4337_v44 = vld [vmem:[#allocation2 + $0x3a0] sm:$0xf] }
  0xcf   :  { %2163 = vmatpush.bf16.msrb.mxu3 %v4934_v51  ;;  %v4838_v51 = vor.u32 %v5664_v34, %v4835_v27  ;;  %v5596_v32 = vld [vmem:[#allocation2 + $0x564] sm:$0xf0]  ;;  %v3978_v27 = vor.u32 %v5452_v22, %v3977_v21  ;;  %v4362_v38 = vor.u32 %v5548_v28, %v4361_v26  ;;  %v5542_v45 = vld [vmem:[#allocation2 + $0x3b4] sm:$0xf0]  ;;  %v4073_v22 = vld [vmem:[#allocation2 + $0x190] sm:$0xf] }
  0xd0   :  { %2125 = vmatpush.bf16.msrb.mxu0 %v4334_v57  ;;  %v4217_v57 = vld [vmem:[#allocation2 + $0x2b0] sm:$0xf]  ;;  %v1911_v2 = vpop.f32.mrf.mxu3  ;;  %v5524_v26 = vld [vmem:[#allocation2 + $0x324] sm:$0xf0] }
  0xd1   :  { %2138 = vmatpush.bf16.msrb.mxu1 %v4526_v58  ;;  %v4626_v58 = vor.u32 %v5614_v49, %v4625_v48  ;;  %v3954_v48 = vor.u32 %v5446_v30, %v3953_v39  ;;  %v4146_v49 = vor.u32 %v5494_v43, %v4145_v40  ;;  %v4457_v28 = vld [vmem:[#allocation2 + $0x490] sm:$0xf]  ;;  %v5467_v39 = vld [vmem:[#allocation2 + $0x164] sm:$0xf]  ;;  %v4051_v30 = vld [vmem:[#allocation2 + $0x178] sm:$0xf0] }
  0xd2   :  { %2151 = vmatpush.bf16.msrb.mxu2 %v4718_v59  ;;  %v5512_v59 = vld [vmem:[#allocation2 + $0x2c4] sm:$0xf0]  ;;  %v1898_v1 = vpop.f32.mrf.mxu2  ;;  %v5515_v43 = vld [vmem:[#allocation2 + $0x2e4] sm:$0xf] }
  0xd3   :  { %2164 = vmatpush.bf16.msrb.mxu3 %v4910_v0  ;;  %v4026_v0 = vor.u32 %v5464_v56, %v4025_v55  ;;  %v4218_v3 = vor.u32 %v5512_v59, %v4217_v57  ;;  %v5488_v55 = vld [vmem:[#allocation2 + $0x204] sm:$0xf0]  ;;  %v4313_v56 = vld [vmem:[#allocation2 + $0x370] sm:$0xf] }
  0xd4   :  { %2126 = vmatpush.bf16.msrb.mxu0 %v4310_v6  ;;  %v4193_v6 = vld [vmem:[#allocation2 + $0x280] sm:$0xf]  ;;  %v5536_v57 = vld [vmem:[#allocation2 + $0x384] sm:$0xf0]  ;;  %v4505_v59 = vld [vmem:[#allocation2 + $0x4f0] sm:$0xf] }
  0xd5   :  { %2139 = vmatpush.bf16.msrb.mxu1 %v4502_v16  ;;  %v4602_v16 = vor.u32 %v5608_v63, %v4601_v62 }
  0xd6   :  { %2152 = vmatpush.bf16.msrb.mxu2 %v4694_v7  ;;  %v5506_v7 = vld [vmem:[#allocation2 + $0x294] sm:$0xf0] }
  0xd7   :  { %2165 = vmatpush.bf16.msrb.mxu3 %v4886_v10  ;;  %v6133_v10 = vld [vmem:[#allocation1 + $0x2d] sm:$0xff]  ;;  %v4194_v19 = vor.u32 %v5506_v7, %v4193_v6  ;;  %v4506_v6 = vor.u32 %v5584_v60, %v4505_v59  ;;  %v4289_v7 = vld [vmem:[#allocation2 + $0x340] sm:$0xf] }
  0xd8   :  { %2127 = vmatpush.bf16.msrb.mxu0 %v4286_v20  ;;  %v4386_v20 = vor.u32 %v5554_v8, %v4385_v17  ;;  %v5530_v17 = vld [vmem:[#allocation2 + $0x354] sm:$0xf0]  ;;  %v4481_v8 = vld [vmem:[#allocation2 + $0x4c0] sm:$0xf] }
  0xd9   :  { %2140 = vmatpush.bf16.msrb.mxu1 %v4478_v23  ;;  %v4169_v23 = vld [vmem:[#allocation2 + $0x250] sm:$0xf]  ;;  %v4290_v21 = vor.u32 %v5530_v17, %v4289_v7 }
  0xda   :  { %2153 = vmatpush.bf16.msrb.mxu2 %v4670_v24  ;;  %v4578_v24 = vor.u32 %v5602_v12, %v4577_v11  ;;  %v4170_v37 = vor.u32 %v5500_v25, %v4169_v23  ;;  %v5578_v11 = vld [vmem:[#allocation2 + $0x4d4] sm:$0xf0]  ;;  %v5476_v23 = vld [vmem:[#allocation2 + $0x1a4] sm:$0xf0]  ;;  %v4745_v17 = vld [vmem:[#allocation2 + $0x6d0] sm:$0xf] }
  0xdb   :  { %2166 = vmatpush.bf16.msrb.mxu3 %v4862_v31  ;;  %v4553_v31 = vld [vmem:[#allocation2 + $0x550] sm:$0xf]  ;;  %v4482_v25 = vor.u32 %v5578_v11, %v4481_v8  ;;  %v4074_v40 = vor.u32 %v5476_v23, %v4073_v22  ;;  %v5644_v8 = vld [vmem:[#allocation2 + $0x6e4] sm:$0xf0]  ;;  %v4171_v22 = vld [vmem:[#allocation2 + $0x268] sm:$0xf0] }
  0xdc   :  { %2128 = vmatpush.bf16.msrb.mxu0 %v4262_v42  ;;  %v1922_v29 = vpop.f32.mrf.mxu0  ;;  %v4554_v41 = vor.u32 %v5596_v32, %v4553_v31  ;;  %v4817_v32 = vld [vmem:[#allocation2 + $0x760] sm:$0xf]  ;;  %v4937_v11 = vld [vmem:[#allocation2 + $0x850] sm:$0xf]  ;;  %v4746_v23 = vor.u32 %v5644_v8, %v4745_v17  ;;  %v5620_v17 = vld [vmem:[#allocation2 + $0x624] sm:$0xf0] }
  0xdd   :  { %2141 = vmatpush.bf16.msrb.mxu1 %v4454_v46  ;;  %v1923_v34 = vadd.f32 %v1922_v29, %v6125_v50  ;;  %v1935_v36 = vpop.f32.mrf.mxu1  ;;  %v4529_v46 = vld [vmem:[#allocation2 + $0x520] sm:$0xf]  ;;  %v4338_v50 = vor.u32 %v5542_v45, %v4337_v44  ;;  %v5572_v29 = vld [vmem:[#allocation2 + $0x4a4] sm:$0xf0]  ;;  %v4243_v44 = vld [vmem:[#allocation2 + $0x2f8] sm:$0xf0] }
  0xde   :  { %2154 = vmatpush.bf16.msrb.mxu2 %v4646_v47  ;;  %v5590_v47 = vld [vmem:[#allocation2 + $0x534] sm:$0xf0]  ;;  %v4458_v45 = vor.u32 %v5572_v29, %v4457_v28 }
  0xdf   :  { %2167 = vmatpush.bf16.msrb.mxu3 %v4838_v51  ;;  %2129 = vmatmul.bf16.vlgmr.msrb.gmra.mxu0 %v6130_v9  ;;  %v6140_v42 = vadd.f32 %v1935_v36, %v1923_v34  ;;  %v3929_v51 = vld [vmem:[#allocation2 + $0x70] sm:$0xf]  ;;  %v5662_v34 = vld [vmem:[#allocation2 + $0x774] sm:$0xf0] }
  0xe0   :  { %2173 = vmatpush.bf16.msra.mxu0 %v4050_v52  ;;  %2142 = vmatmul.bf16.vlgmr.msrb.gmra.mxu1 %v6136_v15  ;;  %v5440_v52 = vld [vmem:[#allocation2 + $0x84] sm:$0xf0] }
  0xe1   :  { %2186 = vmatpush.bf16.msra.mxu1 %v4242_v53  ;;  %2155 = vmatmul.bf16.vlgmr.msrb.gmra.mxu2 %v6127_v14  ;;  %v4121_v53 = vld [vmem:[#allocation2 + $0x1f0] sm:$0xf]  ;;  %v3930_v63 = vor.u32 %v5440_v52, %v3929_v51  ;;  %v4246_v52 = vor.u32 %v5515_v43, %v4243_v44 }
  0xe2   :  { %2199 = vmatpush.bf16.msra.mxu2 %v4434_v54  ;;  %2168 = vmatmul.bf16.vlgmr.msrb.gmra.mxu3 %v6133_v10  ;;  %v4530_v54 = vor.u32 %v5590_v47, %v4529_v46  ;;  %v4122_v2 = vor.u32 %v5488_v55, %v4121_v53  ;;  %v4818_v46 = vor.u32 %v5662_v34, %v4817_v32  ;;  %v4985_v51 = vld [vmem:[#allocation2 + $0x8b0] sm:$0xf]  ;;  %v5704_v53 = vld [vmem:[#allocation2 + $0x8c4] sm:$0xf0]  ;;  %v4027_v55 = vld [vmem:[#allocation2 + $0x148] sm:$0xf0] }
  0xe3   :  { %2212 = vmatpush.bf16.msra.mxu3 %v4626_v58  ;;  %v4986_v59 = vor.u32 %v5704_v53, %v4985_v51  ;;  %v5638_v32 = vld [vmem:[#allocation2 + $0x6b4] sm:$0xf0]  ;;  %v4913_v34 = vld [vmem:[#allocation2 + $0x820] sm:$0xf]  ;;  %v5680_v51 = vld [vmem:[#allocation2 + $0x804] sm:$0xf0] }
  0xe4   :  { %2174 = vmatpush.bf16.msra.mxu0 %v4026_v0  ;;  %v1948_v58 = vpop.f32.mrf.mxu2  ;;  %v1924_v62 = vpop.f32.mrf.mxu0  ;;  %v3931_v53 = vld [vmem:[#allocation2 + $0x88] sm:$0xf0] }
  0xe5   :  { %2187 = vmatpush.bf16.msra.mxu1 %v4218_v3  ;;  %v1961_v61 = vpop.f32.mrf.mxu3  ;;  %v1937_v1 = vpop.f32.mrf.mxu1  ;;  %v4314_v3 = vor.u32 %v5536_v57, %v4313_v56  ;;  %v5509_v56 = vld [vmem:[#allocation2 + $0x2b4] sm:$0xf]  ;;  %v4219_v57 = vld [vmem:[#allocation2 + $0x2c8] sm:$0xf0]  ;;  %v5650_v62 = vld [vmem:[#allocation2 + $0x714] sm:$0xf0] }
  0xe6   :  { %2200 = vmatpush.bf16.msra.mxu2 %v4410_v13  ;;  %v6142_v0 = vadd.f32 %v1961_v61, %v1948_v58  ;;  %v3905_v13 = vld [vmem:[#allocation2 + $0x40] sm:$0xf]  ;;  %v4222_v1 = vor.u32 %v5509_v56, %v4219_v57 }
  0xe7   :  { %2213 = vmatpush.bf16.msra.mxu3 %v4602_v16  ;;  %v5482_v16 = vld [vmem:[#allocation2 + $0x1d4] sm:$0xf0]  ;;  %v3906_v12 = vor.u32 %v5434_v4, %v3905_v13  ;;  %v4769_v61 = vld [vmem:[#allocation2 + $0x700] sm:$0xf]  ;;  %v4003_v13 = vld [vmem:[#allocation2 + $0x118] sm:$0xf0] }
  0xe8   :  { %2175 = vmatpush.bf16.msra.mxu0 %v4002_v18  ;;  %v3881_v18 = vld [vmem:[#allocation2 + $0x10] sm:$0xf]  ;;  %v5503_v4 = vld [vmem:[#allocation2 + $0x284] sm:$0xf] }
  0xe9   :  { %2188 = vmatpush.bf16.msra.mxu1 %v4194_v19  ;;  %v5428_v19 = vld [vmem:[#allocation2 + $0x24] sm:$0xf0] }
  0xea   :  { %2201 = vmatpush.bf16.msra.mxu2 %v4386_v20  ;;  %v4098_v20 = vor.u32 %v5482_v16, %v4097_v5  ;;  %v4195_v5 = vld [vmem:[#allocation2 + $0x298] sm:$0xf0] }
  0xeb   :  { %2214 = vmatpush.bf16.msra.mxu3 %v4578_v24  ;;  %v4265_v24 = vld [vmem:[#allocation2 + $0x310] sm:$0xf] }
  0xec   :  { %2176 = vmatpush.bf16.msra.mxu0 %v3978_v27  ;;  %v1950_v31 = vpop.f32.mrf.mxu2  ;;  %v5009_v27 = vld [vmem:[#allocation2 + $0x8e0] sm:$0xf] }
  0xed   :  { %2189 = vmatpush.bf16.msra.mxu1 %v4170_v37  ;;  %v1963_v36 = vpop.f32.mrf.mxu3  ;;  %v3882_v37 = vor.u32 %v5428_v19, %v3881_v18  ;;  %v5692_v18 = vld [vmem:[#allocation2 + $0x864] sm:$0xf0]  ;;  %v5449_v19 = vld [vmem:[#allocation2 + $0xd4] sm:$0xf]  ;;  %v4721_v31 = vld [vmem:[#allocation2 + $0x6a0] sm:$0xf] }
  0xee   :  { %2202 = vmatpush.bf16.msra.mxu2 %v4362_v38  ;;  %v5710_v38 = vld [vmem:[#allocation2 + $0x8f4] sm:$0xf0] }
  0xef   :  { %2215 = vmatpush.bf16.msra.mxu3 %v4554_v41  ;;  %v4266_v41 = vor.u32 %v5524_v26, %v4265_v24  ;;  %v5010_v47 = vor.u32 %v5710_v38, %v5009_v27  ;;  %v5686_v36 = vld [vmem:[#allocation2 + $0x834] sm:$0xf0]  ;;  %v3955_v38 = vld [vmem:[#allocation2 + $0xb8] sm:$0xf0] }
  0xf0   :  { %2177 = vmatpush.bf16.msra.mxu0 %v3954_v48  ;;  %v4054_v48 = vor.u32 %v5467_v39, %v4051_v30  ;;  %v5491_v30 = vld [vmem:[#allocation2 + $0x224] sm:$0xf]  ;;  %v4914_v43 = vor.u32 %v5686_v36, %v4913_v34 }
  0xf1   :  { %2190 = vmatpush.bf16.msra.mxu1 %v4146_v49  ;;  %v4793_v49 = vld [vmem:[#allocation2 + $0x730] sm:$0xf]  ;;  %v5659_v34 = vld [vmem:[#allocation2 + $0x764] sm:$0xf] }
  0xf2   :  { %2203 = vmatpush.bf16.msra.mxu2 %v4338_v50  ;;  %v5656_v50 = vld [vmem:[#allocation2 + $0x744] sm:$0xf0] }
  0xf3   :  { %2216 = vmatpush.bf16.msra.mxu3 %v4530_v54  ;;  %v5461_v54 = vld [vmem:[#allocation2 + $0x134] sm:$0xf]  ;;  %v4794_v58 = vor.u32 %v5656_v50, %v4793_v49 }
  0xf4   :  { %2178 = vmatpush.bf16.msra.mxu0 %v3930_v63  ;;  %v4030_v60 = vor.u32 %v5461_v54, %v4027_v55  ;;  %v4961_v63 = vld [vmem:[#allocation2 + $0x880] sm:$0xf]  ;;  %v5485_v54 = vld [vmem:[#allocation2 + $0x1f4] sm:$0xf]  ;;  %v4123_v55 = vld [vmem:[#allocation2 + $0x208] sm:$0xf0] }
  0xf5   :  { %2191 = vmatpush.bf16.msra.mxu1 %v4122_v2  ;;  %v5698_v2 = vld [vmem:[#allocation2 + $0x894] sm:$0xf0] }
  0xf6   :  { %2204 = vmatpush.bf16.msra.mxu2 %v4314_v3  ;;  %v5455_v3 = vld [vmem:[#allocation2 + $0x104] sm:$0xf]  ;;  %v4962_v16 = vor.u32 %v5698_v2, %v4961_v63  ;;  %v4865_v63 = vld [vmem:[#allocation2 + $0x7c0] sm:$0xf]  ;;  %v4126_v2 = vor.u32 %v5485_v54, %v4123_v55 }
  0xf7   :  { %2217 = vmatpush.bf16.msra.mxu3 %v4506_v6  ;;  %v4770_v6 = vor.u32 %v5650_v62, %v4769_v61  ;;  %v4006_v7 = vor.u32 %v5455_v3, %v4003_v13  ;;  %v4673_v61 = vld [vmem:[#allocation2 + $0x640] sm:$0xf]  ;;  %v5626_v62 = vld [vmem:[#allocation2 + $0x654] sm:$0xf0]  ;;  %v5431_v13 = vld [vmem:[#allocation2 + $0x44] sm:$0xf] }
  0xf8   :  { %2179 = vmatpush.bf16.msra.mxu0 %v3906_v12  ;;  %v4198_v12 = vor.u32 %v5503_v4, %v4195_v5  ;;  %v5674_v3 = vld [vmem:[#allocation2 + $0x7d4] sm:$0xf0]  ;;  %v3907_v4 = vld [vmem:[#allocation2 + $0x58] sm:$0xf0]  ;;  %v5479_v5 = vld [vmem:[#allocation2 + $0x1c4] sm:$0xf] }
  0xf9   :  { %2192 = vmatpush.bf16.msra.mxu1 %v4098_v20  ;;  %v3979_v20 = vld [vmem:[#allocation2 + $0xe8] sm:$0xf0]  ;;  %v4866_v8 = vor.u32 %v5674_v3, %v4865_v63  ;;  %v5551_v55 = vld [vmem:[#allocation2 + $0x404] sm:$0xf] }
  0xfa   :  { %2205 = vmatpush.bf16.msra.mxu2 %v4290_v21  ;;  %v5497_v21 = vld [vmem:[#allocation2 + $0x254] sm:$0xf]  ;;  %v3982_v26 = vor.u32 %v5449_v19, %v3979_v20  ;;  %v5695_v63 = vld [vmem:[#allocation2 + $0x884] sm:$0xf] }
  0xfb   :  { %2218 = vmatpush.bf16.msra.mxu3 %v4482_v25  ;;  %v4938_v25 = vor.u32 %v5692_v18, %v4937_v11  ;;  %v4174_v27 = vor.u32 %v5497_v21, %v4171_v22  ;;  %v3910_v11 = vor.u32 %v5431_v13, %v3907_v4  ;;  %v5668_v18 = vld [vmem:[#allocation2 + $0x7a4] sm:$0xf0]  ;;  %v5425_v19 = vld [vmem:[#allocation2 + $0x14] sm:$0xf]  ;;  %v3883_v22 = vld [vmem:[#allocation2 + $0x28] sm:$0xf0] }
  0xfc   :  { %2180 = vmatpush.bf16.msra.mxu0 %v3882_v37  ;;  %v1974_v24 = vpop.f32.mrf.mxu0  ;;  %v5443_v37 = vld [vmem:[#allocation2 + $0xa4] sm:$0xf]  ;;  %v5545_v4 = vld [vmem:[#allocation2 + $0x3d4] sm:$0xf] }
  0xfd   :  { %2193 = vmatpush.bf16.msra.mxu1 %v4074_v40  ;;  %v1975_v28 = vadd.f32 %v1974_v24, %v6142_v0  ;;  %v1987_v29 = vpop.f32.mrf.mxu1  ;;  %v4147_v40 = vld [vmem:[#allocation2 + $0x238] sm:$0xf0]  ;;  %v3958_v44 = vor.u32 %v5443_v37, %v3955_v38  ;;  %v4697_v0 = vld [vmem:[#allocation2 + $0x670] sm:$0xf]  ;;  %v4075_v24 = vld [vmem:[#allocation2 + $0x1a8] sm:$0xf0]  ;;  %v3886_v37 = vor.u32 %v5425_v19, %v3883_v22 }
  0xfe   :  { %2206 = vmatpush.bf16.msra.mxu2 %v4266_v41  ;;  %v4722_v41 = vor.u32 %v5638_v32, %v4721_v31  ;;  %v4627_v32 = vld [vmem:[#allocation2 + $0x5f8] sm:$0xf0]  ;;  %v5707_v38 = vld [vmem:[#allocation2 + $0x8e4] sm:$0xf] }
  0xff   :  { %2219 = vmatpush.bf16.msra.mxu3 %v4458_v45  ;;  %2181 = vmatmul.bf16.vlgmr.msra.gmra.mxu0 %v6119_v33  ;;  %v1988_v39 = vadd.f32 %v1987_v29, %v1975_v28  ;;  %v4435_v28 = vld [vmem:[#allocation2 + $0x478] sm:$0xf0]  ;;  %v5611_v29 = vld [vmem:[#allocation2 + $0x5e4] sm:$0xf] }
 0x100   :  { %2225 = vmatpush.bf16.msrb.mxu0 %v4818_v46  ;;  %2194 = vmatmul.bf16.vlgmr.msra.gmra.mxu1 %v6122_v35  ;;  %v5632_v46 = vld [vmem:[#allocation2 + $0x684] sm:$0xf0]  ;;  %v4339_v22 = vld [vmem:[#allocation2 + $0x3b8] sm:$0xf0] }
 0x101   :  { %2238 = vmatpush.bf16.msrb.mxu1 %v5010_v47  ;;  %2207 = vmatmul.bf16.vlgmr.msra.gmra.mxu2 %v6130_v9  ;;  %v4889_v47 = vld [vmem:[#allocation2 + $0x7f0] sm:$0xf]  ;;  %v4698_v57 = vor.u32 %v5632_v46, %v4697_v0  ;;  %v5605_v0 = vld [vmem:[#allocation2 + $0x5b4] sm:$0xf] }
 0x102   :  { %2251 = vmatpush.bf16.msrb.mxu2 %v4054_v48  ;;  %2220 = vmatmul.bf16.vlgmr.msra.gmra.mxu3 %v6136_v15  ;;  %v4150_v48 = vor.u32 %v5491_v30, %v4147_v40 }
 0x103   :  { %2264 = vmatpush.bf16.msrb.mxu3 %v4246_v52  ;;  %v5437_v52 = vld [vmem:[#allocation2 + $0x74] sm:$0xf] }
 0x104   :  { %2226 = vmatpush.bf16.msrb.mxu0 %v4794_v58  ;;  %v2000_v45 = vpop.f32.mrf.mxu2  ;;  %v1976_v58 = vpop.f32.mrf.mxu0 }
 0x105   :  { %2239 = vmatpush.bf16.msrb.mxu1 %v4986_v59  ;;  %v2001_v49 = vadd.f32 %v2000_v45, %v1988_v39  ;;  %v2013_v50 = vpop.f32.mrf.mxu3  ;;  %v4890_v59 = vor.u32 %v5680_v51, %v4889_v47  ;;  %v5011_v39 = vld [vmem:[#allocation2 + $0x8f8] sm:$0xf0]  ;;  %v4411_v45 = vld [vmem:[#allocation2 + $0x448] sm:$0xf0]  ;;  %v5599_v58 = vld [vmem:[#allocation2 + $0x584] sm:$0xf] }
 0x106   :  { %2252 = vmatpush.bf16.msrb.mxu2 %v4030_v60  ;;  %v3934_v60 = vor.u32 %v5437_v52, %v3931_v53  ;;  %v5014_v46 = vor.u32 %v5707_v38, %v5011_v39  ;;  %v4603_v47 = vld [vmem:[#allocation2 + $0x5c8] sm:$0xf0]  ;;  %v5581_v38 = vld [vmem:[#allocation2 + $0x4f4] sm:$0xf] }
 0x107   :  { %2265 = vmatpush.bf16.msrb.mxu3 %v4222_v1  ;;  %v6149_v56 = vadd.f32 %v2013_v50, %v2001_v49  ;;  %v1989_v1 = vpop.f32.mrf.mxu1  ;;  %v4795_v49 = vld [vmem:[#allocation2 + $0x748] sm:$0xf0]  ;;  %v5701_v50 = vld [vmem:[#allocation2 + $0x8b4] sm:$0xf]  ;;  %v4606_v53 = vor.u32 %v5605_v0, %v4603_v47 }
 0x108   :  { %2227 = vmatpush.bf16.msrb.mxu0 %v4770_v6  ;;  %v4099_v6 = vld [vmem:[#allocation2 + $0x1d8] sm:$0xf0]  ;;  %v4987_v51 = vld [vmem:[#allocation2 + $0x8c8] sm:$0xf0] }
 0x109   :  { %2240 = vmatpush.bf16.msrb.mxu1 %v4962_v16  ;;  %v4674_v16 = vor.u32 %v5626_v62, %v4673_v61  ;;  %v4102_v21 = vor.u32 %v5479_v5, %v4099_v6  ;;  %v5647_v61 = vld [vmem:[#allocation2 + $0x704] sm:$0xf]  ;;  %v4771_v62 = vld [vmem:[#allocation2 + $0x718] sm:$0xf0]  ;;  %v4363_v5 = vld [vmem:[#allocation2 + $0x3e8] sm:$0xf0] }
 0x10a   :  { %2253 = vmatpush.bf16.msrb.mxu2 %v4006_v7  ;;  %v4649_v7 = vld [vmem:[#allocation2 + $0x610] sm:$0xf]  ;;  %v4963_v1 = vld [vmem:[#allocation2 + $0x898] sm:$0xf0]  ;;  %v4774_v13 = vor.u32 %v5647_v61, %v4771_v62  ;;  %v5593_v6 = vld [vmem:[#allocation2 + $0x554] sm:$0xf] }
 0x10b   :  { %2266 = vmatpush.bf16.msrb.mxu3 %v4198_v12  ;;  %v4841_v12 = vld [vmem:[#allocation2 + $0x790] sm:$0xf]  ;;  %v4650_v31 = vor.u32 %v5620_v17, %v4649_v7  ;;  %v4555_v7 = vld [vmem:[#allocation2 + $0x568] sm:$0xf0]  ;;  %v5641_v17 = vld [vmem:[#allocation2 + $0x6d4] sm:$0xf] }
 0x10c   :  { %2228 = vmatpush.bf16.msrb.mxu0 %v4746_v23  ;;  %v2002_v20 = vpop.f32.mrf.mxu2  ;;  %v5473_v23 = vld [vmem:[#allocation2 + $0x194] sm:$0xf]  ;;  %v4842_v36 = vor.u32 %v5668_v18, %v4841_v12  ;;  %v4366_v18 = vor.u32 %v5545_v4, %v4363_v5  ;;  %v4459_v4 = vld [vmem:[#allocation2 + $0x4a8] sm:$0xf0] }
 0x10d   :  { %2241 = vmatpush.bf16.msrb.mxu1 %v4938_v25  ;;  %v2015_v25 = vpop.f32.mrf.mxu3  ;;  %v4078_v30 = vor.u32 %v5473_v23, %v4075_v24  ;;  %v5587_v23 = vld [vmem:[#allocation2 + $0x524] sm:$0xf]  ;;  %v5617_v5 = vld [vmem:[#allocation2 + $0x614] sm:$0xf] }
 0x10e   :  { %2254 = vmatpush.bf16.msrb.mxu2 %v3982_v26  ;;  %v5563_v26 = vld [vmem:[#allocation2 + $0x464] sm:$0xf]  ;;  %v4531_v25 = vld [vmem:[#allocation2 + $0x538] sm:$0xf0] }
 0x10f   :  { %2267 = vmatpush.bf16.msrb.mxu3 %v4174_v27  ;;  %v4819_v27 = vld [vmem:[#allocation2 + $0x778] sm:$0xf0]  ;;  %v4438_v40 = vor.u32 %v5563_v26, %v4435_v28  ;;  %v5635_v26 = vld [vmem:[#allocation2 + $0x6a4] sm:$0xf] }
 0x110   :  { %2229 = vmatpush.bf16.msrb.mxu0 %v4722_v41  ;;  %v4630_v41 = vor.u32 %v5611_v29, %v4627_v32  ;;  %v4723_v28 = vld [vmem:[#allocation2 + $0x6b8] sm:$0xf0]  ;;  %v5683_v29 = vld [vmem:[#allocation2 + $0x824] sm:$0xf] }
 0x111   :  { %2242 = vmatpush.bf16.msrb.mxu1 %v4914_v43  ;;  %v4822_v43 = vor.u32 %v5659_v34, %v4819_v27  ;;  %v4534_v34 = vor.u32 %v5587_v23, %v4531_v25  ;;  %v4726_v27 = vor.u32 %v5635_v26, %v4723_v28  ;;  %v6176_v23 = vld [vmem:[%s6884_s4 + $0x178] sm:$0xff]  ;;  %v6196_v25 = vld [vmem:[%s6884_s4 + $0x170] sm:$0xff] }
 0x112   :  { %2255 = vmatpush.bf16.msrb.mxu2 %v3958_v44  ;;  %v5557_v44 = vld [vmem:[#allocation2 + $0x434] sm:$0xf]  ;;  %v6226_v28 = vld [vmem:[%s6884_s4 + $0x1f0] sm:$0xff] }
 0x113   :  { %2268 = vmatpush.bf16.msrb.mxu3 %v4150_v48  ;;  %v5653_v48 = vld [vmem:[#allocation2 + $0x734] sm:$0xf]  ;;  %v4414_v52 = vor.u32 %v5557_v44, %v4411_v45  ;;  %v4891_v45 = vld [vmem:[#allocation2 + $0x808] sm:$0xf0]  ;;  %6903 = vst [vmem:[#allocation20_spill] sm:$0xff] %v6226_v28 }
 0x114   :  { %2230 = vmatpush.bf16.msrb.mxu0 %v4698_v57  ;;  %v4798_v54 = vor.u32 %v5653_v48, %v4795_v49  ;;  %v4387_v57 = vld [vmem:[#allocation2 + $0x418] sm:$0xf0]  ;;  %v5677_v44 = vld [vmem:[#allocation2 + $0x7f4] sm:$0xf] }
 0x115   :  { %2243 = vmatpush.bf16.msrb.mxu1 %v4890_v59  ;;  %v4990_v59 = vor.u32 %v5701_v50, %v4987_v51  ;;  %v5527_v51 = vld [vmem:[#allocation2 + $0x344] sm:$0xf]  ;;  %v6201_v26 = vld [vmem:[%s6884_s4 + $0x1f8] sm:$0xff] }
 0x116   :  { %2256 = vmatpush.bf16.msrb.mxu2 %v3934_v60  ;;  %v4579_v60 = vld [vmem:[#allocation2 + $0x598] sm:$0xf0]  ;;  %6902 = vst [vmem:[#allocation19_spill] sm:$0xff] %v6201_v26 }
 0x117   :  { %2269 = vmatpush.bf16.msrb.mxu3 %v4126_v2  ;;  %v4390_v2 = vor.u32 %v5551_v55, %v4387_v57  ;;  %v4582_v3 = vor.u32 %v5599_v58, %v4579_v60  ;;  %v4483_v55 = vld [vmem:[#allocation2 + $0x4d8] sm:$0xf0]  ;;  %v5623_v57 = vld [vmem:[#allocation2 + $0x644] sm:$0xf] }
 0x118   :  { %2231 = vmatpush.bf16.msrb.mxu0 %v4674_v16  ;;  %v4966_v16 = vor.u32 %v5695_v63, %v4963_v1  ;;  %v4675_v58 = vld [vmem:[#allocation2 + $0x658] sm:$0xf0]  ;;  %v5521_v1 = vld [vmem:[#allocation2 + $0x314] sm:$0xf] }
 0x119   :  { %2244 = vmatpush.bf16.msrb.mxu1 %v4866_v8  ;;  %v4747_v8 = vld [vmem:[#allocation2 + $0x6e8] sm:$0xf0]  ;;  %v4867_v60 = vld [vmem:[#allocation2 + $0x7d8] sm:$0xf0]  ;;  %v4678_v63 = vor.u32 %v5623_v57, %v4675_v58 }
 0x11a   :  { %2257 = vmatpush.bf16.msrb.mxu2 %v3910_v11  ;;  %v5689_v11 = vld [vmem:[#allocation2 + $0x854] sm:$0xf]  ;;  %v4750_v20 = vor.u32 %v5641_v17, %v4747_v8  ;;  %v4843_v17 = vld [vmem:[#allocation2 + $0x7a8] sm:$0xf0]  ;;  %v6336_v57 = vld [vmem:[%s6884_s4 + $0x40] sm:$0xff] }
 0x11b   :  { %2270 = vmatpush.bf16.msrb.mxu3 %v4102_v21  ;;  %v5539_v21 = vld [vmem:[#allocation2 + $0x3a4] sm:$0xf]  ;;  %v6341_v58 = vld [vmem:[%s6884_s4 + $0xc0] sm:$0xff] }
 0x11c   :  { %2232 = vmatpush.bf16.msrb.mxu0 %v4650_v31  ;;  %v6155_v12 = vpop.f32.mrf.mxu0  ;;  %v4915_v31 = vld [vmem:[#allocation2 + $0x838] sm:$0xf0]  ;;  %v4342_v32 = vor.u32 %v5539_v21, %v4339_v22  ;;  %v6166_v21 = vld [vmem:[%s6884_s4 + $0x78] sm:$0xff] }
 0x11d   :  { %2245 = vmatpush.bf16.msrb.mxu1 %v4842_v36  ;;  %v6157_v19 = vpop.f32.mrf.mxu1  ;;  %v5533_v36 = vld [vmem:[#allocation2 + $0x374] sm:$0xf]  ;;  %v4918_v39 = vor.u32 %v5683_v29, %v4915_v31  ;;  %v6232_v29 = vld [vmem:[%s6884_s4 + $0x60] sm:$0xff] }
 0x11e   :  { %2258 = vmatpush.bf16.msrb.mxu2 %v3886_v37  ;;  %v4315_v37 = vld [vmem:[#allocation2 + $0x388] sm:$0xf0]  ;;  %v6171_v22 = vld [vmem:[%s6884_s4 + $0xf8] sm:$0xff]  ;;  %v6237_v31 = vld [vmem:[%s6884_s4 + $0xe0] sm:$0xff] }
 0x11f   :  { %2271 = vmatpush.bf16.msrb.mxu3 %v4078_v30  ;;  %2233 = vmatmul.bf16.vlgmr.msrb.gmra.mxu0 %v6127_v14  ;;  %v4507_v30 = vld [vmem:[#allocation2 + $0x508] sm:$0xf0]  ;;  %v4318_v47 = vor.u32 %v5533_v36, %v4315_v37  ;;  %v6261_v36 = vld [vmem:[%s6884_s4 + $0xd8] sm:$0xff] }
 0x120   :  { %2277 = vmatpush.bf16.msra.mxu0 %v4438_v40  ;;  %2246 = vmatmul.bf16.vlgmr.msrb.gmra.mxu1 %v6133_v10  ;;  %v5629_v40 = vld [vmem:[#allocation2 + $0x674] sm:$0xf]  ;;  %v4510_v49 = vor.u32 %v5581_v38, %v4507_v30  ;;  %v2330_v38 = vsel %vm2329_vm0, %v6140_v42, 0.0 }
 0x121   :  { %2290 = vmatpush.bf16.msra.mxu1 %v4630_v41  ;;  %2259 = vmatmul.bf16.vlgmr.msrb.gmra.mxu2 %v6119_v33  ;;  %v4939_v33 = vld [vmem:[#allocation2 + $0x868] sm:$0xf0] }
 0x122   :  { %2303 = vmatpush.bf16.msra.mxu2 %v4822_v43  ;;  %2272 = vmatmul.bf16.vlgmr.msrb.gmra.mxu3 %v6122_v35  ;;  %v4558_v35 = vor.u32 %v5593_v6, %v4555_v7  ;;  %v4942_v24 = vor.u32 %v5689_v11, %v4939_v33  ;;  %v4699_v41 = vld [vmem:[#allocation2 + $0x688] sm:$0xf0]  ;;  %v5665_v7 = vld [vmem:[#allocation2 + $0x794] sm:$0xf] }
 0x123   :  { %2316 = vmatpush.bf16.msra.mxu3 %v5014_v46  ;;  %v4702_v50 = vor.u32 %v5629_v40, %v4699_v41  ;;  %v4651_v6 = vld [vmem:[#allocation2 + $0x628] sm:$0xf0]  ;;  %v6276_v41 = vld [vmem:[%s6884_s4 + $0x1e0] sm:$0xff] }
 0x124   :  { %2278 = vmatpush.bf16.msra.mxu0 %v4414_v52  ;;  %v2052_v43 = vpop.f32.mrf.mxu2  ;;  %v2028_v0 = vpop.f32.mrf.mxu0  ;;  %v4291_v52 = vld [vmem:[#allocation2 + $0x358] sm:$0xf0]  ;;  %6905 = vst [vmem:[#allocation22_spill] sm:$0xff] %v6276_v41 }
 0x125   :  { %2291 = vmatpush.bf16.msra.mxu1 %v4606_v53  ;;  %v6159_v46 = vpop.f32.mrf.mxu3  ;;  %v2041_v48 = vpop.f32.mrf.mxu1  ;;  %v5575_v53 = vld [vmem:[#allocation2 + $0x4c4] sm:$0xf]  ;;  %v4294_v61 = vor.u32 %v5527_v51, %v4291_v52  ;;  %v6297_v0 = vld [vmem:[%s6884_s4 + $0x150] sm:$0xff] }
 0x126   :  { %2304 = vmatpush.bf16.msra.mxu2 %v4798_v54  ;;  %v4894_v54 = vor.u32 %v5677_v44, %v4891_v45  ;;  %v4486_v62 = vor.u32 %v5575_v53, %v4483_v55  ;;  %v6284_v44 = vld [vmem:[%s6884_s4 + $0x50] sm:$0xff]  ;;  %v2331_v48 = vrot.slane %v2330_v38, 4  ;;  %v6323_v52 = vld [vmem:[%s6884_s4 + $0x148] sm:$0xff] }
 0x127   :  { %2317 = vmatpush.bf16.msra.mxu3 %v4990_v59  ;;  %v5671_v59 = vld [vmem:[#allocation2 + $0x7c4] sm:$0xf]  ;;  %v6289_v45 = vld [vmem:[%s6884_s4 + $0xd0] sm:$0xff] }
 0x128   :  { %2279 = vmatpush.bf16.msra.mxu0 %v4390_v2  ;;  %v4267_v2 = vld [vmem:[#allocation2 + $0x328] sm:$0xf0] }
 0x129   :  { %2292 = vmatpush.bf16.msra.mxu1 %v4582_v3  ;;  %v5569_v3 = vld [vmem:[#allocation2 + $0x494] sm:$0xf]  ;;  %v4270_v11 = vor.u32 %v5521_v1, %v4267_v2 }
 0x12a   :  { %2305 = vmatpush.bf16.msra.mxu2 %v4774_v13  ;;  %v4870_v13 = vor.u32 %v5671_v59, %v4867_v60  ;;  %v4462_v33 = vor.u32 %v5569_v3, %v4459_v4  ;;  %v6349_v59 = vld [vmem:[%s6884_s4 + $0x140] sm:$0xff]  ;;  %v6354_v60 = vld [vmem:[%s6884_s4 + $0x1c8] sm:$0xff]  ;;  %v6367_v1 = vld [vmem:[%s6884_s4 + $0xb8] sm:$0xff] }
 0x12b   :  { %2318 = vmatpush.bf16.msra.mxu3 %v4966_v16  ;;  %6908 = vst [vmem:[#allocation25_spill] sm:$0xff] %v6354_v60 }
 0x12c   :  { %2280 = vmatpush.bf16.msra.mxu0 %v4366_v18  ;;  %v2054_v16 = vpop.f32.mrf.mxu2  ;;  %v4654_v18 = vor.u32 %v5617_v5, %v4651_v6  ;;  %v6377_v5 = vld [vmem:[%s6884_s4 + $0x138] sm:$0xff]  ;;  %v6382_v6 = vld [vmem:[%s6884_s4 + $0x1c0] sm:$0xff] }
 0x12d   :  { %2293 = vmatpush.bf16.msra.mxu1 %v4558_v35  ;;  %v2067_v8 = vpop.f32.mrf.mxu3  ;;  %v2040_v35 = vadd.f32 %v6157_v19, %v6155_v12  ;;  %v6184_v19 = vld [vmem:[%s6884_s4 + $0x70] sm:$0xff]  ;;  %6909 = vst [vmem:[#allocation26_spill] sm:$0xff] %v6382_v6 }
 0x12e   :  { %2306 = vmatpush.bf16.msra.mxu2 %v4750_v20  ;;  %v4846_v20 = vor.u32 %v5665_v7, %v4843_v17  ;;  %v6388_v7 = vld [vmem:[%s6884_s4 + $0x30] sm:$0xff] }
 0x12f   :  { %2319 = vmatpush.bf16.msra.mxu3 %v4942_v24  ;;  %v2053_v12 = vadd.f32 %v2052_v43, %v2040_v35  ;;  %v6189_v24 = vld [vmem:[%s6884_s4 + $0xf0] sm:$0xff]  ;;  %v2337_v43 = vsel %vm2329_vm0, %v6149_v56, 0.0  ;;  %v6417_v35 = vld [vmem:[%s6884_s4 + $0xa8] sm:$0xff] }
 0x130   :  { %2281 = vmatpush.bf16.msra.mxu0 %v4342_v32  ;;  %v6245_v32 = vld [vmem:[%s6884_s4 + $0x160] sm:$0xff]  ;;  %v2338_v51 = vrot.slane %v2337_v43, 4  ;;  %v6393_v17 = vld [vmem:[%s6884_s4 + $0xb0] sm:$0xff] }
 0x131   :  { %2294 = vmatpush.bf16.msra.mxu1 %v4534_v34  ;;  %v6250_v34 = vld [vmem:[%s6884_s4 + $0x1e8] sm:$0xff]  ;;  %v6401_v8 = vld [vmem:[%s6884_s4 + $0x130] sm:$0xff] }
 0x132   :  { %2307 = vmatpush.bf16.msra.mxu2 %v4726_v27  ;;  %6904 = vst [vmem:[#allocation21_spill] sm:$0xff] %v6250_v34  ;;  %v6256_v27 = vld [vmem:[%s6884_s4 + $0x58] sm:$0xff] }
 0x133   :  { %2320 = vmatpush.bf16.msra.mxu3 %v4918_v39  ;;  %v6271_v39 = vld [vmem:[%s6884_s4 + $0x158] sm:$0xff] }
 0x134   :  { %2282 = vmatpush.bf16.msra.mxu0 %v4318_v47  ;;  %v6304_v47 = vld [vmem:[%s6884_s4 + $0x1d8] sm:$0xff] }
 0x135   :  { %2295 = vmatpush.bf16.msra.mxu1 %v4510_v49  ;;  %6906 = vst [vmem:[#allocation23_spill] sm:$0xff] %v6304_v47  ;;  %v6310_v49 = vld [vmem:[%s6884_s4 + $0x48] sm:$0xff] }
 0x136   :  { %2308 = vmatpush.bf16.msra.mxu2 %v4702_v50  ;;  %v6315_v50 = vld [vmem:[%s6884_s4 + $0xc8] sm:$0xff] }
 0x137   :  { %2321 = vmatpush.bf16.msra.mxu3 %v4894_v54  ;;  %v6330_v54 = vld [vmem:[%s6884_s4 + $0x1d0] sm:$0xff] }
 0x138   :  { %2283 = vmatpush.bf16.msra.mxu0 %v4294_v61  ;;  %6907 = vst [vmem:[#allocation24_spill] sm:$0xff] %v6330_v54 }
 0x139   :  { %2296 = vmatpush.bf16.msra.mxu1 %v4486_v62  ;;  %v2332_v62 = vadd.f32 %v2331_v48, %v2330_v38  ;;  %v6436_v38 = vld [vmem:[%s6884_s4 + $0x20] sm:$0xff] }
 0x13a   :  { %2309 = vmatpush.bf16.msra.mxu2 %v4678_v63  ;;  %v6362_v63 = vld [vmem:[%s6884_s4 + $0x38] sm:$0xff] }
 0x13b   :  { %2322 = vmatpush.bf16.msra.mxu3 %v4870_v13  ;;  %v2339_v13 = vadd.f32 %v2338_v51, %v2337_v43  ;;  %v6454_v43 = vld [vmem:[%s6884_s4 + $0x1a8] sm:$0xff] }
 0x13c   :  { %2284 = vmatpush.bf16.msra.mxu0 %v4270_v11  ;;  %v2078_v37 = vpop.f32.mrf.mxu0  ;;  %v6406_v11 = vld [vmem:[%s6884_s4 + $0x1b8] sm:$0xff]  ;;  %6912 = vst [vmem:[#allocation29_spill] sm:$0xff] %v6454_v43 }
 0x13d   :  { %2297 = vmatpush.bf16.msra.mxu1 %v4462_v33  ;;  %v2091_v40 = vpop.f32.mrf.mxu1  ;;  %6910 = vst [vmem:[#allocation27_spill] sm:$0xff] %v6406_v11  ;;  %v2333_v33 = vrot.slane %v2332_v62, 2 }
 0x13e   :  { %2310 = vmatpush.bf16.msra.mxu2 %v4654_v18  ;;  %v6412_v18 = vld [vmem:[%s6884_s4 + $0x28] sm:$0xff] }
 0x13f   :  { %2323 = vmatpush.bf16.msra.mxu3 %v4846_v20  ;;  %2285 = vmatmul.bf16.vlgmr.msra.gmra.mxu0 %v6130_v9  ;;  %v6208_v9 = vld [vmem:[%s6884_s4 + $0x68] sm:$0xff]  ;;  %v2340_v20 = vrot.slane %v2339_v13, 2  ;;  %v2334_v51 = vadd.f32 %v2333_v33, %v2332_v62  ;;  %v6473_v62 = vld [vmem:[%s6884_s4 + $0x118] sm:$0xff]  ;;  %v6478_v33 = vld [vmem:[%s6884_s4 + $0x1a0] sm:$0xff] }
 0x140   :  { %2516 = vmatpush.msrb.mxu0 %v6166_v21  ;;  %2298 = vmatmul.bf16.vlgmr.msra.gmra.mxu1 %v6136_v15  ;;  %v6213_v15 = vld [vmem:[%s6884_s4 + $0xe8] sm:$0xff]  ;;  %6913 = vst [vmem:[#allocation30_spill] sm:$0xff] %v6478_v33 }
 0x141   :  { %2536 = vmatpush.msrb.mxu1 %v6171_v22  ;;  %2311 = vmatmul.bf16.vlgmr.msra.gmra.mxu2 %v6127_v14  ;;  %v6220_v14 = vld [vmem:[%s6884_s4 + $0x168] sm:$0xff] }
 0x142   :  { %2556 = vmatpush.msrb.mxu2 %v6176_v23  ;;  %2324 = vmatmul.bf16.vlgmr.msra.gmra.mxu3 %v6133_v10  ;;  %v2066_v10 = vadd.f32 %v6159_v46, %v2053_v12 }
 0x143   :  { %2517 = vmatpush.msrb.mxu0 %v6184_v19  ;;  %2537 = vmatpush.msrb.mxu1 %v6189_v24 }
 0x144   :  { %2557 = vmatpush.msrb.mxu2 %v6196_v25  ;;  %2576 = vmatpush.msrb.mxu3 %v6201_v26  ;;  %v2079_v30 = vadd.f32 %v2078_v37, %v2066_v10  ;;  %v6356_v61 = vpop.f32.mrf.mxu2  ;;  %v2080_v3 = vpop.f32.mrf.mxu0  ;;  %v6425_v10 = vld [vmem:[%s6884_s4 + $0x128] sm:$0xff]  ;;  %v6430_v37 = vld [vmem:[%s6884_s4 + $0x1b0] sm:$0xff] }
 0x145   :  { %2518 = vmatpush.msrb.mxu0 %v6208_v9  ;;  %2538 = vmatpush.msrb.mxu1 %v6213_v15  ;;  %v6370_v2 = vpop.f32.mrf.mxu3  ;;  %v2093_v16 = vpop.f32.mrf.mxu1  ;;  %6911 = vst [vmem:[#allocation28_spill] sm:$0xff] %v6430_v37  ;;  %v6554_v26 = vld [vmem:[%s6884_s4 + $0x188] sm:$0xff] }
 0x146   :  { %2558 = vmatpush.msrb.mxu2 %v6220_v14  ;;  %2577 = vmatpush.msrb.mxu3 %v6226_v28  ;;  %v6299_v46 = vadd.f32 %v2091_v40, %v2079_v30  ;;  %v6441_v30 = vld [vmem:[%s6884_s4 + $0xa0] sm:$0xff]  ;;  %v2341_v16 = vadd.f32 %v2340_v20, %v2339_v13  ;;  %v6484_v13 = vld [vmem:[%s6884_s4 + $0x10] sm:$0xff] }
 0x147   :  { %2519 = vmatpush.msrb.mxu0 %v6232_v29  ;;  %2539 = vmatpush.msrb.mxu1 %v6237_v31  ;;  %v6449_v40 = vld [vmem:[%s6884_s4 + $0x120] sm:$0xff]  ;;  %v6497_v20 = vld [vmem:[%s6884_s4 + $0x110] sm:$0xff] }
 0x148   :  { %2559 = vmatpush.msrb.mxu2 %v6245_v32  ;;  %2578 = vmatpush.msrb.mxu3 %v6250_v34  ;;  %v2344_v53 = vsel %vm2329_vm0, %v6299_v46, 0.0 }
 0x149   :  { %2520 = vmatpush.msrb.mxu0 %v6256_v27  ;;  %2540 = vmatpush.msrb.mxu1 %v6261_v36  ;;  %v2345_v55 = vrot.slane %v2344_v53, 4 }
 0x14a   :  { %2560 = vmatpush.msrb.mxu2 %v6271_v39  ;;  %2579 = vmatpush.msrb.mxu3 %v6276_v41  ;;  %v6545_v41 = vld [vmem:[%s6884_s4 + $0x100] sm:$0xff] }
 0x14b   :  { %2521 = vmatpush.msrb.mxu0 %v6284_v44  ;;  %2541 = vmatpush.msrb.mxu1 %v6289_v45  ;;  %v2346_v4 = vadd.f32 %v2345_v55, %v2344_v53  ;;  %v6460_v53 = vld [vmem:[%s6884_s4 + $0x18] sm:$0xff] }
 0x14c   :  { %2561 = vmatpush.msrb.mxu2 %v6297_v0  ;;  %2580 = vmatpush.msrb.mxu3 %v6304_v47  ;;  %v2106_v48 = vpop.f32.mrf.mxu2  ;;  %v6465_v55 = vld [vmem:[%s6884_s4 + $0x98] sm:$0xff]  ;;  %v6537_v47 = vld [vmem:[%s6884_s4 + $0x80] sm:$0xff] }
 0x14d   :  { %2522 = vmatpush.msrb.mxu0 %v6310_v49  ;;  %2542 = vmatpush.msrb.mxu1 %v6315_v50  ;;  %v2347_v12 = vrot.slane %v2346_v4, 2  ;;  %v2119_v3 = vpop.f32.mrf.mxu3  ;;  %v6508_v48 = vld [vmem:[%s6884_s4 + $0x8] sm:$0xff] }
 0x14e   :  { %2562 = vmatpush.msrb.mxu2 %v6323_v52  ;;  %2581 = vmatpush.msrb.mxu3 %v6330_v54  ;;  %v6513_v3 = vld [vmem:[%s6884_s4 + $0x88] sm:$0xff]  ;;  %v6526_v54 = vld [vmem:[%s6884_s4 + $0x190] sm:$0xff] }
 0x14f   :  { %2523 = vmatpush.msrb.mxu0 %v6336_v57  ;;  %2543 = vmatpush.msrb.mxu1 %v6341_v58 }
 0x150   :  { %2563 = vmatpush.msrb.mxu2 %v6349_v59  ;;  %2582 = vmatpush.msrb.mxu3 %v6354_v60 }
 0x151   :  { %2524 = vmatpush.msrb.mxu0 %v6362_v63  ;;  %2544 = vmatpush.msrb.mxu1 %v6367_v1 }
 0x152   :  { %2564 = vmatpush.msrb.mxu2 %v6377_v5  ;;  %2583 = vmatpush.msrb.mxu3 %v6382_v6  ;;  %v2342_v6 = vrot.slane %v2341_v16, 1 }
 0x153   :  { %2525 = vmatpush.msrb.mxu0 %v6388_v7  ;;  %2545 = vmatpush.msrb.mxu1 %v6393_v17 }
 0x154   :  { %2565 = vmatpush.msrb.mxu2 %v6401_v8  ;;  %2584 = vmatpush.msrb.mxu3 %v6406_v11  ;;  %v2348_v11 = vadd.f32 %v2347_v12, %v2346_v4  ;;  %v6489_v4 = vld [vmem:[%s6884_s4 + $0x90] sm:$0xff]  ;;  %v6502_v12 = vld [vmem:[%s6884_s4 + $0x198] sm:$0xff]  ;;  %v2343_v28 = vadd.f32 %v2342_v6, %v2341_v16  ;;  %v6565_v6 = vld [vmem:[%s6884_s4 + $0x180] sm:$0xff] }
 0x155   :  { %2526 = vmatpush.msrb.mxu0 %v6412_v18  ;;  %2546 = vmatpush.msrb.mxu1 %v6417_v35  ;;  %6914 = vst [vmem:[#allocation31_spill] sm:$0xff] %v6502_v12 }
 0x156   :  { %2566 = vmatpush.msrb.mxu2 %v6425_v10  ;;  %2585 = vmatpush.msrb.mxu3 %v6430_v37  ;;  %v6521_v37 = vld [vmem:[%s6884_s4 + $0x108] sm:$0xff]  ;;  %v2349_v60 = vrot.slane %v2348_v11, 1 }
 0x157   :  { %2527 = vmatpush.msrb.mxu0 %v6436_v38  ;;  %2547 = vmatpush.msrb.mxu1 %v6441_v30 }
 0x158   :  { %2567 = vmatpush.msrb.mxu2 %v6449_v40  ;;  %2586 = vmatpush.msrb.mxu3 %v6454_v43  ;;  %v2335_v43 = vrot.slane %v2334_v51, 1 }
 0x159   :  { %2528 = vmatpush.msrb.mxu0 %v6460_v53  ;;  %2548 = vmatpush.msrb.mxu1 %v6465_v55 }
 0x15a   :  { %2568 = vmatpush.msrb.mxu2 %v6473_v62  ;;  %2587 = vmatpush.msrb.mxu3 %v6478_v33  ;;  %v6532_v33 = vld [vmem:[%s6884_s4] sm:$0xff]  ;;  %v2336_v34 = vadd.f32 %v2335_v43, %v2334_v51  ;;  %v6560_v43 = vld [vmem:[%s6884_s4 + $0x278] sm:$0xff]  ;;  %v2373_v51 = vmul.f32 %v6149_v56, %v6149_v56 }
 0x15b   :  { %2529 = vmatpush.msrb.mxu0 %v6484_v13  ;;  %2549 = vmatpush.msrb.mxu1 %v6489_v4 }
 0x15c   :  { %2569 = vmatpush.msrb.mxu2 %v6497_v20  ;;  %2588 = vmatpush.msrb.mxu3 %v6502_v12  ;;  %v2350_v12 = vadd.f32 %v2349_v60, %v2348_v11  ;;  %v2118_v60 = vadd.f32 %v6370_v2, %v6356_v61  ;;  %v2130_v61 = vpop.f32.mrf.mxu0 }
 0x15d   :  { %2530 = vmatpush.msrb.mxu0 %v6508_v48  ;;  %2550 = vmatpush.msrb.mxu1 %v6513_v3  ;;  %v2143_v11 = vpop.f32.mrf.mxu1 }
 0x15e   :  { %2570 = vmatpush.msrb.mxu2 %v6521_v37  ;;  %2589 = vmatpush.msrb.mxu3 %v6526_v54  ;;  %v2131_v2 = vadd.f32 %v2130_v61, %v2118_v60 }
 0x15f   :  { %2531 = vmatpush.msrb.mxu0 %v6532_v33  ;;  %2551 = vmatpush.msrb.mxu1 %v6537_v47 }
 0x160   :  { %2571 = vmatpush.msrb.mxu2 %v6545_v41  ;;  %2532 = vmatmul.f32.vlgmr.msrb.gmra.mxu0 %v2336_v34  ;;  %v6574_v34 = vld [vmem:[%s6884_s4 + $0x270] sm:$0xff]  ;;  %v2144_v16 = vadd.f32 %v2143_v11, %v2131_v2 }
 0x161   :  { %2552 = vmatmul.f32.vlgmr.msrb.gmra.mxu1 %v2343_v28  ;;  %2572 = vmatmul.f32.vlgmr.msrb.gmra.mxu2 %v2350_v12  ;;  %v2372_v28 = vmul.f32 %v6140_v42, %v6140_v42 }
 0x162   :  { %2636 = vmatpush.msra.mxu2 %v6166_v21  ;;  %2590 = vmatpush.msrb.mxu3 %v6554_v26  ;;  %v6584_v21 = vld [vmem:[%s6884_s4 + $0x268] sm:$0xff] }
 0x163   :  { %2596 = vmatpush.msra.mxu0 %v6560_v43 }
 0x164   :  { %2637 = vmatpush.msra.mxu2 %v6184_v19  ;;  %2591 = vmatpush.msrb.mxu3 %v6565_v6  ;;  %v6592_v19 = vld [vmem:[%s6884_s4 + $0x260] sm:$0xff]  ;;  %v2156_v12 = vpop.f32.mrf.mxu2 }
 0x165   :  { %2597 = vmatpush.msra.mxu0 %v6574_v34  ;;  %v2169_v61 = vpop.f32.mrf.mxu3 }
 0x166   :  { %2656 = vmatpush.msra.mxu3 %v6171_v22  ;;  %2638 = vmatpush.msra.mxu2 %v6208_v9  ;;  %v2378_v22 = vsel %vm2329_vm0, %v2372_v28, 0.0  ;;  %v6603_v9 = vld [vmem:[%s6884_s4 + $0x258] sm:$0xff]  ;;  %v2157_v28 = vadd.f32 %v2156_v12, %v2144_v16 }
 0x167   :  { %2598 = vmatpush.msra.mxu0 %v6584_v21  ;;  %v2379_v60 = vrot.slane %v2378_v22, 4 }
 0x168   :  { %2657 = vmatpush.msra.mxu3 %v6189_v24  ;;  %2639 = vmatpush.msra.mxu2 %v6232_v29  ;;  %v6611_v24 = vld [vmem:[%s6884_s4 + $0x250] sm:$0xff]  ;;  %v2385_v29 = vsel %vm2329_vm0, %v2373_v51, 0.0  ;;  %v6627_v2 = vadd.f32 %v2169_v61, %v2157_v28  ;;  %v6635_v51 = vld [vmem:[%s6884_s4 + $0x240] sm:$0xff] }
 0x169   :  { %2599 = vmatpush.msra.mxu0 %v6592_v19  ;;  %v2386_v11 = vrot.slane %v2385_v29, 4  ;;  %v2380_v16 = vadd.f32 %v2379_v60, %v2378_v22 }
 0x16a   :  { %2658 = vmatpush.msra.mxu3 %v6213_v15  ;;  %2640 = vmatpush.msra.mxu2 %v6256_v27  ;;  %v6620_v15 = vld [vmem:[%s6884_s4 + $0x248] sm:$0xff]  ;;  %v6625_v27 = vld [vmem:[%s6884_s4 + $0x2f8] sm:$0xff]  ;;  %v2351_v12 = vsel %vm2329_vm0, %v6627_v2, 0.0 }
 0x16b   :  { %2600 = vmatpush.msra.mxu0 %v6603_v9  ;;  %2616 = vmatpush.msra.mxu1 %v6625_v27  ;;  %v2387_v22 = vadd.f32 %v2386_v11, %v2385_v29 }
 0x16c   :  { %2659 = vmatpush.msra.mxu3 %v6237_v31  ;;  %2641 = vmatpush.msra.mxu2 %v6284_v44  ;;  %v2132_v31 = vpop.f32.mrf.mxu0  ;;  %v2145_v44 = vpop.f32.mrf.mxu1 }
 0x16d   :  { %2601 = vmatpush.msra.mxu0 %v6611_v24  ;;  %v2158_v28 = vpop.f32.mrf.mxu2  ;;  %v2171_v61 = vpop.f32.mrf.mxu3 }
 0x16e   :  { %2660 = vmatpush.msra.mxu3 %v6261_v36  ;;  %2642 = vmatpush.msra.mxu2 %v6310_v49  ;;  %v2352_v36 = vrot.slane %v2351_v12, 4  ;;  %v6646_v49 = vld [vmem:[%s6884_s4 + $0x238] sm:$0xff] }
 0x16f   :  { %2602 = vmatpush.msra.mxu0 %v6620_v15 }
 0x170   :  { %2661 = vmatpush.msra.mxu3 %v6289_v45  ;;  %2643 = vmatpush.msra.mxu2 %v6336_v57  ;;  %v2353_v60 = vadd.f32 %v2352_v36, %v2351_v12  ;;  %v6654_v45 = vld [vmem:[%s6884_s4 + $0x230] sm:$0xff]  ;;  %v2381_v57 = vrot.slane %v2380_v16, 2 }
 0x171   :  { %2603 = vmatpush.msra.mxu0 %v6635_v51 }
 0x172   :  { %2662 = vmatpush.msra.mxu3 %v6315_v50  ;;  %2644 = vmatpush.msra.mxu2 %v6362_v63  ;;  %v2354_v31 = vrot.slane %v2353_v60, 2  ;;  %v6662_v50 = vld [vmem:[%s6884_s4 + $0x228] sm:$0xff]  ;;  %v2388_v63 = vrot.slane %v2387_v22, 2 }
 0x173   :  { %2604 = vmatpush.msra.mxu0 %v6646_v49 }
 0x174   :  { %2663 = vmatpush.msra.mxu3 %v6341_v58  ;;  %2645 = vmatpush.msra.mxu2 %v6388_v7  ;;  %v2355_v29 = vadd.f32 %v2354_v31, %v2353_v60  ;;  %v6670_v58 = vld [vmem:[%s6884_s4 + $0x220] sm:$0xff]  ;;  %v2382_v7 = vadd.f32 %v2381_v57, %v2380_v16  ;;  %v2389_v44 = vadd.f32 %v2388_v63, %v2387_v22 }
 0x175   :  { %2605 = vmatpush.msra.mxu0 %v6654_v45  ;;  %v6917_v31 = vld [vmem:[#allocation21_spill] sm:$0xff] }
 0x176   :  { %2664 = vmatpush.msra.mxu3 %v6367_v1  ;;  %2646 = vmatpush.msra.mxu2 %v6412_v18  ;;  %v2356_v11 = vrot.slane %v2355_v29, 1  ;;  %v6678_v1 = vld [vmem:[%s6884_s4 + $0x218] sm:$0xff] }
 0x177   :  { %2606 = vmatpush.msra.mxu0 %v6662_v50 }
 0x178   :  { %2665 = vmatpush.msra.mxu3 %v6393_v17  ;;  %2647 = vmatpush.msra.mxu2 %v6436_v38  ;;  %v2357_v18 = vadd.f32 %v2356_v11, %v2355_v29  ;;  %v6686_v17 = vld [vmem:[%s6884_s4 + $0x210] sm:$0xff]  ;;  %v2383_v38 = vrot.slane %v2382_v7, 1 }
 0x179   :  { %2607 = vmatpush.msra.mxu0 %v6670_v58 }
 0x17a   :  { %2666 = vmatpush.msra.mxu3 %v6417_v35  ;;  %2648 = vmatpush.msra.mxu2 %v6460_v53  ;;  %v6694_v35 = vld [vmem:[%s6884_s4 + $0x208] sm:$0xff]  ;;  %v2390_v53 = vrot.slane %v2389_v44, 1  ;;  %v2384_v16 = vadd.f32 %v2383_v38, %v2382_v7 }
 0x17b   :  { %2608 = vmatpush.msra.mxu0 %v6678_v1  ;;  %2592 = vmatmul.f32.vlgmr.msrb.gmra.mxu3 %v2357_v18 }
 0x17c   :  { %2667 = vmatpush.msra.mxu3 %v6441_v30  ;;  %2649 = vmatpush.msra.mxu2 %v6484_v13  ;;  %v6704_v30 = vld [vmem:[%s6884_s4 + $0x200] sm:$0xff]  ;;  %v2182_v13 = vpop.f32.mrf.mxu0 }
 0x17d   :  { %2609 = vmatpush.msra.mxu0 %v6686_v17 }
 0x17e   :  { %2668 = vmatpush.msra.mxu3 %v6465_v55  ;;  %2650 = vmatpush.msra.mxu2 %v6508_v48  ;;  %v2391_v55 = vadd.f32 %v2390_v53, %v2389_v44  ;;  %v2195_v48 = vpop.f32.mrf.mxu1 }
 0x17f   :  { %2610 = vmatpush.msra.mxu0 %v6694_v35 }
 0x180   :  { %2669 = vmatpush.msra.mxu3 %v6489_v4  ;;  %2651 = vmatpush.msra.mxu2 %v6532_v33  ;;  %v2514_v4 = vld [vmem:[%s6884_s4 + $0x2f0] sm:$0xff]  ;;  %v2513_v33 = vld [vmem:[%s6884_s4 + $0x2e8] sm:$0xff] }
 0x181   :  { %2652 = vmatmul.f32.vlgmr.msra.gmra.mxu2 %v2384_v16  ;;  %2611 = vmatpush.msra.mxu0 %v6704_v30  ;;  %v6920_v16 = vld [vmem:[#allocation24_spill] sm:$0xff] }
 0x182   :  { %2670 = vmatpush.msra.mxu3 %v6513_v3  ;;  %2716 = vmatpush.msrb.mxu2 %v6560_v43  ;;  %v2511_v43 = vld [vmem:[%s6884_s4 + $0x2d8] sm:$0xff] }
 0x183   :  { %2676 = vmatpush.msrb.mxu0 %v6176_v23  ;;  %2617 = vmatpush.msra.mxu1 %v2514_v4 }
 0x184   :  { %2671 = vmatpush.msra.mxu3 %v6537_v47  ;;  %2717 = vmatpush.msrb.mxu2 %v6574_v34  ;;  %v2208_v23 = vpop.f32.mrf.mxu2  ;;  %v2184_v47 = vpop.f32.mrf.mxu0  ;;  %v2509_v34 = vld [vmem:[%s6884_s4 + $0x2c8] sm:$0xff] }
 0x185   :  { %2672 = vmatmul.f32.vlgmr.msra.gmra.mxu3 %v2391_v55  ;;  %2677 = vmatpush.msrb.mxu0 %v6196_v25  ;;  %v2512_v25 = vld [vmem:[%s6884_s4 + $0x2e0] sm:$0xff]  ;;  %v2221_v3 = vpop.f32.mrf.mxu3  ;;  %v6922_v47 = vld [vmem:[#allocation26_spill] sm:$0xff] }
 0x186   :  { %2718 = vmatpush.msrb.mxu2 %v6584_v21  ;;  %2736 = vmatpush.msrb.mxu3 %v6625_v27  ;;  %v2501_v27 = vld [vmem:[%s6884_s4 + $0x288] sm:$0xff] }
 0x187   :  { %2678 = vmatpush.msrb.mxu0 %v6220_v14  ;;  %2618 = vmatpush.msra.mxu1 %v2513_v33  ;;  %v2197_v14 = vpop.f32.mrf.mxu1 }
 0x188   :  { %2719 = vmatpush.msrb.mxu2 %v6592_v19  ;;  %2737 = vmatpush.msrb.mxu3 %v2514_v4  ;;  %v6921_v4 = vld [vmem:[#allocation25_spill] sm:$0xff]  ;;  %v6923_v14 = vld [vmem:[#allocation27_spill] sm:$0xff] }
 0x189   :  { %2679 = vmatpush.msrb.mxu0 %v6245_v32  ;;  %2619 = vmatpush.msra.mxu1 %v2512_v25  ;;  %v2510_v32 = vld [vmem:[%s6884_s4 + $0x2d0] sm:$0xff] }
 0x18a   :  { %2720 = vmatpush.msrb.mxu2 %v6603_v9  ;;  %2738 = vmatpush.msrb.mxu3 %v2513_v33  ;;  %v2505_v9 = vld [vmem:[%s6884_s4 + $0x2a8] sm:$0xff] }
 0x18b   :  { %2680 = vmatpush.msrb.mxu0 %v6271_v39  ;;  %2620 = vmatpush.msra.mxu1 %v2511_v43  ;;  %v2508_v39 = vld [vmem:[%s6884_s4 + $0x2c0] sm:$0xff] }
 0x18c   :  { %2721 = vmatpush.msrb.mxu2 %v6611_v24  ;;  %2739 = vmatpush.msrb.mxu3 %v2512_v25  ;;  %v2210_v21 = vpop.f32.mrf.mxu2 }
 0x18d   :  { %2681 = vmatpush.msrb.mxu0 %v6297_v0  ;;  %2621 = vmatpush.msra.mxu1 %v2510_v32  ;;  %v2507_v0 = vld [vmem:[%s6884_s4 + $0x2b8] sm:$0xff]  ;;  %v2223_v19 = vpop.f32.mrf.mxu3  ;;  %v6926_v21 = vld [vmem:[#allocation30_spill] sm:$0xff] }
 0x18e   :  { %2722 = vmatpush.msrb.mxu2 %v6620_v15  ;;  %2740 = vmatpush.msrb.mxu3 %v2511_v43 }
 0x18f   :  { %2682 = vmatpush.msrb.mxu0 %v6323_v52  ;;  %2622 = vmatpush.msra.mxu1 %v2509_v34  ;;  %v2506_v52 = vld [vmem:[%s6884_s4 + $0x2b0] sm:$0xff] }
 0x190   :  { %2723 = vmatpush.msrb.mxu2 %v6635_v51  ;;  %2741 = vmatpush.msrb.mxu3 %v2510_v32  ;;  %v6924_v32 = vld [vmem:[#allocation28_spill] sm:$0xff] }
 0x191   :  { %2683 = vmatpush.msrb.mxu0 %v6349_v59  ;;  %2623 = vmatpush.msra.mxu1 %v2508_v39  ;;  %v2196_v59 = vadd.f32 %v2195_v48, %v2182_v13 }
 0x192   :  { %2724 = vmatpush.msrb.mxu2 %v6646_v49  ;;  %2742 = vmatpush.msrb.mxu3 %v2509_v34  ;;  %v6925_v34 = vld [vmem:[#allocation29_spill] sm:$0xff] }
 0x193   :  { %2684 = vmatpush.msrb.mxu0 %v6377_v5  ;;  %2624 = vmatpush.msra.mxu1 %v2507_v0  ;;  %v2504_v5 = vld [vmem:[%s6884_s4 + $0x2a0] sm:$0xff]  ;;  %v2209_v24 = vadd.f32 %v2208_v23, %v2196_v59 }
 0x194   :  { %2725 = vmatpush.msrb.mxu2 %v6654_v45  ;;  %2743 = vmatpush.msrb.mxu3 %v2508_v39  ;;  %v6916_v45 = vld [vmem:[#allocation20_spill] sm:$0xff] }
 0x195   :  { %2685 = vmatpush.msrb.mxu0 %v6401_v8  ;;  %2625 = vmatpush.msra.mxu1 %v2506_v52  ;;  %v2503_v8 = vld [vmem:[%s6884_s4 + $0x298] sm:$0xff]  ;;  %v2222_v15 = vadd.f32 %v2221_v3, %v2209_v24 }
 0x196   :  { %2726 = vmatpush.msrb.mxu2 %v6662_v50  ;;  %2744 = vmatpush.msrb.mxu3 %v2507_v0  ;;  %v6927_v0 = vld [vmem:[#allocation31_spill] sm:$0xff] }
 0x197   :  { %2686 = vmatpush.msrb.mxu0 %v6425_v10  ;;  %2626 = vmatpush.msra.mxu1 %v2505_v9  ;;  %v2502_v10 = vld [vmem:[%s6884_s4 + $0x290] sm:$0xff] }
 0x198   :  { %2727 = vmatpush.msrb.mxu2 %v6670_v58  ;;  %2745 = vmatpush.msrb.mxu3 %v2506_v52 }
 0x199   :  { %2687 = vmatpush.msrb.mxu0 %v6449_v40  ;;  %2627 = vmatpush.msra.mxu1 %v2504_v5  ;;  %v2374_v40 = vmul.f32 %v6299_v46, %v6299_v46 }
 0x19a   :  { %2728 = vmatpush.msrb.mxu2 %v6678_v1  ;;  %2746 = vmatpush.msrb.mxu3 %v2505_v9  ;;  %v6918_v1 = vld [vmem:[#allocation22_spill] sm:$0xff] }
 0x19b   :  { %2688 = vmatpush.msrb.mxu0 %v6473_v62  ;;  %2628 = vmatpush.msra.mxu1 %v2503_v8  ;;  %v2392_v51 = vsel %vm2329_vm0, %v2374_v40, 0.0 }
 0x19c   :  { %2729 = vmatpush.msrb.mxu2 %v6686_v17  ;;  %2747 = vmatpush.msrb.mxu3 %v2504_v5  ;;  %v2234_v62 = vpop.f32.mrf.mxu0  ;;  %v2393_v22 = vrot.slane %v2392_v51, 4  ;;  %v6919_v17 = vld [vmem:[#allocation23_spill] sm:$0xff]  ;;  %v2375_v5 = vmul.f32 %v6627_v2, %v6627_v2 }
 0x19d   :  { %2689 = vmatpush.msrb.mxu0 %v6497_v20  ;;  %2629 = vmatpush.msra.mxu1 %v2502_v10  ;;  %v2235_v12 = vadd.f32 %v2234_v62, %v2222_v15  ;;  %v2247_v36 = vpop.f32.mrf.mxu1  ;;  %v2500_v20 = vld [vmem:[%s6884_s4 + $0x280] sm:$0xff]  ;;  %s6022_s4 = smov [#allocation13]  }
 0x19e   :  { %2730 = vmatpush.msrb.mxu2 %v6694_v35  ;;  %2748 = vmatpush.msrb.mxu3 %v2503_v8  ;;  %v2394_v50 = vadd.f32 %v2393_v22, %v2392_v51  ;;  %v2399_v40 = vsel %vm2329_vm0, %v2375_v5, 0.0  ;;  %v2791_v5 = vld [vmem:[#allocation8 + $0x40] sm:$0xf]  ;;  %s3848_s1 = sshll.u32 %s6022_s4, 4  ;;  %s3849_s1 = int_to_ptr.vmem [resolvable:$true] %s3848_s1 }
 0x19f   :  { %2690 = vmatpush.msrb.mxu0 %v6521_v37  ;;  %2630 = vmatpush.msra.mxu1 %v2501_v27  ;;  %v6791_v49 = vadd.f32 %v2247_v36, %v2235_v12  ;;  %v6915_v37 = vld [vmem:[#allocation19_spill] sm:$0xff]  ;;  %v2400_v51 = vrot.slane %v2399_v40, 4 }
 0x1a0   :  { %2731 = vmatpush.msrb.mxu2 %v6704_v30  ;;  %2749 = vmatpush.msrb.mxu3 %v2502_v10  ;;  %v2395_v38 = vrot.slane %v2394_v50, 2 }
 0x1a1   :  { %2691 = vmatpush.msrb.mxu0 %v6545_v41  ;;  %2631 = vmatpush.msra.mxu1 %v2500_v20  ;;  %v2358_v60 = vsel %vm2329_vm0, %v6791_v49, 0.0  ;;  %v2376_v28 = vmul.f32 %v6791_v49, %v6791_v49 }
 0x1a2   :  { %2750 = vmatpush.msrb.mxu3 %v2501_v27  ;;  %v2359_v41 = vrot.slane %v2358_v60, 4  ;;  %v2396_v25 = vadd.f32 %v2395_v38, %v2394_v50  ;;  %5019 = vmatpush.msk.msra.mxu2 %vm2799_vm2, %v2791_v5 }
 0x1a3   :  { %2696 = vmatpush.msrb.mxu1 %v6915_v37  ;;  %v2406_v57 = vsel %vm2329_vm0, %v2376_v28, 0.0 }
 0x1a4   :  { %2751 = vmatpush.msrb.mxu3 %v2500_v20  ;;  %v2260_v61 = vpop.f32.mrf.mxu2  ;;  %v2360_v63 = vadd.f32 %v2359_v41, %v2358_v60  ;;  %v2407_v29 = vrot.slane %v2406_v57, 4  ;;  %v2236_v7 = vpop.f32.mrf.mxu0  ;;  %v2397_v43 = vrot.slane %v2396_v25, 1  ;;  %v2401_v20 = vadd.f32 %v2400_v51, %v2399_v40  ;;  %v2785_v40 = vld [vmem:[#allocation8 + $0x10] sm:$0xff]  ;;  %v2794_v51 = vld [vmem:[#allocation8 + $0x58] sm:$0xf] }
 0x1a5   :  { %2697 = vmatpush.msrb.mxu1 %v6916_v45  ;;  %v2273_v58 = vpop.f32.mrf.mxu3  ;;  %v2249_v11 = vpop.f32.mrf.mxu1  ;;  %2873 = vmatpush.msra.mxu2 %v2785_v40 }
 0x1a6   :  { %v2361_v18 = vrot.slane %v2360_v63, 2  ;;  %v2408_v44 = vadd.f32 %v2407_v29, %v2406_v57  ;;  %v2398_v39 = vadd.f32 %v2397_v43, %v2396_v25  ;;  %v2274_v19 = vadd.f32 %v2273_v58, %v2260_v61 }
 0x1a7   :  { %2698 = vmatpush.msrb.mxu1 %v6917_v31  ;;  %v2402_v57 = vrot.slane %v2401_v20, 2 }
 0x1a8   :  { %v2362_v35 = vadd.f32 %v2361_v18, %v2360_v63  ;;  %v2409_v53 = vrot.slane %v2408_v44, 2 }
 0x1a9   :  { %2699 = vmatpush.msrb.mxu1 %v6918_v1  ;;  %v2403_v7 = vadd.f32 %v2402_v57, %v2401_v20 }
 0x1aa   :  { %v2363_v30 = vrot.slane %v2362_v35, 1  ;;  %v2410_v55 = vadd.f32 %v2409_v53, %v2408_v44  ;;  %v6021_v44 = vmov 128.0  }
 0x1ab   :  { %2700 = vmatpush.msrb.mxu1 %v6919_v17  ;;  %v2404_v1 = vrot.slane %v2403_v7, 1  ;;  %5821 = vrcp.f32 %v6021_v44 }
 0x1ac   :  { %v2262_v13 = vpop.f32.mrf.mxu2  ;;  %v2364_v48 = vadd.f32 %v2363_v30, %v2362_v35  ;;  %v2411_v33 = vrot.slane %v2410_v55, 1 }
 0x1ad   :  { %2701 = vmatpush.msrb.mxu1 %v6920_v16  ;;  %v2275_v23 = vpop.f32.mrf.mxu3  ;;  %v2405_v18 = vadd.f32 %v2404_v1, %v2403_v7  ;;  %v5097_v1 = vld [vmem:[#allocation10 + $0x70] sm:$0xf] }
 0x1ae   :  { %2612 = vmatmul.f32.vlgmr.msra.gmra.mxu0 %v2364_v48  ;;  %v2412_v3 = vadd.f32 %v2411_v33, %v2410_v55 }
 0x1af   :  { %2702 = vmatpush.msrb.mxu1 %v6921_v4 }
 0x1b0   :  { %2732 = vmatmul.f32.vlgmr.msrb.gmra.mxu2 %v2412_v3 }
 0x1b1   :  { %2703 = vmatpush.msrb.mxu1 %v6922_v47  ;;  %v5822_v38 = vpop.eup %5821 }
 0x1b2   :  { %v2757_v16 = vmul.f32 128.0, %v5822_v38  ;;  %vm2761_vm1 = vweird.f32 %v5822_v38 }
 0x1b3   :  { %2704 = vmatpush.msrb.mxu1 %v6923_v14 }
 0x1b4   :  { %v2758_v13 = vsub.f32 1.0, %v2757_v16  ;;  %v5289_v16 = vld [vmem:[#allocation10 + $0x1f0] sm:$0xf] }
 0x1b5   :  { %2705 = vmatpush.msrb.mxu1 %v6924_v32 }
 0x1b6   :  { %2692 = vmatmul.f32.vlgmr.msrb.gmra.mxu0 %v2398_v39  ;;  %v2759_v33 = vmul.f32 %v5822_v38, %v2758_v13 }
 0x1b7   :  { %2706 = vmatpush.msrb.mxu1 %v6925_v34 }
 0x1b8   :  { %v2760_v43 = vadd.f32 %v5822_v38, %v2759_v33 }
 0x1b9   :  { %2707 = vmatpush.msrb.mxu1 %v6926_v21 }
 0x1bb   :  { %2708 = vmatpush.msrb.mxu1 %v6927_v0  ;;  %v2789_v0 = vld [vmem:[#allocation8 + $0x30] sm:$0xf] }
 0x1bc   :  { %v2286_v52 = vpop.f32.mrf.mxu0  ;;  %5015 = vmatpush.msk.msra.mxu0 %vm2799_vm2, %v2789_v0  ;;  %5027 = vmatpush.msk.msrb.mxu2 %vm2799_vm2, %v2789_v0  ;;  %v5081_v0 = vld [vmem:[#allocation10 + $0x50] sm:$0xf] }
 0x1bd   :  { %2709 = vmatpush.msrb.mxu1 %v6526_v54  ;;  %v2299_v59 = vpop.f32.mrf.mxu1  ;;  %v2287_v9 = vadd.f32 %v2286_v52, %v2274_v19  ;;  %v2790_v19 = vld [vmem:[#allocation8 + $0x38] sm:$0xf]  ;;  %v2783_v52 = vld [vmem:[#allocation8] sm:$0xff] }
 0x1be   :  { %2833 = vmatpush.msra.mxu0 %v2783_v52  ;;  %2956 = vmatpush.msrb.mxu2 %v2783_v52 }
 0x1bf   :  { %2710 = vmatpush.msrb.mxu1 %v6554_v26  ;;  %v2300_v24 = vadd.f32 %v2299_v59, %v2287_v9  ;;  %v2762_v59 = vsel %vm2761_vm1, %v5822_v38, %v2760_v43  ;;  %v5742_v38 = vld [vmem:[#allocation10 + $0xf4] sm:$0xf0]  ;;  %v5756_v43 = vld [vmem:[#allocation10 + $0x164] sm:$0xf0] }
 0x1c1   :  { %2711 = vmatpush.msrb.mxu1 %v6565_v6 }
 0x1c4   :  { %v2312_v8 = vpop.f32.mrf.mxu2  ;;  %v2288_v27 = vpop.f32.mrf.mxu0 }
 0x1c5   :  { %v2325_v10 = vpop.f32.mrf.mxu3  ;;  %v2313_v15 = vadd.f32 %v2312_v8, %v2300_v24  ;;  %v2301_v62 = vpop.f32.mrf.mxu1  ;;  %v2792_v24 = vld [vmem:[#allocation8 + $0x48] sm:$0xf] }
 0x1c6   :  { %v2784_v8 = vld [vmem:[#allocation8 + $0x8] sm:$0xff]  ;;  %5021 = vmatpush.msk.msra.mxu3 %vm2799_vm2, %v2792_v24  ;;  %v2793_v62 = vld [vmem:[#allocation8 + $0x50] sm:$0xf] }
 0x1c7   :  { %v6817_v54 = vadd.f32 %v2325_v10, %v2313_v15  ;;  %v2786_v15 = vld [vmem:[#allocation8 + $0x18] sm:$0xff]  ;;  %5023 = vmatpush.msk.msrb.mxu0 %vm2799_vm2, %v2793_v62 }
 0x1c8   :  { %2893 = vmatpush.msra.mxu3 %v2786_v15 }
 0x1c9   :  { %v2365_v26 = vsel %vm2329_vm0, %v6817_v54, 0.0  ;;  %v2377_v6 = vmul.f32 %v6817_v54, %v6817_v54 }
 0x1ca   :  { %v2366_v12 = vrot.slane %v2365_v26, 4 }
 0x1cb   :  { %v2413_v36 = vsel %vm2329_vm0, %v2377_v6, 0.0 }
 0x1cc   :  { %v2367_v37 = vadd.f32 %v2366_v12, %v2365_v26  ;;  %v2414_v22 = vrot.slane %v2413_v36, 4  ;;  %v2314_v60 = vpop.f32.mrf.mxu2  ;;  %v2787_v12 = vld [vmem:[#allocation8 + $0x20] sm:$0xff] }
 0x1cd   :  { %v2327_v28 = vpop.f32.mrf.mxu3  ;;  %2913 = vmatpush.msrb.mxu0 %v2787_v12 }
 0x1ce   :  { %v2368_v45 = vrot.slane %v2367_v37, 2  ;;  %v2415_v41 = vadd.f32 %v2414_v22, %v2413_v36  ;;  %v2788_v36 = vld [vmem:[#allocation8 + $0x28] sm:$0xff] }
 0x1d0   :  { %v2369_v61 = vadd.f32 %v2368_v45, %v2367_v37  ;;  %v2416_v31 = vrot.slane %v2415_v41, 2 }
 0x1d2   :  { %v2370_v50 = vrot.slane %v2369_v61, 1  ;;  %v2417_v63 = vadd.f32 %v2416_v31, %v2415_v41 }
 0x1d4   :  { %v2371_v29 = vadd.f32 %v2370_v50, %v2369_v61  ;;  %v2418_v58 = vrot.slane %v2417_v63, 1 }
 0x1d6   :  { %2632 = vmatmul.f32.vlgmr.msra.gmra.mxu1 %v2371_v29  ;;  %v2419_v11 = vadd.f32 %v2418_v58, %v2417_v63  ;;  %v2778_v29 = vld [vmem:[#allocation5] sm:$0x1] }
 0x1d7   :  { %5017 = vmatpush.msk.msra.mxu1 %vm2799_vm2, %v2790_v19 }
 0x1d8   :  { %2752 = vmatmul.f32.vlgmr.msrb.gmra.mxu3 %v2419_v11  ;;  %v2780_v11 = vld [vmem:[#allocation7] sm:$0x1] }
 0x1d9   :  { %2853 = vmatpush.msra.mxu1 %v2784_v8  ;;  %5029 = vmatpush.msk.msrb.mxu3 %vm2799_vm2, %v2790_v19  ;;  %v5722_v19 = vld [vmem:[#allocation10 + $0x54] sm:$0xf0] }
 0x1db   :  { %2976 = vmatpush.msrb.mxu3 %v2784_v8  ;;  %v5754_v8 = vld [vmem:[#allocation10 + $0x154] sm:$0xf0] }
 0x1dd   :  { %v2533_v17 = vpop.f32.mrf.mxu0 }
 0x1de   :  { %2712 = vmatmul.f32.vlgmr.msrb.gmra.mxu1 %v2405_v18  ;;  %v2553_v35 = vpop.f32.mrf.mxu1  ;;  %v5726_v18 = vld [vmem:[#allocation10 + $0x74] sm:$0xf0] }
 0x1df   :  { %v2554_v4 = vadd.f32 %v2553_v35, %v2533_v17  ;;  %5025 = vmatpush.msk.msrb.mxu1 %vm2799_vm2, %v2794_v51  ;;  %v5161_v17 = vld [vmem:[#allocation10 + $0xf0] sm:$0xf] }
 0x1e0   :  { %v5225_v35 = vld [vmem:[#allocation10 + $0x170] sm:$0xf]  ;;  %v5162_v13 = vor.u32 %v5742_v38, %v5161_v17  ;;  %v5716_v17 = vld [vmem:[#allocation10 + $0x24] sm:$0xf0] }
 0x1e1   :  { %2933 = vmatpush.msrb.mxu1 %v2788_v36 }
 0x1e4   :  { %v2573_v30 = vpop.f32.mrf.mxu2 }
 0x1e5   :  { %v2574_v23 = vadd.f32 %v2573_v30, %v2554_v4  ;;  %v5774_v30 = vld [vmem:[#allocation10 + $0x1f4] sm:$0xf0]  ;;  %v5089_v4 = vld [vmem:[#allocation10 + $0x60] sm:$0xf] }
 0x1fe   :  { %v2593_v53 = vpop.f32.mrf.mxu3 }
 0x1ff   :  { %v2594_v3 = vadd.f32 %v2593_v53, %v2574_v23  ;;  %v5758_v53 = vld [vmem:[#allocation10 + $0x174] sm:$0xf0] }
 0x200   :  { %v5226_v23 = vor.u32 %v5758_v53, %v5225_v35  ;;  %v5121_v53 = vld [vmem:[#allocation10 + $0xa0] sm:$0xf] }
 0x204   :  { %v2653_v25 = vpop.f32.mrf.mxu2 }
 0x208   :  { %v2673_v47 = vpop.f32.mrf.mxu3 }
 0x209   :  { %v2674_v32 = vadd.f32 %v2673_v47, %v2653_v25  ;;  %v5290_v25 = vor.u32 %v5774_v30, %v5289_v16  ;;  %v5153_v47 = vld [vmem:[#allocation10 + $0xe0] sm:$0xf]  ;;  %v5732_v16 = vld [vmem:[#allocation10 + $0xa4] sm:$0xf0] }
 0x20a   :  { %v5185_v30 = vld [vmem:[#allocation10 + $0x120] sm:$0xf] }
 0x22b   :  { %v2613_v55 = vpop.f32.mrf.mxu0 }
 0x22c   :  { %v2614_v34 = vadd.f32 %v2613_v55, %v2594_v3  ;;  %v5098_v55 = vor.u32 %v5726_v18, %v5097_v1  ;;  %v5740_v3 = vld [vmem:[#allocation10 + $0xe4] sm:$0xf0] }
 0x233   :  { %v2693_v14 = vpop.f32.mrf.mxu0  ;;  %v2733_v27 = vpop.f32.mrf.mxu2 }
 0x234   :  { %v2694_v39 = vadd.f32 %v2693_v14, %v2674_v32  ;;  %v5217_v14 = vld [vmem:[#allocation10 + $0x160] sm:$0xf] }
 0x235   :  { %v5281_v32 = vld [vmem:[#allocation10 + $0x1e0] sm:$0xf]  ;;  %v5218_v52 = vor.u32 %v5756_v43, %v5217_v14  ;;  %v5113_v14 = vld [vmem:[#allocation10 + $0x90] sm:$0xf]  ;;  %v5730_v43 = vld [vmem:[#allocation10 + $0x94] sm:$0xf0] }
 0x253   :  { %v2633_v48 = vpop.f32.mrf.mxu1 }
 0x254   :  { %v2634_v21 = vadd.f32 %v2633_v48, %v2614_v34  ;;  %v5724_v48 = vld [vmem:[#allocation10 + $0x64] sm:$0xf0] }
 0x255   :  { %v5772_v34 = vld [vmem:[#allocation10 + $0x1e4] sm:$0xf0] }
 0x256   :  { %v2763_v26 = vmul.f32 %v2762_v59, %v2634_v21  ;;  %v5154_v21 = vor.u32 %v5740_v3, %v5153_v47 }
 0x258   :  { %v2765_v22 = vmul.f32 %v2763_v26, %v2763_v26 }
 0x25b   :  { %v2713_v9 = vpop.f32.mrf.mxu1  ;;  %v2753_v20 = vpop.f32.mrf.mxu3 }
 0x25c   :  { %v2714_v10 = vadd.f32 %v2713_v9, %v2694_v39  ;;  %v5090_v39 = vor.u32 %v5724_v48, %v5089_v4  ;;  %v5145_v9 = vld [vmem:[#allocation10 + $0xd0] sm:$0xf]  ;;  %v5764_v4 = vld [vmem:[#allocation10 + $0x1a4] sm:$0xf0] }
 0x25e   :  { %v2734_v6 = vadd.f32 %v2733_v27, %v2714_v10  ;;  %v5273_v10 = vld [vmem:[#allocation10 + $0x1d0] sm:$0xf] }
 0x260   :  { %v2754_v37 = vadd.f32 %v2753_v20, %v2734_v6  ;;  %v5201_v20 = vld [vmem:[#allocation10 + $0x140] sm:$0xf] }
 0x262   :  { %v2764_v60 = vmul.f32 %v2762_v59, %v2754_v37  ;;  %v5282_v59 = vor.u32 %v5772_v34, %v5281_v32  ;;  %v5752_v37 = vld [vmem:[#allocation10 + $0x144] sm:$0xf0]  ;;  %v5177_v32 = vld [vmem:[#allocation10 + $0x110] sm:$0xf]  ;;  %v5746_v34 = vld [vmem:[#allocation10 + $0x114] sm:$0xf0] }
 0x264   :  { %v2766_v28 = vsub.f32 %v2764_v60, %v2765_v22  ;;  %v5265_v22 = vld [vmem:[#allocation10 + $0x1c0] sm:$0xf]  ;;  %v5768_v60 = vld [vmem:[#allocation10 + $0x1c4] sm:$0xf0] }
 0x266   :  { %v2767_v45 = vadd.f32 1e-05, %v2766_v28 }
 0x268   :  { %5823 = vrsqrt.f32 %v2767_v45  ;;  %vm2774_vm4 = vweird.f32 %v2767_v45 }
 0x26e   :  { %v5824_v41 = vpop.eup %5823 }
 0x26f   :  { %v2769_v57 = vmul.f32 %v5824_v41, %v2767_v45  ;;  %vm2775_vm3 = vweird.f32 %v5824_v41 }
 0x270   :  { %vm2776_vm5 = vmor %vm2774_vm4, %vm2775_vm3 }
 0x271   :  { %v2770_v61 = vmul.f32 %v5824_v41, %v2769_v57  ;;  %v5718_v57 = vld [vmem:[#allocation10 + $0x34] sm:$0xf0] }
 0x273   :  { %v2771_v31 = vmul.f32 0.5, %v2770_v61  ;;  %v5202_v61 = vor.u32 %v5752_v37, %v5201_v20  ;;  %v5099_v37 = vld [vmem:[#allocation10 + $0x78] sm:$0xf0] }
 0x275   :  { %v2772_v50 = vsub.f32 1.5, %v2771_v31  ;;  %v5266_v31 = vor.u32 %v5768_v60, %v5265_v22  ;;  %v5741_v22 = vld [vmem:[#allocation10 + $0xf4] sm:$0xf]  ;;  %v5163_v60 = vld [vmem:[#allocation10 + $0xf8] sm:$0xf0] }
 0x277   :  { %v2773_v63 = vmul.f32 %v5824_v41, %v2772_v50  ;;  %v5129_v50 = vld [vmem:[#allocation10 + $0xb0] sm:$0xf] }
 0x279   :  { %v2777_v58 = vsel %vm2776_vm5, %v5824_v41, %v2773_v63  ;;  %v5065_v41 = vld [vmem:[#allocation10 + $0x30] sm:$0xf]  ;;  %v5734_v63 = vld [vmem:[#allocation10 + $0xb4] sm:$0xf0] }
 0x27a   :  { %v2779_v7 = vmul.f32 %v2778_v29, %v2777_v58  ;;  %v5193_v29 = vld [vmem:[#allocation10 + $0x130] sm:$0xf]  ;;  %v5750_v58 = vld [vmem:[#allocation10 + $0x134] sm:$0xf0]  ;;  %v5066_v1 = vor.u32 %v5718_v57, %v5065_v41  ;;  %v5130_v18 = vor.u32 %v5734_v63, %v5129_v50  ;;  %v5345_v41 = vld [vmem:[#allocation10 + $0x260] sm:$0xf] }
 0x27b   :  { %v5194_v38 = vor.u32 %v5750_v58, %v5193_v29  ;;  %v5409_v50 = vld [vmem:[#allocation10 + $0x2e0] sm:$0xf]  ;;  %v5804_v63 = vld [vmem:[#allocation10 + $0x2e4] sm:$0xf0]  ;;  %v5166_v58 = vor.u32 %v5741_v22, %v5163_v60 }
 0x27c   :  { %5016 = vmatmul.msk.f32.vlgmr.msra.gmra.mxu0 %vm2795_vm6, %v2779_v7  ;;  %5018 = vmatmul.msk.f32.vlgmr.msra.gmra.mxu1 %vm2795_vm6, %v2779_v7  ;;  %v2781_v44 = vmul.f32 %v2779_v7, %v2763_v26  ;;  %v5377_v22 = vld [vmem:[#allocation10 + $0x2a0] sm:$0xf] }
 0x27d   :  { %5020 = vmatmul.msk.f32.vlgmr.msra.gmra.mxu2 %vm2795_vm6, %v2779_v7  ;;  %5022 = vmatmul.msk.f32.vlgmr.msra.gmra.mxu3 %vm2795_vm6, %v2779_v7 }
 0x27e   :  { %5031 = vmatpush.msk.msra.mxu0 %vm2799_vm2, %v2791_v5  ;;  %5033 = vmatpush.msk.msra.mxu1 %vm2799_vm2, %v2792_v24  ;;  %v2782_v33 = vsub.f32 %v2780_v11, %v2781_v44  ;;  %v5738_v5 = vld [vmem:[#allocation10 + $0xd4] sm:$0xf0]  ;;  %v5209_v24 = vld [vmem:[#allocation10 + $0x150] sm:$0xf]  ;;  %v5057_v44 = vld [vmem:[#allocation10 + $0x20] sm:$0xf] }
 0x27f   :  { %5035 = vmatpush.msk.msra.mxu2 %vm2799_vm2, %v2793_v62  ;;  %5037 = vmatpush.msk.msra.mxu3 %vm2799_vm2, %v2794_v51  ;;  %v5146_v27 = vor.u32 %v5738_v5, %v5145_v9  ;;  %v5073_v62 = vld [vmem:[#allocation10 + $0x40] sm:$0xf]  ;;  %v5720_v51 = vld [vmem:[#allocation10 + $0x44] sm:$0xf0]  ;;  %v5210_v26 = vor.u32 %v5754_v8, %v5209_v24  ;;  %v5766_v11 = vld [vmem:[#allocation10 + $0x1b4] sm:$0xf0]  ;;  %v5058_v48 = vor.u32 %v5716_v17, %v5057_v44 }
 0x280   :  { %2996 = vmatpush.msra.mxu0 %v2785_v40  ;;  %3016 = vmatpush.msra.mxu1 %v2786_v15  ;;  %v5770_v40 = vld [vmem:[#allocation10 + $0x1d4] sm:$0xf0]  ;;  %v5082_v15 = vor.u32 %v5722_v19, %v5081_v0  ;;  %v5074_v28 = vor.u32 %v5720_v51, %v5073_v62  ;;  %v5041_v0 = vld [vmem:[#allocation10] sm:$0xf]  ;;  %v5728_v5 = vld [vmem:[#allocation10 + $0x84] sm:$0xf0]  ;;  %v5178_v24 = vor.u32 %v5746_v34, %v5177_v32 }
 0x281   :  { %3036 = vmatpush.msra.mxu2 %v2787_v12  ;;  %3056 = vmatpush.msra.mxu3 %v2788_v36  ;;  %v5274_v6 = vor.u32 %v5770_v40, %v5273_v10  ;;  %v5137_v12 = vld [vmem:[#allocation10 + $0xc0] sm:$0xf]  ;;  %v5736_v36 = vld [vmem:[#allocation10 + $0xc4] sm:$0xf0]  ;;  %v5353_v10 = vld [vmem:[#allocation10 + $0x270] sm:$0xf] }
 0x282   :  { %v5138_v45 = vor.u32 %v5736_v36, %v5137_v12  ;;  %v5105_v9 = vld [vmem:[#allocation10 + $0x80] sm:$0xf]  ;;  %v5790_v40 = vld [vmem:[#allocation10 + $0x274] sm:$0xf0]  ;;  %v5744_v51 = vld [vmem:[#allocation10 + $0x104] sm:$0xf0] }
 0x283   :  { %v5169_v62 = vld [vmem:[#allocation10 + $0x100] sm:$0xf]  ;;  %v5725_v12 = vld [vmem:[#allocation10 + $0x74] sm:$0xf]  ;;  %v5106_v20 = vor.u32 %v5728_v5, %v5105_v9  ;;  %v5739_v44 = vld [vmem:[#allocation10 + $0xe4] sm:$0xf] }
 0x284   :  { %5024 = vmatmul.msk.f32.vlgmr.msrb.gmra.mxu0 %vm2795_vm6, %v2779_v7  ;;  %5026 = vmatmul.msk.f32.vlgmr.msrb.gmra.mxu1 %vm2795_vm6, %v2779_v7  ;;  %v5257_v7 = vld [vmem:[#allocation10 + $0x1b0] sm:$0xf]  ;;  %v5170_v57 = vor.u32 %v5744_v51, %v5169_v62  ;;  %v5102_v29 = vor.u32 %v5725_v12, %v5099_v37  ;;  %v5393_v32 = vld [vmem:[#allocation10 + $0x2c0] sm:$0xf]  ;;  %v5139_v9 = vld [vmem:[#allocation10 + $0xc8] sm:$0xf0] }
 0x285   :  { %5028 = vmatmul.msk.f32.vlgmr.msrb.gmra.mxu2 %vm2795_vm6, %v2782_v33  ;;  %5030 = vmatmul.msk.f32.vlgmr.msrb.gmra.mxu3 %vm2795_vm6, %v2782_v33  ;;  %v5258_v35 = vor.u32 %v5766_v11, %v5257_v7  ;;  %v5410_v11 = vor.u32 %v5804_v63, %v5409_v50  ;;  %v5067_v62 = vld [vmem:[#allocation10 + $0x38] sm:$0xf0]  ;;  %v5780_v37 = vld [vmem:[#allocation10 + $0x224] sm:$0xf0]  ;;  %v5123_v50 = vld [vmem:[#allocation10 + $0xa8] sm:$0xf0] }
 0x286   :  { %3679 = vmatpush.bf16.msrb.mxu0 %v5098_v55  ;;  %3692 = vmatpush.bf16.msrb.mxu1 %v5162_v13  ;;  %v5748_v55 = vld [vmem:[#allocation10 + $0x124] sm:$0xf0]  ;;  %v5249_v13 = vld [vmem:[#allocation10 + $0x1a0] sm:$0xf]  ;;  %v5131_v12 = vld [vmem:[#allocation10 + $0xb8] sm:$0xf0] }
 0x287   :  { %3705 = vmatpush.bf16.msrb.mxu2 %v5226_v23  ;;  %3718 = vmatpush.bf16.msrb.mxu3 %v5290_v25  ;;  %v5049_v23 = vld [vmem:[#allocation10 + $0x10] sm:$0xf]  ;;  %v5714_v25 = vld [vmem:[#allocation10 + $0x14] sm:$0xf0]  ;;  %v5186_v47 = vor.u32 %v5748_v55, %v5185_v30  ;;  %v5250_v3 = vor.u32 %v5764_v4, %v5249_v13  ;;  %v5721_v4 = vld [vmem:[#allocation10 + $0x54] sm:$0xf] }
 0x288   :  { %v5050_v19 = vor.u32 %v5714_v25, %v5049_v23  ;;  %v5401_v30 = vld [vmem:[#allocation10 + $0x2d0] sm:$0xf]  ;;  %v5802_v13 = vld [vmem:[#allocation10 + $0x2d4] sm:$0xf0]  ;;  %v5737_v25 = vld [vmem:[#allocation10 + $0xd4] sm:$0xf] }
 0x28a   :  { %3680 = vmatpush.bf16.msrb.mxu0 %v5090_v39  ;;  %3693 = vmatpush.bf16.msrb.mxu1 %v5154_v21  ;;  %v5241_v39 = vld [vmem:[#allocation10 + $0x190] sm:$0xf]  ;;  %v5762_v21 = vld [vmem:[#allocation10 + $0x194] sm:$0xf0] }
 0x28b   :  { %3706 = vmatpush.bf16.msrb.mxu2 %v5218_v52  ;;  %3719 = vmatpush.bf16.msrb.mxu3 %v5282_v59  ;;  %v5114_v52 = vor.u32 %v5730_v43, %v5113_v14  ;;  %v5712_v59 = vld [vmem:[#allocation10 + $0x4] sm:$0xf0]  ;;  %v5242_v8 = vor.u32 %v5762_v21, %v5241_v39  ;;  %v5329_v14 = vld [vmem:[#allocation10 + $0x240] sm:$0xf] }
 0x28c   :  { %5032 = vmatmul.msk.f32.vlgmr.msra.gmra.mxu0 %vm2795_vm6, %v2782_v33  ;;  %5034 = vmatmul.msk.f32.vlgmr.msra.gmra.mxu1 %vm2795_vm6, %v2782_v33  ;;  %v5042_v36 = vor.u32 %v5712_v59, %v5041_v0  ;;  %v5784_v43 = vld [vmem:[#allocation10 + $0x244] sm:$0xf0]  ;;  %v5719_v0 = vld [vmem:[#allocation10 + $0x44] sm:$0xf] }
 0x28d   :  { %5036 = vmatmul.msk.f32.vlgmr.msra.gmra.mxu2 %vm2795_vm6, %v2782_v33  ;;  %5038 = vmatmul.msk.f32.vlgmr.msra.gmra.mxu3 %vm2795_vm6, %v2782_v33  ;;  %v5122_v33 = vor.u32 %v5732_v16, %v5121_v53  ;;  %v5337_v53 = vld [vmem:[#allocation10 + $0x250] sm:$0xf]  ;;  %v5786_v16 = vld [vmem:[#allocation10 + $0x254] sm:$0xf0]  ;;  %v5330_v34 = vor.u32 %v5784_v43, %v5329_v14  ;;  %v5800_v39 = vld [vmem:[#allocation10 + $0x2c4] sm:$0xf0] }
 0x28e   :  { %3681 = vmatpush.bf16.msrb.mxu0 %v5082_v15  ;;  %3694 = vmatpush.bf16.msrb.mxu1 %v5146_v27  ;;  %v5417_v15 = vld [vmem:[#allocation10 + $0x2f0] sm:$0xf]  ;;  %v5806_v27 = vld [vmem:[#allocation10 + $0x2f4] sm:$0xf0]  ;;  %v5338_v55 = vor.u32 %v5786_v16, %v5337_v53  ;;  %v5394_v21 = vor.u32 %v5800_v39, %v5393_v32  ;;  %v5115_v53 = vld [vmem:[#allocation10 + $0x98] sm:$0xf0] }
 0x28f   :  { %3707 = vmatpush.bf16.msrb.mxu2 %v5210_v26  ;;  %3720 = vmatpush.bf16.msrb.mxu3 %v5274_v6  ;;  %v5233_v26 = vld [vmem:[#allocation10 + $0x180] sm:$0xf]  ;;  %v5760_v6 = vld [vmem:[#allocation10 + $0x184] sm:$0xf0] }
 0x292   :  { %3682 = vmatpush.bf16.msrb.mxu0 %v5074_v28  ;;  %3695 = vmatpush.bf16.msrb.mxu1 %v5138_v45  ;;  %v5354_v28 = vor.u32 %v5790_v40, %v5353_v10  ;;  %v5418_v45 = vor.u32 %v5806_v27, %v5417_v15  ;;  %v5385_v10 = vld [vmem:[#allocation10 + $0x2b0] sm:$0xf]  ;;  %v5798_v15 = vld [vmem:[#allocation10 + $0x2b4] sm:$0xf0]  ;;  %v5717_v27 = vld [vmem:[#allocation10 + $0x34] sm:$0xf] }
 0x293   :  { %3708 = vmatpush.bf16.msrb.mxu2 %v5202_v61  ;;  %3721 = vmatpush.bf16.msrb.mxu3 %v5266_v31  ;;  %v5234_v61 = vor.u32 %v5760_v6, %v5233_v26  ;;  %v5788_v31 = vld [vmem:[#allocation10 + $0x264] sm:$0xf0]  ;;  %v5386_v51 = vor.u32 %v5798_v15, %v5385_v10  ;;  %v5070_v26 = vor.u32 %v5717_v27, %v5067_v62  ;;  %v5733_v6 = vld [vmem:[#allocation10 + $0xb4] sm:$0xf] }
 0x294   :  { %v5346_v7 = vor.u32 %v5788_v31, %v5345_v41  ;;  %v5715_v41 = vld [vmem:[#allocation10 + $0x24] sm:$0xf] }
 0x296   :  { %3683 = vmatpush.bf16.msrb.mxu0 %v5066_v1  ;;  %3696 = vmatpush.bf16.msrb.mxu1 %v5130_v18  ;;  %v5723_v1 = vld [vmem:[#allocation10 + $0x64] sm:$0xf]  ;;  %v5091_v18 = vld [vmem:[#allocation10 + $0x68] sm:$0xf0] }
 0x297   :  { %3709 = vmatpush.bf16.msrb.mxu2 %v5194_v38  ;;  %3722 = vmatpush.bf16.msrb.mxu3 %v5258_v35  ;;  %v5094_v17 = vor.u32 %v5723_v1, %v5091_v18  ;;  %v5155_v38 = vld [vmem:[#allocation10 + $0xe8] sm:$0xf0]  ;;  %v5794_v1 = vld [vmem:[#allocation10 + $0x294] sm:$0xf0] }
 0x298   :  { %v5158_v35 = vor.u32 %v5739_v44, %v5155_v38  ;;  %v5713_v44 = vld [vmem:[#allocation10 + $0x14] sm:$0xf] }
 0x299   :  { %v5729_v38 = vld [vmem:[#allocation10 + $0x94] sm:$0xf] }
 0x29a   :  { %3684 = vmatpush.bf16.msrb.mxu0 %v5058_v48  ;;  %3697 = vmatpush.bf16.msrb.mxu1 %v5122_v33  ;;  %v5083_v48 = vld [vmem:[#allocation10 + $0x58] sm:$0xf0]  ;;  %v5402_v33 = vor.u32 %v5802_v13, %v5401_v30  ;;  %v5118_v16 = vor.u32 %v5729_v38, %v5115_v53  ;;  %v5297_v30 = vld [vmem:[#allocation10 + $0x200] sm:$0xf] }
 0x29b   :  { %3710 = vmatpush.bf16.msrb.mxu2 %v5186_v47  ;;  %3723 = vmatpush.bf16.msrb.mxu3 %v5250_v3  ;;  %v5086_v23 = vor.u32 %v5721_v4, %v5083_v48  ;;  %v5147_v47 = vld [vmem:[#allocation10 + $0xd8] sm:$0xf0]  ;;  %v5361_v13 = vld [vmem:[#allocation10 + $0x280] sm:$0xf]  ;;  %v5792_v48 = vld [vmem:[#allocation10 + $0x284] sm:$0xf0] }
 0x29c   :  { %v5150_v3 = vor.u32 %v5737_v25, %v5147_v47  ;;  %v5043_v25 = vld [vmem:[#allocation10 + $0x8] sm:$0xf0]  ;;  %v5727_v47 = vld [vmem:[#allocation10 + $0x84] sm:$0xf] }
 0x29e   :  { %3685 = vmatpush.bf16.msrb.mxu0 %v5050_v19  ;;  %3698 = vmatpush.bf16.msrb.mxu1 %v5114_v52  ;;  %v5075_v19 = vld [vmem:[#allocation10 + $0x48] sm:$0xf0]  ;;  %v5735_v52 = vld [vmem:[#allocation10 + $0xc4] sm:$0xf] }
 0x29f   :  { %3711 = vmatpush.bf16.msrb.mxu2 %v5178_v24  ;;  %3724 = vmatpush.bf16.msrb.mxu3 %v5242_v8  ;;  %v5078_v59 = vor.u32 %v5719_v0, %v5075_v19  ;;  %v5142_v5 = vor.u32 %v5735_v52, %v5139_v9  ;;  %v5321_v24 = vld [vmem:[#allocation10 + $0x230] sm:$0xf]  ;;  %v5782_v8 = vld [vmem:[#allocation10 + $0x234] sm:$0xf0] }
 0x2a0   :  { %v5322_v40 = vor.u32 %v5782_v8, %v5321_v24 }
 0x2a2   :  { %3686 = vmatpush.bf16.msrb.mxu0 %v5042_v36  ;;  %3699 = vmatpush.bf16.msrb.mxu1 %v5106_v20  ;;  %v5134_v36 = vor.u32 %v5733_v6, %v5131_v12  ;;  %v5313_v20 = vld [vmem:[#allocation10 + $0x220] sm:$0xf] }
 0x2a3   :  { %3712 = vmatpush.bf16.msrb.mxu2 %v5170_v57  ;;  %3725 = vmatpush.bf16.msrb.mxu3 %v5234_v61  ;;  %v5314_v60 = vor.u32 %v5780_v37, %v5313_v20  ;;  %v5059_v57 = vld [vmem:[#allocation10 + $0x28] sm:$0xf0]  ;;  %v5731_v61 = vld [vmem:[#allocation10 + $0xa4] sm:$0xf]  ;;  %v5757_v20 = vld [vmem:[#allocation10 + $0x174] sm:$0xf] }
 0x2a4   :  { %v5062_v31 = vor.u32 %v5715_v41, %v5059_v57  ;;  %v5126_v63 = vor.u32 %v5731_v61, %v5123_v50  ;;  %v5789_v57 = vld [vmem:[#allocation10 + $0x274] sm:$0xf] }
 0x2a5   :  { %v5805_v50 = vld [vmem:[#allocation10 + $0x2f4] sm:$0xf] }
 0x2a6   :  { %3731 = vmatpush.bf16.msra.mxu0 %v5354_v28  ;;  %3744 = vmatpush.bf16.msra.mxu1 %v5418_v45  ;;  %v5796_v28 = vld [vmem:[#allocation10 + $0x2a4] sm:$0xf0] }
 0x2a7   :  { %3757 = vmatpush.bf16.msra.mxu2 %v5102_v29  ;;  %3770 = vmatpush.bf16.msra.mxu3 %v5166_v58  ;;  %v5378_v45 = vor.u32 %v5796_v28, %v5377_v22  ;;  %v5305_v29 = vld [vmem:[#allocation10 + $0x210] sm:$0xf]  ;;  %v5778_v58 = vld [vmem:[#allocation10 + $0x214] sm:$0xf0]  ;;  %v5773_v28 = vld [vmem:[#allocation10 + $0x1f4] sm:$0xf] }
 0x2aa   :  { %3732 = vmatpush.bf16.msra.mxu0 %v5346_v7  ;;  %3745 = vmatpush.bf16.msra.mxu1 %v5410_v11  ;;  %v5369_v7 = vld [vmem:[#allocation10 + $0x290] sm:$0xf]  ;;  %v5306_v11 = vor.u32 %v5778_v58, %v5305_v29 }
 0x2ab   :  { %3758 = vmatpush.bf16.msra.mxu2 %v5094_v17  ;;  %3771 = vmatpush.bf16.msra.mxu3 %v5158_v35  ;;  %v5370_v18 = vor.u32 %v5794_v1, %v5369_v7  ;;  %v5051_v17 = vld [vmem:[#allocation10 + $0x18] sm:$0xf0]  ;;  %v5755_v7 = vld [vmem:[#allocation10 + $0x164] sm:$0xf] }
 0x2ac   :  { %v5054_v35 = vor.u32 %v5713_v44, %v5051_v17  ;;  %v5771_v44 = vld [vmem:[#allocation10 + $0x1e4] sm:$0xf]  ;;  %v5283_v17 = vld [vmem:[#allocation10 + $0x1e8] sm:$0xf0] }
 0x2ae   :  { %3733 = vmatpush.bf16.msra.mxu0 %v5338_v55  ;;  %3746 = vmatpush.bf16.msra.mxu1 %v5402_v33  ;;  %v5776_v55 = vld [vmem:[#allocation10 + $0x204] sm:$0xf0]  ;;  %v5362_v33 = vor.u32 %v5792_v48, %v5361_v13  ;;  %v5787_v13 = vld [vmem:[#allocation10 + $0x264] sm:$0xf] }
 0x2af   :  { %3759 = vmatpush.bf16.msra.mxu2 %v5086_v23  ;;  %3772 = vmatpush.bf16.msra.mxu3 %v5150_v3  ;;  %v5298_v4 = vor.u32 %v5776_v55, %v5297_v30  ;;  %v5711_v23 = vld [vmem:[#allocation10 + $0x4] sm:$0xf]  ;;  %v5107_v3 = vld [vmem:[#allocation10 + $0x88] sm:$0xf0] }
 0x2b0   :  { %v5046_v14 = vor.u32 %v5711_v23, %v5043_v25  ;;  %v5110_v43 = vor.u32 %v5727_v47, %v5107_v3  ;;  %v5803_v23 = vld [vmem:[#allocation10 + $0x2e4] sm:$0xf]  ;;  %v5411_v25 = vld [vmem:[#allocation10 + $0x2e8] sm:$0xf0]  ;;  %v5286_v3 = vor.u32 %v5771_v44, %v5283_v17 }
 0x2b1   :  { %v5187_v17 = vld [vmem:[#allocation10 + $0x128] sm:$0xf0] }
 0x2b2   :  { %3734 = vmatpush.bf16.msra.mxu0 %v5330_v34  ;;  %3747 = vmatpush.bf16.msra.mxu1 %v5394_v21 }
 0x2b3   :  { %3760 = vmatpush.bf16.msra.mxu2 %v5078_v59  ;;  %3773 = vmatpush.bf16.msra.mxu3 %v5142_v5 }
 0x2b6   :  { %3735 = vmatpush.bf16.msra.mxu0 %v5322_v40  ;;  %3748 = vmatpush.bf16.msra.mxu1 %v5386_v51 }
 0x2b7   :  { %3761 = vmatpush.bf16.msra.mxu2 %v5070_v26  ;;  %3774 = vmatpush.bf16.msra.mxu3 %v5134_v36 }
 0x2ba   :  { %3736 = vmatpush.bf16.msra.mxu0 %v5314_v60  ;;  %3749 = vmatpush.bf16.msra.mxu1 %v5378_v45  ;;  %v5227_v60 = vld [vmem:[#allocation10 + $0x178] sm:$0xf0] }
 0x2bb   :  { %3762 = vmatpush.bf16.msra.mxu2 %v5062_v31  ;;  %3775 = vmatpush.bf16.msra.mxu3 %v5126_v63  ;;  %v5291_v45 = vld [vmem:[#allocation10 + $0x1f8] sm:$0xf0]  ;;  %v5230_v58 = vor.u32 %v5757_v20, %v5227_v60  ;;  %v5331_v20 = vld [vmem:[#allocation10 + $0x248] sm:$0xf0] }
 0x2bc   :  { %v5419_v63 = vld [vmem:[#allocation10 + $0x2f8] sm:$0xf0] }
 0x2bd   :  { %v5422_v55 = vor.u32 %v5805_v50, %v5419_v63  ;;  %v5781_v50 = vld [vmem:[#allocation10 + $0x234] sm:$0xf]  ;;  %v5323_v63 = vld [vmem:[#allocation10 + $0x238] sm:$0xf0] }
 0x2be   :  { %3737 = vmatpush.bf16.msra.mxu0 %v5306_v11  ;;  %3750 = vmatpush.bf16.msra.mxu1 %v5370_v18  ;;  %v5219_v18 = vld [vmem:[#allocation10 + $0x168] sm:$0xf0] }
 0x2bf   :  { %3763 = vmatpush.bf16.msra.mxu2 %v5054_v35  ;;  %3776 = vmatpush.bf16.msra.mxu3 %v5118_v16  ;;  %v5222_v47 = vor.u32 %v5755_v7, %v5219_v18  ;;  %v5747_v7 = vld [vmem:[#allocation10 + $0x124] sm:$0xf] }
 0x2c2   :  { %3738 = vmatpush.bf16.msra.mxu0 %v5298_v4  ;;  %3751 = vmatpush.bf16.msra.mxu1 %v5362_v33  ;;  %v5347_v4 = vld [vmem:[#allocation10 + $0x268] sm:$0xf0] }
 0x2c3   :  { %3764 = vmatpush.bf16.msra.mxu2 %v5046_v14  ;;  %3777 = vmatpush.bf16.msra.mxu3 %v5110_v43  ;;  %v5753_v14 = vld [vmem:[#allocation10 + $0x154] sm:$0xf]  ;;  %v5211_v43 = vld [vmem:[#allocation10 + $0x158] sm:$0xf0] }
 0x2f9   :  { %v2835_v32 = vpop.f32.mrf.mxu0  ;;  %v2855_v34 = vpop.f32.mrf.mxu1 }
 0x2fa   :  { %v3061_v52 = vperm.slane %v2835_v32, 0  ;;  %v3062_v59 = vperm.slane %v2855_v34, 0 }
 0x2fc   :  { %v3067_v10 = vmul.f32 %v3061_v52, %v6140_v42  ;;  %v3068_v40 = vmul.f32 %v3062_v59, %v6149_v56  ;;  %v5355_v56 = vld [vmem:[#allocation10 + $0x278] sm:$0xf0]  ;;  %v5785_v52 = vld [vmem:[#allocation10 + $0x254] sm:$0xf] }
 0x2fd   :  { %v5358_v30 = vor.u32 %v5789_v57, %v5355_v56  ;;  %v5765_v57 = vld [vmem:[#allocation10 + $0x1b4] sm:$0xf]  ;;  %v5259_v56 = vld [vmem:[#allocation10 + $0x1b8] sm:$0xf0] }
 0x300   :  { %v2875_v39 = vpop.f32.mrf.mxu2  ;;  %v2895_v21 = vpop.f32.mrf.mxu3 }
 0x301   :  { %v6848_v0 = vpop.f32.mrf.mxu0  ;;  %v6850_v19 = vpop.f32.mrf.mxu1  ;;  %v3063_v9 = vperm.slane %v2875_v39, 0  ;;  %v3064_v5 = vperm.slane %v2895_v21, 0  ;;  %v5769_v39 = vld [vmem:[#allocation10 + $0x1d4] sm:$0xf]  ;;  %v5275_v21 = vld [vmem:[#allocation10 + $0x1d8] sm:$0xf0] }
 0x302   :  { %v3065_v48 = vperm.slane %v6848_v0, 0  ;;  %v3066_v33 = vperm.slane %v6850_v19, 0  ;;  %v5350_v0 = vor.u32 %v5787_v13, %v5347_v4  ;;  %v5414_v19 = vor.u32 %v5803_v23, %v5411_v25  ;;  %v5779_v13 = vld [vmem:[#allocation10 + $0x224] sm:$0xf]  ;;  %v5315_v4 = vld [vmem:[#allocation10 + $0x228] sm:$0xf0] }
 0x303   :  { %v3069_v26 = vmul.f32 %v3063_v9, %v6299_v46  ;;  %v3070_v6 = vmul.f32 %v3064_v5, %v6627_v2  ;;  %v5294_v2 = vor.u32 %v5773_v28, %v5291_v45  ;;  %v5339_v5 = vld [vmem:[#allocation10 + $0x258] sm:$0xf0]  ;;  %v5749_v28 = vld [vmem:[#allocation10 + $0x134] sm:$0xf]  ;;  %v5190_v23 = vor.u32 %v5747_v7, %v5187_v17 }
 0x304   :  { %v3071_v59 = vmul.f32 %v3065_v48, %v6791_v49  ;;  %v3072_v9 = vmul.f32 %v3066_v33, %v6817_v54  ;;  %v5783_v49 = vld [vmem:[#allocation10 + $0x244] sm:$0xf]  ;;  %v5195_v45 = vld [vmem:[#allocation10 + $0x138] sm:$0xf0]  ;;  %v5379_v33 = vld [vmem:[#allocation10 + $0x2a8] sm:$0xf0] }
 0x305   :  { %v5799_v54 = vld [vmem:[#allocation10 + $0x2c4] sm:$0xf] }
 0x306   :  { %v5795_v48 = vld [vmem:[#allocation10 + $0x2a4] sm:$0xf] }
 0x308   :  { %v2958_v24 = vpop.f32.mrf.mxu2  ;;  %v2978_v8 = vpop.f32.mrf.mxu3 }
 0x309   :  { %v3073_v15 = vperm.slane %v2958_v24, 0  ;;  %v3074_v27 = vperm.slane %v2978_v8, 0  ;;  %v2998_v62 = vpop.f32.mrf.mxu0  ;;  %v3018_v51 = vpop.f32.mrf.mxu1  ;;  %v5801_v24 = vld [vmem:[#allocation10 + $0x2d4] sm:$0xf]  ;;  %v5403_v8 = vld [vmem:[#allocation10 + $0x2d8] sm:$0xf0] }
 0x30a   :  { %v3075_v12 = vperm.slane %v2998_v62, 0  ;;  %v3076_v36 = vperm.slane %v3018_v51, 0  ;;  %v5203_v51 = vld [vmem:[#allocation10 + $0x148] sm:$0xf0] }
 0x30b   :  { %v3079_v37 = vadd.f32 %v3073_v15, %v3067_v10  ;;  %v3080_v22 = vadd.f32 %v3074_v27, %v3068_v40  ;;  %v5214_v10 = vor.u32 %v5753_v14, %v5211_v43  ;;  %v5278_v40 = vor.u32 %v5769_v39, %v5275_v21  ;;  %v5751_v15 = vld [vmem:[#allocation10 + $0x144] sm:$0xf]  ;;  %v5761_v14 = vld [vmem:[#allocation10 + $0x194] sm:$0xf]  ;;  %v5243_v43 = vld [vmem:[#allocation10 + $0x198] sm:$0xf0] }
 0x30c   :  { %v3081_v41 = vadd.f32 %v3075_v12, %v3069_v26  ;;  %v3082_v42 = vadd.f32 %v3076_v36, %v3070_v6  ;;  %v5767_v26 = vld [vmem:[#allocation10 + $0x1c4] sm:$0xf]  ;;  %v5267_v6 = vld [vmem:[#allocation10 + $0x1c8] sm:$0xf0]  ;;  %v5342_v12 = vor.u32 %v5785_v52, %v5339_v5  ;;  %v5406_v36 = vor.u32 %v5801_v24, %v5403_v8  ;;  %v5777_v39 = vld [vmem:[#allocation10 + $0x214] sm:$0xf] }
 0x30d   :  { %v3085_v61 = vmax.f32 %v3079_v37, 0.0  ;;  %v3086_v31 = vmax.f32 %v3080_v22, 0.0  ;;  %v5395_v37 = vld [vmem:[#allocation10 + $0x2c8] sm:$0xf0]  ;;  %v5206_v22 = vor.u32 %v5751_v15, %v5203_v51  ;;  %v5270_v60 = vor.u32 %v5767_v26, %v5267_v6  ;;  %v5307_v21 = vld [vmem:[#allocation10 + $0x218] sm:$0xf0] }
 0x30e   :  { %v3087_v29 = vmax.f32 %v3081_v41, 0.0  ;;  %v3088_v46 = vmax.f32 %v3082_v42, 0.0  ;;  %v5171_v5 = vld [vmem:[#allocation10 + $0x108] sm:$0xf0]  ;;  %v5791_v15 = vld [vmem:[#allocation10 + $0x284] sm:$0xf] }
 0x30f   :  { %v6856_v11 = vpack.c.bf16 %v3085_v61, %v3085_v61  ;;  %v6858_v1 = vpack.c.bf16 %v3086_v31, %v3086_v31  ;;  %v5334_v61 = vor.u32 %v5783_v49, %v5331_v20  ;;  %v5398_v31 = vor.u32 %v5799_v54, %v5395_v37  ;;  %v5235_v24 = vld [vmem:[#allocation10 + $0x188] sm:$0xf0] }
 0x310   :  { %v6860_v38 = vpack.c.bf16 %v3087_v29, %v3087_v29  ;;  %v6862_v35 = vpack.c.bf16 %v3088_v46, %v3088_v46  ;;  %v3038_v53 = vpop.f32.mrf.mxu2  ;;  %v3058_v16 = vpop.f32.mrf.mxu3  ;;  %v5797_v29 = vld [vmem:[#allocation10 + $0x2b4] sm:$0xf]  ;;  %v5387_v46 = vld [vmem:[#allocation10 + $0x2b8] sm:$0xf0] }
 0x311   :  { %3687 = vmatmul.bf16.vlgmr.msrb.gmra.mxu0 %v6856_v11  ;;  %3700 = vmatmul.bf16.vlgmr.msrb.gmra.mxu1 %v6858_v1  ;;  %v3077_v32 = vperm.slane %v3038_v53, 0  ;;  %v3078_v34 = vperm.slane %v3058_v16, 0  ;;  %v5763_v53 = vld [vmem:[#allocation10 + $0x1a4] sm:$0xf]  ;;  %v5251_v16 = vld [vmem:[#allocation10 + $0x1a8] sm:$0xf0] }
 0x312   :  { %3783 = vmatpush.bf16.msrb.mxu0 %v5230_v58  ;;  %3796 = vmatpush.bf16.msrb.mxu1 %v5294_v2  ;;  %v5198_v58 = vor.u32 %v5749_v28, %v5195_v45  ;;  %v5262_v2 = vor.u32 %v5765_v57, %v5259_v56  ;;  %v5254_v25 = vor.u32 %v5763_v53, %v5251_v16 }
 0x313   :  { %3713 = vmatmul.bf16.vlgmr.msrb.gmra.mxu2 %v6860_v38  ;;  %3726 = vmatmul.bf16.vlgmr.msrb.gmra.mxu3 %v6862_v35  ;;  %v3083_v27 = vadd.f32 %v3077_v32, %v3071_v59  ;;  %v3084_v62 = vadd.f32 %v3078_v34, %v3072_v9  ;;  %v5318_v32 = vor.u32 %v5779_v13, %v5315_v4  ;;  %v5743_v9 = vld [vmem:[#allocation10 + $0x104] sm:$0xf] }
 0x314   :  { %3809 = vmatpush.bf16.msrb.mxu2 %v5358_v30  ;;  %3822 = vmatpush.bf16.msrb.mxu3 %v5422_v55  ;;  %v5326_v30 = vor.u32 %v5781_v50, %v5323_v63  ;;  %v5390_v55 = vor.u32 %v5797_v29, %v5387_v46  ;;  %v5382_v34 = vor.u32 %v5795_v48, %v5379_v33 }
 0x315   :  { %v3089_v41 = vmax.f32 %v3083_v27, 0.0  ;;  %v3090_v42 = vmax.f32 %v3084_v62, 0.0  ;;  %v5246_v59 = vor.u32 %v5761_v14, %v5243_v43  ;;  %v5363_v27 = vld [vmem:[#allocation10 + $0x288] sm:$0xf0]  ;;  %v5174_v62 = vor.u32 %v5743_v9, %v5171_v5 }
 0x316   :  { %3784 = vmatpush.bf16.msrb.mxu0 %v5222_v47  ;;  %3797 = vmatpush.bf16.msrb.mxu1 %v5286_v3  ;;  %v5745_v47 = vld [vmem:[#allocation10 + $0x114] sm:$0xf]  ;;  %v5179_v3 = vld [vmem:[#allocation10 + $0x118] sm:$0xf0]  ;;  %v5366_v6 = vor.u32 %v5791_v15, %v5363_v27 }
 0x317   :  { %v3095_v18 = vpack.c.bf16 %v3089_v41, %v3089_v41  ;;  %v3096_v44 = vpack.c.bf16 %v3090_v42, %v3090_v42  ;;  %v5182_v52 = vor.u32 %v5745_v47, %v5179_v3  ;;  %v3193_v41 = vld [vmem:[#allocation11] sm:$0x3] }
 0x318   :  { %3810 = vmatpush.bf16.msrb.mxu2 %v5350_v0  ;;  %3823 = vmatpush.bf16.msrb.mxu3 %v5414_v19  ;;  %v5793_v0 = vld [vmem:[#allocation10 + $0x294] sm:$0xf]  ;;  %v5371_v19 = vld [vmem:[#allocation10 + $0x298] sm:$0xf0]  ;;  %v3195_v42 = vperm.slane %v3193_v41, 0 }
 0x319   :  { %v5374_v8 = vor.u32 %v5793_v0, %v5371_v19 }
 0x31a   :  { %3785 = vmatpush.bf16.msrb.mxu0 %v5214_v10  ;;  %3798 = vmatpush.bf16.msrb.mxu1 %v5278_v40  ;;  %v5775_v10 = vld [vmem:[#allocation10 + $0x204] sm:$0xf]  ;;  %v5299_v40 = vld [vmem:[#allocation10 + $0x208] sm:$0xf0] }
 0x31b   :  { %v5302_v26 = vor.u32 %v5775_v10, %v5299_v40 }
 0x31c   :  { %3811 = vmatpush.bf16.msrb.mxu2 %v5342_v12  ;;  %3824 = vmatpush.bf16.msrb.mxu3 %v5406_v36 }
 0x31e   :  { %3786 = vmatpush.bf16.msrb.mxu0 %v5206_v22  ;;  %3799 = vmatpush.bf16.msrb.mxu1 %v5270_v60 }
 0x320   :  { %3812 = vmatpush.bf16.msrb.mxu2 %v5334_v61  ;;  %3825 = vmatpush.bf16.msrb.mxu3 %v5398_v31  ;;  %v3196_v31 = vperm.slane %v3193_v41, 1 }
 0x321   :  { %3739 = vmatmul.bf16.vlgmr.msra.gmra.mxu0 %v3095_v18  ;;  %3752 = vmatmul.bf16.vlgmr.msra.gmra.mxu1 %v3096_v44 }
 0x322   :  { %3787 = vmatpush.bf16.msrb.mxu0 %v5198_v58  ;;  %3800 = vmatpush.bf16.msrb.mxu1 %v5262_v2 }
 0x323   :  { %3765 = vmatmul.bf16.vlgmr.msra.gmra.mxu2 %v6856_v11  ;;  %3778 = vmatmul.bf16.vlgmr.msra.gmra.mxu3 %v6858_v1  ;;  %v5759_v11 = vld [vmem:[#allocation10 + $0x184] sm:$0xf]  ;;  %v5310_v1 = vor.u32 %v5777_v39, %v5307_v21 }
 0x324   :  { %3813 = vmatpush.bf16.msrb.mxu2 %v5326_v30  ;;  %3826 = vmatpush.bf16.msrb.mxu3 %v5390_v55  ;;  %v5238_v51 = vor.u32 %v5759_v11, %v5235_v24 }
 0x326   :  { %3788 = vmatpush.bf16.msrb.mxu0 %v5190_v23  ;;  %3801 = vmatpush.bf16.msrb.mxu1 %v5254_v25 }
 0x328   :  { %3814 = vmatpush.bf16.msrb.mxu2 %v5318_v32  ;;  %3827 = vmatpush.bf16.msrb.mxu3 %v5382_v34 }
 0x32a   :  { %3789 = vmatpush.bf16.msrb.mxu0 %v5182_v52  ;;  %3802 = vmatpush.bf16.msrb.mxu1 %v5246_v59 }
 0x32c   :  { %3815 = vmatpush.bf16.msrb.mxu2 %v5310_v1  ;;  %3828 = vmatpush.bf16.msrb.mxu3 %v5374_v8 }
 0x32e   :  { %3790 = vmatpush.bf16.msrb.mxu0 %v5174_v62  ;;  %3803 = vmatpush.bf16.msrb.mxu1 %v5238_v51 }
 0x330   :  { %3816 = vmatpush.bf16.msrb.mxu2 %v5302_v26  ;;  %3829 = vmatpush.bf16.msrb.mxu3 %v5366_v6 }
 0x331   :  { %3791 = vmatmul.bf16.vlgmr.msrb.gmra.mxu0 %v6860_v38  ;;  %3804 = vmatmul.bf16.vlgmr.msrb.gmra.mxu1 %v6862_v35 }
 0x333   :  { %3817 = vmatmul.bf16.vlgmr.msrb.gmra.mxu2 %v3095_v18  ;;  %3830 = vmatmul.bf16.vlgmr.msrb.gmra.mxu3 %v3096_v44 }
 0x38e   :  { %v3688_v12 = vpop.f32.mrf.mxu0  ;;  %v3701_v36 = vpop.f32.mrf.mxu1 }
 0x38f   :  { %v3689_v35 = vadd.f32 %v3688_v12, %v3195_v42 }
 0x391   :  { %v3702_v63 = vadd.f32 %v3701_v36, %v3689_v35 }
 0x396   :  { %v3690_v49 = vpop.f32.mrf.mxu0  ;;  %v3703_v20 = vpop.f32.mrf.mxu1 }
 0x397   :  { %v3714_v54 = vpop.f32.mrf.mxu2  ;;  %v3727_v37 = vpop.f32.mrf.mxu3 }
 0x398   :  { %v3715_v7 = vadd.f32 %v3714_v54, %v3702_v63 }
 0x39a   :  { %v3728_v17 = vadd.f32 %v3727_v37, %v3715_v7 }
 0x39e   :  { %v3740_v22 = vpop.f32.mrf.mxu0  ;;  %v3753_v60 = vpop.f32.mrf.mxu1 }
 0x39f   :  { %v3716_v28 = vpop.f32.mrf.mxu2  ;;  %v3729_v45 = vpop.f32.mrf.mxu3  ;;  %v3741_v53 = vadd.f32 %v3740_v22, %v3728_v17 }
 0x3a1   :  { %v3754_v33 = vadd.f32 %v3753_v60, %v3741_v53 }
 0x3a3   :  { %v3835_v47 = vmax.f32 %v3754_v33, 0.0 }
 0x3a6   :  { %v3742_v57 = vpop.f32.mrf.mxu0  ;;  %v3755_v56 = vpop.f32.mrf.mxu1 }
 0x3a7   :  { %v3766_v61 = vpop.f32.mrf.mxu2  ;;  %v3779_v38 = vpop.f32.mrf.mxu3 }
 0x3a8   :  { %v3767_v50 = vadd.f32 %v3766_v61, %v3196_v31 }
 0x3aa   :  { %v3780_v18 = vadd.f32 %v3779_v38, %v3767_v50 }
 0x3ae   :  { %v3792_v29 = vpop.f32.mrf.mxu0  ;;  %v3805_v46 = vpop.f32.mrf.mxu1 }
 0x3af   :  { %v3768_v58 = vpop.f32.mrf.mxu2  ;;  %v3781_v2 = vpop.f32.mrf.mxu3  ;;  %v3793_v44 = vadd.f32 %v3792_v29, %v3780_v18 }
 0x3b1   :  { %v3806_v16 = vadd.f32 %v3805_v46, %v3793_v44 }
 0x3b6   :  { %v3794_v30 = vpop.f32.mrf.mxu0  ;;  %v3807_v55 = vpop.f32.mrf.mxu1 }
 0x3b7   :  { %v3818_v13 = vpop.f32.mrf.mxu2  ;;  %v3831_v4 = vpop.f32.mrf.mxu3 }
 0x3b8   :  { %v3819_v48 = vadd.f32 %v3818_v13, %v3806_v16 }
 0x3ba   :  { %v3832_v23 = vadd.f32 %v3831_v4, %v3819_v48 }
 0x3bc   :  { %v3836_v25 = vmax.f32 %v3832_v23, 0.0 }
 0x3be   :  { %v3839_v3 = vrot.slane %v3836_v25, 6 }
 0x3bf   :  { %v3820_v14 = vpop.f32.mrf.mxu2  ;;  %v3833_v43 = vpop.f32.mrf.mxu3 }
 0x3c0   :  { %v3840_v32 = vsel %vm2329_vm0, %v3835_v47, %v3839_v3 }
 0x3c1   :  { %3842 = vst [vmem:[#allocation13] sm:$0xf] %v3840_v32 }
 0x3c2   :  { %3853 = dma.vmem_to_hbm [thread:$0]  %s3849_s1, 64, %s3851_s10, [#allocation4]  }
 0x3c3   :  { %6007 = dma.done.wait [#allocation4], 64  }
 0x3c4   :  { %6008 = vsyncadd [#allocation4], 4294967232 }
 0x3c5   :  { %3858 = vsyncpa [#allocation3], 1 }
 0x3c6   :  { %3859 = vsyncpa [#allocation6], 1 }
 0x3c7   :  { %3860 = vsyncpa [#allocation9], 1 }
 0x3c8   :  { %3861 = vsyncpa [#allocation12], 1 }
 0x3c9   :  { %3862 = vsyncpa [#allocation4], 1 }

</bundles_post_ra>
